<compile_context>
chip_gen: v5e
topology: v5e:2x2
jax: 0.10.0
libtpu: 0.0.40
codegen_flags: <defaults>
</compile_context>

<pallas_src>
import jax
import jax.numpy as jnp
from jax import lax
from jax.experimental import pallas as pl
from jax.experimental.pallas import tpu as pltpu

# ----- model hyper-parameters (small, consistent with the module) -----
VOCAB = 32
EMBED = 16
LSTM_H = 32            # H
CNN_H = 32
NUM_CLASSES = 3
BATCH = 2
SEQ = 8

# ----- TPU padding constants -----
LANE = 128             # lane width
B_PAD = 8              # batch padded to one f32 sublane tile
NGATES = 4             # i, f, g, o
GATE_W = LANE          # each 2H=64 gate block padded to 128 lanes
GATES_W = NGATES * GATE_W   # 512
VOCAB_PAD = LANE       # one-hot / emb_wih row count


# ---------------------------------------------------------------------------
# Single fused kernel
# ---------------------------------------------------------------------------
def lstm_cnn_kernel(ids_ref,      # VMEM (T*B_PAD, 1) int32, time-major t*B_PAD+b
                    embwih_ref,   # VMEM (VOCAB_PAD, GATES_W) emb @ W_ih (both dirs)
                    whh_ref,      # VMEM (LANE, GATES_W) recurrent weights (pad rows 0)
                    b_ref,        # VMEM (1, GATES_W) packed b_ih+b_hh (both dirs)
                    convw_ref,    # VMEM (3, LANE, LANE) conv taps (t-1, t, t+1)
                    convb_ref,    # VMEM (1, LANE)
                    fcw_ref,      # VMEM (LANE, LANE)
                    fcb_ref,      # VMEM (1, LANE)
                    out_ref,      # VMEM (B_PAD, LANE)
                    z_scr,        # VMEM (T*B_PAD, GATES_W) scratch: input projections
                    fwd_scr,      # VMEM ((T+2)*B_PAD, LANE) scratch: fwd hidden slab
                    bwd_scr):     # VMEM ((T+2)*B_PAD, LANE) scratch: bwd hidden slab
    f32 = jnp.float32
    B = B_PAD
    T = SEQ
    H = LSTM_H
    TB = T * B

    # ---- 1) embedding lookup fused with input projection (one-hot matmul) ----
    ids = ids_ref[...]                                              # (TB, 1) int32
    vocab_iota = lax.broadcasted_iota(jnp.int32, (TB, VOCAB_PAD), 1)
    onehot = (vocab_iota == ids).astype(f32)                        # (TB, 128)
    z_scr[...] = (jnp.dot(onehot, embwih_ref[...],
                          preferred_element_type=f32) + b_ref[...])  # (TB, 512)

    # ---- 2) zero the conv-padding edge rows of the hidden-state slabs ----
    zedge = jnp.zeros((B, LANE), f32)
    fwd_scr[0:B, :] = zedge
    bwd_scr[0:B, :] = zedge
    fwd_scr[(T + 1) * B:(T + 2) * B, :] = zedge
    bwd_scr[(T + 1) * B:(T + 2) * B, :] = zedge

    # ---- 3) merged fwd/bwd recurrence, fully unrolled (T=8 static) ----
    col = lax.broadcasted_iota(jnp.int32, (B, GATES_W), 1)
    fwd_mask = (col % GATE_W) < H       # forward-direction lanes of each gate block

    h = jnp.zeros((B, LANE), f32)       # [h_fwd | h_bwd | 0 pad]
    c = jnp.zeros((B, LANE), f32)       # [c_fwd | c_bwd | 0 pad]
    for s in range(T):
        zf = z_scr[s * B:(s + 1) * B, :]               # fwd input proj @ time s
        zb = z_scr[(T - 1 - s) * B:(T - s) * B, :]     # bwd input proj @ time T-1-s
        z = jnp.where(fwd_mask, zf, zb) + jnp.dot(
            h, whh_ref[...], preferred_element_type=f32)            # (B, 512)
        i_g = jax.nn.sigmoid(z[:, 0 * GATE_W:1 * GATE_W])
        f_g = jax.nn.sigmoid(z[:, 1 * GATE_W:2 * GATE_W])
        g_g = jnp.tanh(z[:, 2 * GATE_W:3 * GATE_W])
        o_g = jax.nn.sigmoid(z[:, 3 * GATE_W:4 * GATE_W])
        c = f_g * c + i_g * g_g
        h = o_g * jnp.tanh(c)
        fwd_scr[(s + 1) * B:(s + 2) * B, :] = h        # forward hidden @ time s
        bwd_scr[(T - s) * B:(T + 1 - s) * B, :] = h    # backward hidden @ time T-1-s

    # ---- 4) combine directions, Conv1d(k=3, pad=1) + ReLU ----
    lane = lax.broadcasted_iota(jnp.int32, ((T + 2) * B, LANE), 1)
    comb = jnp.where(lane < H, fwd_scr[...], bwd_scr[...])   # [h_fwd(t)|h_bwd(t)|0]
    x_prev = comb[0:TB, :]                  # lstm_out[t-1]  (zero row block at t=0)
    x_cur = comb[B:(T + 1) * B, :]          # lstm_out[t]
    x_next = comb[2 * B:(T + 2) * B, :]     # lstm_out[t+1]  (zero row block at t=T-1)
    y = (jnp.dot(x_prev, convw_ref[0], preferred_element_type=f32)
         + jnp.dot(x_cur, convw_ref[1], preferred_element_type=f32)
         + jnp.dot(x_next, convw_ref[2], preferred_element_type=f32)
         + convb_ref[...])
    y = jnp.maximum(y, 0.0)                 # (TB, 128), padded cols stay 0

    # ---- 5) AdaptiveMaxPool1d(1): max over time via aligned half-slab tree ----
    p = jnp.maximum(y[0:4 * B, :], y[4 * B:8 * B, :])
    p = jnp.maximum(p[0:2 * B, :], p[2 * B:4 * B, :])
    p = jnp.maximum(p[0:B, :], p[B:2 * B, :])          # (B, 128)

    # dropout is identity in eval mode
    # ---- 6) classifier head ----
    out_ref[...] = (jnp.dot(p, fcw_ref[...], preferred_element_type=f32)
                    + fcb_ref[...])


# ---------------------------------------------------------------------------
# Wrapper (one pallas_call, no grid, everything resident in VMEM)
# ---------------------------------------------------------------------------
_VMEM = pl.BlockSpec(memory_space=pltpu.MemorySpace.VMEM)


@jax.jit
def lstm_cnn_forward(x_ids, params):
    if x_ids.dtype != jnp.int32:            # PyTorch casts float ids to long
        x_ids = x_ids.astype(jnp.int32)
    B, T = x_ids.shape
    # time-major padded ids: row t*B_PAD + b ; padded batch rows get id 0
    ids_tm = jnp.zeros((T, B_PAD), jnp.int32).at[:, :B].set(x_ids.T)
    ids_tm = ids_tm.reshape(T * B_PAD, 1)

    out = pl.pallas_call(
        lstm_cnn_kernel,
        out_shape=jax.ShapeDtypeStruct((B_PAD, LANE), jnp.float32),
        in_specs=[_VMEM] * 8,
        out_specs=_VMEM,
        scratch_shapes=[
            pltpu.VMEM((SEQ * B_PAD, GATES_W), jnp.float32),
            pltpu.VMEM(((SEQ + 2) * B_PAD, LANE), jnp.float32),
            pltpu.VMEM(((SEQ + 2) * B_PAD, LANE), jnp.float32),
        ],
    )(ids_tm, params['emb_wih'], params['w_hh'], params['b'],
      params['conv_w'], params['conv_b'], params['fc_w'], params['fc_b'])
    return out[:B, :NUM_CLASSES]


# ---------------------------------------------------------------------------
# Deterministic parameter construction + one-time packing (no checkpoint load)
# NOTE: loading a real PyTorch checkpoint would require transposing W_ih/W_hh,
# summing b_ih+b_hh, and permuting conv weights (Cout,Cin,K) -> (K,Cin,Cout)
# before this packing.
# ---------------------------------------------------------------------------
def init_params(key):
    ks = jax.random.split(key, 11)
    H = LSTM_H

    def u(k, shape, scale=0.1):
        return jax.random.uniform(k, shape, jnp.float32, -scale, scale)

    emb = u(ks[0], (VOCAB, EMBED)).at[0].set(0.0)       # padding_idx=0 row = 0

    # per-direction LSTM params in x @ W convention, gate blocks [i|f|g|o]
    w_ih_f = u(ks[1], (EMBED, 4 * H))
    w_hh_f = u(ks[2], (H, 4 * H))
    b_f = u(ks[3], (1, 4 * H))          # b_ih + b_hh fused (forward)
    w_ih_b = u(ks[4], (EMBED, 4 * H))
    w_hh_b = u(ks[5], (H, 4 * H))
    b_b = u(ks[6], (1, 4 * H))          # b_ih + b_hh fused (backward)

    conv_w = u(ks[7], (3, 2 * H, CNN_H))   # tap-major (k, Cin, Cout); k=0 -> t-1
    conv_b = u(ks[8], (1, CNN_H))
    fc_w = u(ks[9], (CNN_H, NUM_CLASSES))
    fc_b = u(ks[10], (1, NUM_CLASSES))

    def pack_gate_cols(fwd, bwd):
        # (..., 4H) x2 -> (..., 4*GATE_W): per gate block [fwd_H | bwd_H | 0 pad]
        lead = fwd.shape[:-1]
        pad = jnp.zeros(lead + (GATE_W - 2 * H,), jnp.float32)
        blocks = []
        for g in range(4):
            blocks += [fwd[..., g * H:(g + 1) * H],
                       bwd[..., g * H:(g + 1) * H], pad]
        return jnp.concatenate(blocks, axis=-1)

    # embedding folded into the input projection: (VOCAB_PAD, 4*GATE_W)
    emb_wih = emb @ pack_gate_cols(w_ih_f, w_ih_b)
    emb_wih = jnp.zeros((VOCAB_PAD, GATES_W), jnp.float32).at[:VOCAB].set(emb_wih)

    # recurrent weights: rows follow the h lane layout [h_fwd | h_bwd | 0 pad]
    z4 = jnp.zeros((H, 4 * H), jnp.float32)
    whh = jnp.zeros((LANE, GATES_W), jnp.float32)
    whh = whh.at[:H].set(pack_gate_cols(w_hh_f, z4))
    whh = whh.at[H:2 * H].set(pack_gate_cols(z4, w_hh_b))

    b = pack_gate_cols(b_f, b_b)                                    # (1, 512)

    conv_w_p = jnp.zeros((3, LANE, LANE), jnp.float32).at[:, :2 * H, :CNN_H].set(conv_w)
    conv_b_p = jnp.zeros((1, LANE), jnp.float32).at[:, :CNN_H].set(conv_b)
    fc_w_p = jnp.zeros((LANE, LANE), jnp.float32).at[:CNN_H, :NUM_CLASSES].set(fc_w)
    fc_b_p = jnp.zeros((1, LANE), jnp.float32).at[:, :NUM_CLASSES].set(fc_b)

    return dict(emb_wih=emb_wih, w_hh=whh, b=b,
                conv_w=conv_w_p, conv_b=conv_b_p, fc_w=fc_w_p, fc_b=fc_b_p)


if __name__ == "__main__":
    key = jax.random.PRNGKey(0)
    pkey, xkey = jax.random.split(key)
    params = init_params(pkey)
    # token ids; the PyTorch module would cast float inputs to long anyway
    x = jax.random.randint(xkey, (BATCH, SEQ), 0, VOCAB, dtype=jnp.int32)

    logits = lstm_cnn_forward(x, params)
    jax.block_until_ready(logits)
    assert logits.shape == (BATCH, NUM_CLASSES)
    print("KERNEL_OK")
</pallas_src>

<mosaic_0001>
module attributes {stable_mosaic.version = 11 : i64} {
  func.func @lstm_cnn_kernel(%arg0: memref<64x1xi32, #tpu.memory_space<vmem>>, %arg1: memref<128x512xf32, #tpu.memory_space<vmem>>, %arg2: memref<128x512xf32, #tpu.memory_space<vmem>>, %arg3: memref<1x512xf32, #tpu.memory_space<vmem>>, %arg4: memref<3x128x128xf32, #tpu.memory_space<vmem>>, %arg5: memref<1x128xf32, #tpu.memory_space<vmem>>, %arg6: memref<128x128xf32, #tpu.memory_space<vmem>>, %arg7: memref<1x128xf32, #tpu.memory_space<vmem>>, %arg8: memref<8x128xf32, #tpu.memory_space<vmem>>, %arg9: memref<64x512xf32, #tpu.memory_space<vmem>>, %arg10: memref<80x128xf32, #tpu.memory_space<vmem>>, %arg11: memref<80x128xf32, #tpu.memory_space<vmem>>) attributes {dimension_semantics = [], scalar_prefetch = 0 : i64, scratch_operands = 3 : i64, tpu.core_type = #tpu.core_type<tc>} {
    %c0 = arith.constant 0 : index
    %c0_0 = arith.constant 0 : index
    %0 = vector.load %arg0[%c0, %c0_0] : memref<64x1xi32, #tpu.memory_space<vmem>>, vector<64x1xi32>
    %1 = tpu.iota {dimensions = array<i32: 1>} : vector<64x128xi32>
    %2 = vector.broadcast %0 : vector<64x1xi32> to vector<64x128xi32>
    %3 = arith.cmpi eq, %1, %2 : vector<64x128xi32>
    %4 = arith.extui %3 : vector<64x128xi1> to vector<64x128xi32>
    %5 = arith.sitofp %4 : vector<64x128xi32> to vector<64x128xf32>
    %c0_1 = arith.constant 0 : index
    %c0_2 = arith.constant 0 : index
    %6 = vector.load %arg1[%c0_1, %c0_2] : memref<128x512xf32, #tpu.memory_space<vmem>>, vector<128x512xf32>
    %cst = arith.constant dense<0.000000e+00> : vector<64x512xf32>
    %7 = tpu.matmul %5, %6, %cst {dimension_numbers = #tpu.dot_dimension_numbers<[1], [0], [0], [1], [0, 0, 1, 1], [], []>} : vector<64x128xf32>, vector<128x512xf32>, vector<64x512xf32> -> vector<64x512xf32>
    %c0_3 = arith.constant 0 : index
    %c0_4 = arith.constant 0 : index
    %8 = vector.load %arg3[%c0_3, %c0_4] : memref<1x512xf32, #tpu.memory_space<vmem>>, vector<1x512xf32>
    %9 = vector.broadcast %8 : vector<1x512xf32> to vector<64x512xf32>
    %10 = arith.addf %7, %9 : vector<64x512xf32>
    %c0_5 = arith.constant 0 : index
    %c0_6 = arith.constant 0 : index
    %11 = vector.load %arg9[%c0_5, %c0_6] : memref<64x512xf32, #tpu.memory_space<vmem>>, vector<64x512xf32>
    tpu.vector_store %arg9[%c0_5, %c0_6], %10 {strides = array<i32>} : memref<64x512xf32, #tpu.memory_space<vmem>>, vector<64x512xf32>,
    %cst_7 = arith.constant 0.000000e+00 : f32
    %12 = vector.broadcast %cst_7 : f32 to vector<8x128xf32>
    %c0_8 = arith.constant 0 : index
    %c0_9 = arith.constant 0 : index
    %13 = vector.load %arg10[%c0_8, %c0_9] : memref<80x128xf32, #tpu.memory_space<vmem>>, vector<8x128xf32>
    tpu.vector_store %arg10[%c0_8, %c0_9], %12 {strides = array<i32>} : memref<80x128xf32, #tpu.memory_space<vmem>>, vector<8x128xf32>,
    %c0_10 = arith.constant 0 : index
    %c0_11 = arith.constant 0 : index
    %14 = vector.load %arg11[%c0_10, %c0_11] : memref<80x128xf32, #tpu.memory_space<vmem>>, vector<8x128xf32>
    tpu.vector_store %arg11[%c0_10, %c0_11], %12 {strides = array<i32>} : memref<80x128xf32, #tpu.memory_space<vmem>>, vector<8x128xf32>,
    %c72 = arith.constant 72 : index
    %c0_12 = arith.constant 0 : index
    %15 = vector.load %arg10[%c72, %c0_12] : memref<80x128xf32, #tpu.memory_space<vmem>>, vector<8x128xf32>
    tpu.vector_store %arg10[%c72, %c0_12], %12 {strides = array<i32>} : memref<80x128xf32, #tpu.memory_space<vmem>>, vector<8x128xf32>,
    %c72_13 = arith.constant 72 : index
    %c0_14 = arith.constant 0 : index
    %16 = vector.load %arg11[%c72_13, %c0_14] : memref<80x128xf32, #tpu.memory_space<vmem>>, vector<8x128xf32>
    tpu.vector_store %arg11[%c72_13, %c0_14], %12 {strides = array<i32>} : memref<80x128xf32, #tpu.memory_space<vmem>>, vector<8x128xf32>,
    %17 = tpu.iota {dimensions = array<i32: 1>} : vector<8x512xi32>
    %c128_i32 = arith.constant 128 : i32
    %c0_i32 = arith.constant 0 : i32
    %18 = arith.cmpi eq, %c128_i32, %c0_i32 : i32
    %c1_i32 = arith.constant 1 : i32
    %19 = arith.select %18, %c1_i32, %c128_i32 : i32
    %20 = vector.broadcast %19 : i32 to vector<8x512xi32>
    %21 = arith.remsi %17, %20 : vector<8x512xi32>
    %c0_i32_15 = arith.constant 0 : i32
    %22 = vector.broadcast %c0_i32_15 : i32 to vector<8x512xi32>
    %23 = arith.cmpi ne, %21, %22 : vector<8x512xi32>
    %c0_i32_16 = arith.constant 0 : i32
    %24 = vector.broadcast %c0_i32_16 : i32 to vector<8x512xi32>
    %25 = arith.cmpi slt, %21, %24 : vector<8x512xi32>
    %c0_i32_17 = arith.constant 0 : i32
    %26 = arith.cmpi slt, %19, %c0_i32_17 : i32
    %27 = vector.broadcast %26 : i1 to vector<8x512xi1>
    %28 = vector.broadcast %27 : vector<8x512xi1> to vector<8x512xi1>
    %29 = arith.xori %25, %28 : vector<8x512xi1>
    %30 = arith.andi %29, %23 : vector<8x512xi1>
    %31 = vector.broadcast %19 : i32 to vector<8x512xi32>
    %32 = arith.addi %21, %31 : vector<8x512xi32>
    %33 = arith.select %30, %32, %21 : vector<8x512xi1>, vector<8x512xi32>
    %c32_i32 = arith.constant 32 : i32
    %34 = vector.broadcast %c32_i32 : i32 to vector<8x512xi32>
    %35 = arith.cmpi slt, %33, %34 : vector<8x512xi32>
    %cst_18 = arith.constant 0.000000e+00 : f32
    %36 = vector.broadcast %cst_18 : f32 to vector<8x128xf32>
    %cst_19 = arith.constant 0.000000e+00 : f32
    %37 = vector.broadcast %cst_19 : f32 to vector<8x128xf32>
    %c0_20 = arith.constant 0 : index
    %c0_21 = arith.constant 0 : index
    %38 = vector.load %arg9[%c0_20, %c0_21] : memref<64x512xf32, #tpu.memory_space<vmem>>, vector<8x512xf32>
    %c56 = arith.constant 56 : index
    %c0_22 = arith.constant 0 : index
    %39 = vector.load %arg9[%c56, %c0_22] : memref<64x512xf32, #tpu.memory_space<vmem>>, vector<8x512xf32>
    %40 = arith.select %35, %38, %39 : vector<8x512xi1>, vector<8x512xf32>
    %c0_23 = arith.constant 0 : index
    %c0_24 = arith.constant 0 : index
    %41 = vector.load %arg2[%c0_23, %c0_24] : memref<128x512xf32, #tpu.memory_space<vmem>>, vector<128x512xf32>
    %cst_25 = arith.constant dense<0.000000e+00> : vector<8x512xf32>
    %42 = tpu.matmul %36, %41, %cst_25 {dimension_numbers = #tpu.dot_dimension_numbers<[1], [0], [0], [1], [0, 0, 1, 1], [], []>} : vector<8x128xf32>, vector<128x512xf32>, vector<8x512xf32> -> vector<8x512xf32>
    %43 = arith.addf %40, %42 : vector<8x512xf32>
    %44 = vector.extract_strided_slice %43 {offsets = [0, 0], sizes = [8, 128], strides = [1, 1]} : vector<8x512xf32> to vector<8x128xf32>
    %45 = arith.negf %44 : vector<8x128xf32>
    %46 = math.exp %45 : vector<8x128xf32>
    %cst_26 = arith.constant 1.000000e+00 : f32
    %47 = vector.broadcast %cst_26 : f32 to vector<8x128xf32>
    %48 = arith.addf %47, %46 : vector<8x128xf32>
    %49 = arith.divf %47, %48 : vector<8x128xf32>
    %50 = vector.extract_strided_slice %43 {offsets = [0, 128], sizes = [8, 128], strides = [1, 1]} : vector<8x512xf32> to vector<8x128xf32>
    %51 = arith.negf %50 : vector<8x128xf32>
    %52 = math.exp %51 : vector<8x128xf32>
    %cst_27 = arith.constant 1.000000e+00 : f32
    %53 = vector.broadcast %cst_27 : f32 to vector<8x128xf32>
    %54 = arith.addf %53, %52 : vector<8x128xf32>
    %55 = arith.divf %53, %54 : vector<8x128xf32>
    %56 = vector.extract_strided_slice %43 {offsets = [0, 256], sizes = [8, 128], strides = [1, 1]} : vector<8x512xf32> to vector<8x128xf32>
    %57 = math.tanh %56 : vector<8x128xf32>
    %58 = vector.extract_strided_slice %43 {offsets = [0, 384], sizes = [8, 128], strides = [1, 1]} : vector<8x512xf32> to vector<8x128xf32>
    %59 = arith.negf %58 : vector<8x128xf32>
    %60 = math.exp %59 : vector<8x128xf32>
    %cst_28 = arith.constant 1.000000e+00 : f32
    %61 = vector.broadcast %cst_28 : f32 to vector<8x128xf32>
    %62 = arith.addf %61, %60 : vector<8x128xf32>
    %63 = arith.divf %61, %62 : vector<8x128xf32>
    %64 = arith.mulf %55, %37 : vector<8x128xf32>
    %65 = arith.mulf %49, %57 : vector<8x128xf32>
    %66 = arith.addf %64, %65 : vector<8x128xf32>
    %67 = math.tanh %66 : vector<8x128xf32>
    %68 = arith.mulf %63, %67 : vector<8x128xf32>
    %c8 = arith.constant 8 : index
    %c0_29 = arith.constant 0 : index
    %69 = vector.load %arg10[%c8, %c0_29] : memref<80x128xf32, #tpu.memory_space<vmem>>, vector<8x128xf32>
    tpu.vector_store %arg10[%c8, %c0_29], %68 {strides = array<i32>} : memref<80x128xf32, #tpu.memory_space<vmem>>, vector<8x128xf32>,
    %c64 = arith.constant 64 : index
    %c0_30 = arith.constant 0 : index
    %70 = vector.load %arg11[%c64, %c0_30] : memref<80x128xf32, #tpu.memory_space<vmem>>, vector<8x128xf32>
    tpu.vector_store %arg11[%c64, %c0_30], %68 {strides = array<i32>} : memref<80x128xf32, #tpu.memory_space<vmem>>, vector<8x128xf32>,
    %c8_31 = arith.constant 8 : index
    %c0_32 = arith.constant 0 : index
    %71 = vector.load %arg9[%c8_31, %c0_32] : memref<64x512xf32, #tpu.memory_space<vmem>>, vector<8x512xf32>
    %c48 = arith.constant 48 : index
    %c0_33 = arith.constant 0 : index
    %72 = vector.load %arg9[%c48, %c0_33] : memref<64x512xf32, #tpu.memory_space<vmem>>, vector<8x512xf32>
    %73 = arith.select %35, %71, %72 : vector<8x512xi1>, vector<8x512xf32>
    %c0_34 = arith.constant 0 : index
    %c0_35 = arith.constant 0 : index
    %74 = vector.load %arg2[%c0_34, %c0_35] : memref<128x512xf32, #tpu.memory_space<vmem>>, vector<128x512xf32>
    %cst_36 = arith.constant dense<0.000000e+00> : vector<8x512xf32>
    %75 = tpu.matmul %68, %74, %cst_36 {dimension_numbers = #tpu.dot_dimension_numbers<[1], [0], [0], [1], [0, 0, 1, 1], [], []>} : vector<8x128xf32>, vector<128x512xf32>, vector<8x512xf32> -> vector<8x512xf32>
    %76 = arith.addf %73, %75 : vector<8x512xf32>
    %77 = vector.extract_strided_slice %76 {offsets = [0, 0], sizes = [8, 128], strides = [1, 1]} : vector<8x512xf32> to vector<8x128xf32>
    %78 = arith.negf %77 : vector<8x128xf32>
    %79 = math.exp %78 : vector<8x128xf32>
    %cst_37 = arith.constant 1.000000e+00 : f32
    %80 = vector.broadcast %cst_37 : f32 to vector<8x128xf32>
    %81 = arith.addf %80, %79 : vector<8x128xf32>
    %82 = arith.divf %80, %81 : vector<8x128xf32>
    %83 = vector.extract_strided_slice %76 {offsets = [0, 128], sizes = [8, 128], strides = [1, 1]} : vector<8x512xf32> to vector<8x128xf32>
    %84 = arith.negf %83 : vector<8x128xf32>
    %85 = math.exp %84 : vector<8x128xf32>
    %cst_38 = arith.constant 1.000000e+00 : f32
    %86 = vector.broadcast %cst_38 : f32 to vector<8x128xf32>
    %87 = arith.addf %86, %85 : vector<8x128xf32>
    %88 = arith.divf %86, %87 : vector<8x128xf32>
    %89 = vector.extract_strided_slice %76 {offsets = [0, 256], sizes = [8, 128], strides = [1, 1]} : vector<8x512xf32> to vector<8x128xf32>
    %90 = math.tanh %89 : vector<8x128xf32>
    %91 = vector.extract_strided_slice %76 {offsets = [0, 384], sizes = [8, 128], strides = [1, 1]} : vector<8x512xf32> to vector<8x128xf32>
    %92 = arith.negf %91 : vector<8x128xf32>
    %93 = math.exp %92 : vector<8x128xf32>
    %cst_39 = arith.constant 1.000000e+00 : f32
    %94 = vector.broadcast %cst_39 : f32 to vector<8x128xf32>
    %95 = arith.addf %94, %93 : vector<8x128xf32>
    %96 = arith.divf %94, %95 : vector<8x128xf32>
    %97 = arith.mulf %88, %66 : vector<8x128xf32>
    %98 = arith.mulf %82, %90 : vector<8x128xf32>
    %99 = arith.addf %97, %98 : vector<8x128xf32>
    %100 = math.tanh %99 : vector<8x128xf32>
    %101 = arith.mulf %96, %100 : vector<8x128xf32>
    %c16 = arith.constant 16 : index
    %c0_40 = arith.constant 0 : index
    %102 = vector.load %arg10[%c16, %c0_40] : memref<80x128xf32, #tpu.memory_space<vmem>>, vector<8x128xf32>
    tpu.vector_store %arg10[%c16, %c0_40], %101 {strides = array<i32>} : memref<80x128xf32, #tpu.memory_space<vmem>>, vector<8x128xf32>,
    %c56_41 = arith.constant 56 : index
    %c0_42 = arith.constant 0 : index
    %103 = vector.load %arg11[%c56_41, %c0_42] : memref<80x128xf32, #tpu.memory_space<vmem>>, vector<8x128xf32>
    tpu.vector_store %arg11[%c56_41, %c0_42], %101 {strides = array<i32>} : memref<80x128xf32, #tpu.memory_space<vmem>>, vector<8x128xf32>,
    %c16_43 = arith.constant 16 : index
    %c0_44 = arith.constant 0 : index
    %104 = vector.load %arg9[%c16_43, %c0_44] : memref<64x512xf32, #tpu.memory_space<vmem>>, vector<8x512xf32>
    %c40 = arith.constant 40 : index
    %c0_45 = arith.constant 0 : index
    %105 = vector.load %arg9[%c40, %c0_45] : memref<64x512xf32, #tpu.memory_space<vmem>>, vector<8x512xf32>
    %106 = arith.select %35, %104, %105 : vector<8x512xi1>, vector<8x512xf32>
    %c0_46 = arith.constant 0 : index
    %c0_47 = arith.constant 0 : index
    %107 = vector.load %arg2[%c0_46, %c0_47] : memref<128x512xf32, #tpu.memory_space<vmem>>, vector<128x512xf32>
    %cst_48 = arith.constant dense<0.000000e+00> : vector<8x512xf32>
    %108 = tpu.matmul %101, %107, %cst_48 {dimension_numbers = #tpu.dot_dimension_numbers<[1], [0], [0], [1], [0, 0, 1, 1], [], []>} : vector<8x128xf32>, vector<128x512xf32>, vector<8x512xf32> -> vector<8x512xf32>
    %109 = arith.addf %106, %108 : vector<8x512xf32>
    %110 = vector.extract_strided_slice %109 {offsets = [0, 0], sizes = [8, 128], strides = [1, 1]} : vector<8x512xf32> to vector<8x128xf32>
    %111 = arith.negf %110 : vector<8x128xf32>
    %112 = math.exp %111 : vector<8x128xf32>
    %cst_49 = arith.constant 1.000000e+00 : f32
    %113 = vector.broadcast %cst_49 : f32 to vector<8x128xf32>
    %114 = arith.addf %113, %112 : vector<8x128xf32>
    %115 = arith.divf %113, %114 : vector<8x128xf32>
    %116 = vector.extract_strided_slice %109 {offsets = [0, 128], sizes = [8, 128], strides = [1, 1]} : vector<8x512xf32> to vector<8x128xf32>
    %117 = arith.negf %116 : vector<8x128xf32>
    %118 = math.exp %117 : vector<8x128xf32>
    %cst_50 = arith.constant 1.000000e+00 : f32
    %119 = vector.broadcast %cst_50 : f32 to vector<8x128xf32>
    %120 = arith.addf %119, %118 : vector<8x128xf32>
    %121 = arith.divf %119, %120 : vector<8x128xf32>
    %122 = vector.extract_strided_slice %109 {offsets = [0, 256], sizes = [8, 128], strides = [1, 1]} : vector<8x512xf32> to vector<8x128xf32>
    %123 = math.tanh %122 : vector<8x128xf32>
    %124 = vector.extract_strided_slice %109 {offsets = [0, 384], sizes = [8, 128], strides = [1, 1]} : vector<8x512xf32> to vector<8x128xf32>
    %125 = arith.negf %124 : vector<8x128xf32>
    %126 = math.exp %125 : vector<8x128xf32>
    %cst_51 = arith.constant 1.000000e+00 : f32
    %127 = vector.broadcast %cst_51 : f32 to vector<8x128xf32>
    %128 = arith.addf %127, %126 : vector<8x128xf32>
    %129 = arith.divf %127, %128 : vector<8x128xf32>
    %130 = arith.mulf %121, %99 : vector<8x128xf32>
    %131 = arith.mulf %115, %123 : vector<8x128xf32>
    %132 = arith.addf %130, %131 : vector<8x128xf32>
    %133 = math.tanh %132 : vector<8x128xf32>
    %134 = arith.mulf %129, %133 : vector<8x128xf32>
    %c24 = arith.constant 24 : index
    %c0_52 = arith.constant 0 : index
    %135 = vector.load %arg10[%c24, %c0_52] : memref<80x128xf32, #tpu.memory_space<vmem>>, vector<8x128xf32>
    tpu.vector_store %arg10[%c24, %c0_52], %134 {strides = array<i32>} : memref<80x128xf32, #tpu.memory_space<vmem>>, vector<8x128xf32>,
    %c48_53 = arith.constant 48 : index
    %c0_54 = arith.constant 0 : index
    %136 = vector.load %arg11[%c48_53, %c0_54] : memref<80x128xf32, #tpu.memory_space<vmem>>, vector<8x128xf32>
    tpu.vector_store %arg11[%c48_53, %c0_54], %134 {strides = array<i32>} : memref<80x128xf32, #tpu.memory_space<vmem>>, vector<8x128xf32>,
    %c24_55 = arith.constant 24 : index
    %c0_56 = arith.constant 0 : index
    %137 = vector.load %arg9[%c24_55, %c0_56] : memref<64x512xf32, #tpu.memory_space<vmem>>, vector<8x512xf32>
    %c32 = arith.constant 32 : index
    %c0_57 = arith.constant 0 : index
    %138 = vector.load %arg9[%c32, %c0_57] : memref<64x512xf32, #tpu.memory_space<vmem>>, vector<8x512xf32>
    %139 = arith.select %35, %137, %138 : vector<8x512xi1>, vector<8x512xf32>
    %c0_58 = arith.constant 0 : index
    %c0_59 = arith.constant 0 : index
    %140 = vector.load %arg2[%c0_58, %c0_59] : memref<128x512xf32, #tpu.memory_space<vmem>>, vector<128x512xf32>
    %cst_60 = arith.constant dense<0.000000e+00> : vector<8x512xf32>
    %141 = tpu.matmul %134, %140, %cst_60 {dimension_numbers = #tpu.dot_dimension_numbers<[1], [0], [0], [1], [0, 0, 1, 1], [], []>} : vector<8x128xf32>, vector<128x512xf32>, vector<8x512xf32> -> vector<8x512xf32>
    %142 = arith.addf %139, %141 : vector<8x512xf32>
    %143 = vector.extract_strided_slice %142 {offsets = [0, 0], sizes = [8, 128], strides = [1, 1]} : vector<8x512xf32> to vector<8x128xf32>
    %144 = arith.negf %143 : vector<8x128xf32>
    %145 = math.exp %144 : vector<8x128xf32>
    %cst_61 = arith.constant 1.000000e+00 : f32
    %146 = vector.broadcast %cst_61 : f32 to vector<8x128xf32>
    %147 = arith.addf %146, %145 : vector<8x128xf32>
    %148 = arith.divf %146, %147 : vector<8x128xf32>
    %149 = vector.extract_strided_slice %142 {offsets = [0, 128], sizes = [8, 128], strides = [1, 1]} : vector<8x512xf32> to vector<8x128xf32>
    %150 = arith.negf %149 : vector<8x128xf32>
    %151 = math.exp %150 : vector<8x128xf32>
    %cst_62 = arith.constant 1.000000e+00 : f32
    %152 = vector.broadcast %cst_62 : f32 to vector<8x128xf32>
    %153 = arith.addf %152, %151 : vector<8x128xf32>
    %154 = arith.divf %152, %153 : vector<8x128xf32>
    %155 = vector.extract_strided_slice %142 {offsets = [0, 256], sizes = [8, 128], strides = [1, 1]} : vector<8x512xf32> to vector<8x128xf32>
    %156 = math.tanh %155 : vector<8x128xf32>
    %157 = vector.extract_strided_slice %142 {offsets = [0, 384], sizes = [8, 128], strides = [1, 1]} : vector<8x512xf32> to vector<8x128xf32>
    %158 = arith.negf %157 : vector<8x128xf32>
    %159 = math.exp %158 : vector<8x128xf32>
    %cst_63 = arith.constant 1.000000e+00 : f32
    %160 = vector.broadcast %cst_63 : f32 to vector<8x128xf32>
    %161 = arith.addf %160, %159 : vector<8x128xf32>
    %162 = arith.divf %160, %161 : vector<8x128xf32>
    %163 = arith.mulf %154, %132 : vector<8x128xf32>
    %164 = arith.mulf %148, %156 : vector<8x128xf32>
    %165 = arith.addf %163, %164 : vector<8x128xf32>
    %166 = math.tanh %165 : vector<8x128xf32>
    %167 = arith.mulf %162, %166 : vector<8x128xf32>
    %c32_64 = arith.constant 32 : index
    %c0_65 = arith.constant 0 : index
    %168 = vector.load %arg10[%c32_64, %c0_65] : memref<80x128xf32, #tpu.memory_space<vmem>>, vector<8x128xf32>
    tpu.vector_store %arg10[%c32_64, %c0_65], %167 {strides = array<i32>} : memref<80x128xf32, #tpu.memory_space<vmem>>, vector<8x128xf32>,
    %c40_66 = arith.constant 40 : index
    %c0_67 = arith.constant 0 : index
    %169 = vector.load %arg11[%c40_66, %c0_67] : memref<80x128xf32, #tpu.memory_space<vmem>>, vector<8x128xf32>
    tpu.vector_store %arg11[%c40_66, %c0_67], %167 {strides = array<i32>} : memref<80x128xf32, #tpu.memory_space<vmem>>, vector<8x128xf32>,
    %c32_68 = arith.constant 32 : index
    %c0_69 = arith.constant 0 : index
    %170 = vector.load %arg9[%c32_68, %c0_69] : memref<64x512xf32, #tpu.memory_space<vmem>>, vector<8x512xf32>
    %c24_70 = arith.constant 24 : index
    %c0_71 = arith.constant 0 : index
    %171 = vector.load %arg9[%c24_70, %c0_71] : memref<64x512xf32, #tpu.memory_space<vmem>>, vector<8x512xf32>
    %172 = arith.select %35, %170, %171 : vector<8x512xi1>, vector<8x512xf32>
    %c0_72 = arith.constant 0 : index
    %c0_73 = arith.constant 0 : index
    %173 = vector.load %arg2[%c0_72, %c0_73] : memref<128x512xf32, #tpu.memory_space<vmem>>, vector<128x512xf32>
    %cst_74 = arith.constant dense<0.000000e+00> : vector<8x512xf32>
    %174 = tpu.matmul %167, %173, %cst_74 {dimension_numbers = #tpu.dot_dimension_numbers<[1], [0], [0], [1], [0, 0, 1, 1], [], []>} : vector<8x128xf32>, vector<128x512xf32>, vector<8x512xf32> -> vector<8x512xf32>
    %175 = arith.addf %172, %174 : vector<8x512xf32>
    %176 = vector.extract_strided_slice %175 {offsets = [0, 0], sizes = [8, 128], strides = [1, 1]} : vector<8x512xf32> to vector<8x128xf32>
    %177 = arith.negf %176 : vector<8x128xf32>
    %178 = math.exp %177 : vector<8x128xf32>
    %cst_75 = arith.constant 1.000000e+00 : f32
    %179 = vector.broadcast %cst_75 : f32 to vector<8x128xf32>
    %180 = arith.addf %179, %178 : vector<8x128xf32>
    %181 = arith.divf %179, %180 : vector<8x128xf32>
    %182 = vector.extract_strided_slice %175 {offsets = [0, 128], sizes = [8, 128], strides = [1, 1]} : vector<8x512xf32> to vector<8x128xf32>
    %183 = arith.negf %182 : vector<8x128xf32>
    %184 = math.exp %183 : vector<8x128xf32>
    %cst_76 = arith.constant 1.000000e+00 : f32
    %185 = vector.broadcast %cst_76 : f32 to vector<8x128xf32>
    %186 = arith.addf %185, %184 : vector<8x128xf32>
    %187 = arith.divf %185, %186 : vector<8x128xf32>
    %188 = vector.extract_strided_slice %175 {offsets = [0, 256], sizes = [8, 128], strides = [1, 1]} : vector<8x512xf32> to vector<8x128xf32>
    %189 = math.tanh %188 : vector<8x128xf32>
    %190 = vector.extract_strided_slice %175 {offsets = [0, 384], sizes = [8, 128], strides = [1, 1]} : vector<8x512xf32> to vector<8x128xf32>
    %191 = arith.negf %190 : vector<8x128xf32>
    %192 = math.exp %191 : vector<8x128xf32>
    %cst_77 = arith.constant 1.000000e+00 : f32
    %193 = vector.broadcast %cst_77 : f32 to vector<8x128xf32>
    %194 = arith.addf %193, %192 : vector<8x128xf32>
    %195 = arith.divf %193, %194 : vector<8x128xf32>
    %196 = arith.mulf %187, %165 : vector<8x128xf32>
    %197 = arith.mulf %181, %189 : vector<8x128xf32>
    %198 = arith.addf %196, %197 : vector<8x128xf32>
    %199 = math.tanh %198 : vector<8x128xf32>
    %200 = arith.mulf %195, %199 : vector<8x128xf32>
    %c40_78 = arith.constant 40 : index
    %c0_79 = arith.constant 0 : index
    %201 = vector.load %arg10[%c40_78, %c0_79] : memref<80x128xf32, #tpu.memory_space<vmem>>, vector<8x128xf32>
    tpu.vector_store %arg10[%c40_78, %c0_79], %200 {strides = array<i32>} : memref<80x128xf32, #tpu.memory_space<vmem>>, vector<8x128xf32>,
    %c32_80 = arith.constant 32 : index
    %c0_81 = arith.constant 0 : index
    %202 = vector.load %arg11[%c32_80, %c0_81] : memref<80x128xf32, #tpu.memory_space<vmem>>, vector<8x128xf32>
    tpu.vector_store %arg11[%c32_80, %c0_81], %200 {strides = array<i32>} : memref<80x128xf32, #tpu.memory_space<vmem>>, vector<8x128xf32>,
    %c40_82 = arith.constant 40 : index
    %c0_83 = arith.constant 0 : index
    %203 = vector.load %arg9[%c40_82, %c0_83] : memref<64x512xf32, #tpu.memory_space<vmem>>, vector<8x512xf32>
    %c16_84 = arith.constant 16 : index
    %c0_85 = arith.constant 0 : index
    %204 = vector.load %arg9[%c16_84, %c0_85] : memref<64x512xf32, #tpu.memory_space<vmem>>, vector<8x512xf32>
    %205 = arith.select %35, %203, %204 : vector<8x512xi1>, vector<8x512xf32>
    %c0_86 = arith.constant 0 : index
    %c0_87 = arith.constant 0 : index
    %206 = vector.load %arg2[%c0_86, %c0_87] : memref<128x512xf32, #tpu.memory_space<vmem>>, vector<128x512xf32>
    %cst_88 = arith.constant dense<0.000000e+00> : vector<8x512xf32>
    %207 = tpu.matmul %200, %206, %cst_88 {dimension_numbers = #tpu.dot_dimension_numbers<[1], [0], [0], [1], [0, 0, 1, 1], [], []>} : vector<8x128xf32>, vector<128x512xf32>, vector<8x512xf32> -> vector<8x512xf32>
    %208 = arith.addf %205, %207 : vector<8x512xf32>
    %209 = vector.extract_strided_slice %208 {offsets = [0, 0], sizes = [8, 128], strides = [1, 1]} : vector<8x512xf32> to vector<8x128xf32>
    %210 = arith.negf %209 : vector<8x128xf32>
    %211 = math.exp %210 : vector<8x128xf32>
    %cst_89 = arith.constant 1.000000e+00 : f32
    %212 = vector.broadcast %cst_89 : f32 to vector<8x128xf32>
    %213 = arith.addf %212, %211 : vector<8x128xf32>
    %214 = arith.divf %212, %213 : vector<8x128xf32>
    %215 = vector.extract_strided_slice %208 {offsets = [0, 128], sizes = [8, 128], strides = [1, 1]} : vector<8x512xf32> to vector<8x128xf32>
    %216 = arith.negf %215 : vector<8x128xf32>
    %217 = math.exp %216 : vector<8x128xf32>
    %cst_90 = arith.constant 1.000000e+00 : f32
    %218 = vector.broadcast %cst_90 : f32 to vector<8x128xf32>
    %219 = arith.addf %218, %217 : vector<8x128xf32>
    %220 = arith.divf %218, %219 : vector<8x128xf32>
    %221 = vector.extract_strided_slice %208 {offsets = [0, 256], sizes = [8, 128], strides = [1, 1]} : vector<8x512xf32> to vector<8x128xf32>
    %222 = math.tanh %221 : vector<8x128xf32>
    %223 = vector.extract_strided_slice %208 {offsets = [0, 384], sizes = [8, 128], strides = [1, 1]} : vector<8x512xf32> to vector<8x128xf32>
    %224 = arith.negf %223 : vector<8x128xf32>
    %225 = math.exp %224 : vector<8x128xf32>
    %cst_91 = arith.constant 1.000000e+00 : f32
    %226 = vector.broadcast %cst_91 : f32 to vector<8x128xf32>
    %227 = arith.addf %226, %225 : vector<8x128xf32>
    %228 = arith.divf %226, %227 : vector<8x128xf32>
    %229 = arith.mulf %220, %198 : vector<8x128xf32>
    %230 = arith.mulf %214, %222 : vector<8x128xf32>
    %231 = arith.addf %229, %230 : vector<8x128xf32>
    %232 = math.tanh %231 : vector<8x128xf32>
    %233 = arith.mulf %228, %232 : vector<8x128xf32>
    %c48_92 = arith.constant 48 : index
    %c0_93 = arith.constant 0 : index
    %234 = vector.load %arg10[%c48_92, %c0_93] : memref<80x128xf32, #tpu.memory_space<vmem>>, vector<8x128xf32>
    tpu.vector_store %arg10[%c48_92, %c0_93], %233 {strides = array<i32>} : memref<80x128xf32, #tpu.memory_space<vmem>>, vector<8x128xf32>,
    %c24_94 = arith.constant 24 : index
    %c0_95 = arith.constant 0 : index
    %235 = vector.load %arg11[%c24_94, %c0_95] : memref<80x128xf32, #tpu.memory_space<vmem>>, vector<8x128xf32>
    tpu.vector_store %arg11[%c24_94, %c0_95], %233 {strides = array<i32>} : memref<80x128xf32, #tpu.memory_space<vmem>>, vector<8x128xf32>,
    %c48_96 = arith.constant 48 : index
    %c0_97 = arith.constant 0 : index
    %236 = vector.load %arg9[%c48_96, %c0_97] : memref<64x512xf32, #tpu.memory_space<vmem>>, vector<8x512xf32>
    %c8_98 = arith.constant 8 : index
    %c0_99 = arith.constant 0 : index
    %237 = vector.load %arg9[%c8_98, %c0_99] : memref<64x512xf32, #tpu.memory_space<vmem>>, vector<8x512xf32>
    %238 = arith.select %35, %236, %237 : vector<8x512xi1>, vector<8x512xf32>
    %c0_100 = arith.constant 0 : index
    %c0_101 = arith.constant 0 : index
    %239 = vector.load %arg2[%c0_100, %c0_101] : memref<128x512xf32, #tpu.memory_space<vmem>>, vector<128x512xf32>
    %cst_102 = arith.constant dense<0.000000e+00> : vector<8x512xf32>
    %240 = tpu.matmul %233, %239, %cst_102 {dimension_numbers = #tpu.dot_dimension_numbers<[1], [0], [0], [1], [0, 0, 1, 1], [], []>} : vector<8x128xf32>, vector<128x512xf32>, vector<8x512xf32> -> vector<8x512xf32>
    %241 = arith.addf %238, %240 : vector<8x512xf32>
    %242 = vector.extract_strided_slice %241 {offsets = [0, 0], sizes = [8, 128], strides = [1, 1]} : vector<8x512xf32> to vector<8x128xf32>
    %243 = arith.negf %242 : vector<8x128xf32>
    %244 = math.exp %243 : vector<8x128xf32>
    %cst_103 = arith.constant 1.000000e+00 : f32
    %245 = vector.broadcast %cst_103 : f32 to vector<8x128xf32>
    %246 = arith.addf %245, %244 : vector<8x128xf32>
    %247 = arith.divf %245, %246 : vector<8x128xf32>
    %248 = vector.extract_strided_slice %241 {offsets = [0, 128], sizes = [8, 128], strides = [1, 1]} : vector<8x512xf32> to vector<8x128xf32>
    %249 = arith.negf %248 : vector<8x128xf32>
    %250 = math.exp %249 : vector<8x128xf32>
    %cst_104 = arith.constant 1.000000e+00 : f32
    %251 = vector.broadcast %cst_104 : f32 to vector<8x128xf32>
    %252 = arith.addf %251, %250 : vector<8x128xf32>
    %253 = arith.divf %251, %252 : vector<8x128xf32>
    %254 = vector.extract_strided_slice %241 {offsets = [0, 256], sizes = [8, 128], strides = [1, 1]} : vector<8x512xf32> to vector<8x128xf32>
    %255 = math.tanh %254 : vector<8x128xf32>
    %256 = vector.extract_strided_slice %241 {offsets = [0, 384], sizes = [8, 128], strides = [1, 1]} : vector<8x512xf32> to vector<8x128xf32>
    %257 = arith.negf %256 : vector<8x128xf32>
    %258 = math.exp %257 : vector<8x128xf32>
    %cst_105 = arith.constant 1.000000e+00 : f32
    %259 = vector.broadcast %cst_105 : f32 to vector<8x128xf32>
    %260 = arith.addf %259, %258 : vector<8x128xf32>
    %261 = arith.divf %259, %260 : vector<8x128xf32>
    %262 = arith.mulf %253, %231 : vector<8x128xf32>
    %263 = arith.mulf %247, %255 : vector<8x128xf32>
    %264 = arith.addf %262, %263 : vector<8x128xf32>
    %265 = math.tanh %264 : vector<8x128xf32>
    %266 = arith.mulf %261, %265 : vector<8x128xf32>
    %c56_106 = arith.constant 56 : index
    %c0_107 = arith.constant 0 : index
    %267 = vector.load %arg10[%c56_106, %c0_107] : memref<80x128xf32, #tpu.memory_space<vmem>>, vector<8x128xf32>
    tpu.vector_store %arg10[%c56_106, %c0_107], %266 {strides = array<i32>} : memref<80x128xf32, #tpu.memory_space<vmem>>, vector<8x128xf32>,
    %c16_108 = arith.constant 16 : index
    %c0_109 = arith.constant 0 : index
    %268 = vector.load %arg11[%c16_108, %c0_109] : memref<80x128xf32, #tpu.memory_space<vmem>>, vector<8x128xf32>
    tpu.vector_store %arg11[%c16_108, %c0_109], %266 {strides = array<i32>} : memref<80x128xf32, #tpu.memory_space<vmem>>, vector<8x128xf32>,
    %c56_110 = arith.constant 56 : index
    %c0_111 = arith.constant 0 : index
    %269 = vector.load %arg9[%c56_110, %c0_111] : memref<64x512xf32, #tpu.memory_space<vmem>>, vector<8x512xf32>
    %c0_112 = arith.constant 0 : index
    %c0_113 = arith.constant 0 : index
    %270 = vector.load %arg9[%c0_112, %c0_113] : memref<64x512xf32, #tpu.memory_space<vmem>>, vector<8x512xf32>
    %271 = arith.select %35, %269, %270 : vector<8x512xi1>, vector<8x512xf32>
    %c0_114 = arith.constant 0 : index
    %c0_115 = arith.constant 0 : index
    %272 = vector.load %arg2[%c0_114, %c0_115] : memref<128x512xf32, #tpu.memory_space<vmem>>, vector<128x512xf32>
    %cst_116 = arith.constant dense<0.000000e+00> : vector<8x512xf32>
    %273 = tpu.matmul %266, %272, %cst_116 {dimension_numbers = #tpu.dot_dimension_numbers<[1], [0], [0], [1], [0, 0, 1, 1], [], []>} : vector<8x128xf32>, vector<128x512xf32>, vector<8x512xf32> -> vector<8x512xf32>
    %274 = arith.addf %271, %273 : vector<8x512xf32>
    %275 = vector.extract_strided_slice %274 {offsets = [0, 0], sizes = [8, 128], strides = [1, 1]} : vector<8x512xf32> to vector<8x128xf32>
    %276 = arith.negf %275 : vector<8x128xf32>
    %277 = math.exp %276 : vector<8x128xf32>
    %cst_117 = arith.constant 1.000000e+00 : f32
    %278 = vector.broadcast %cst_117 : f32 to vector<8x128xf32>
    %279 = arith.addf %278, %277 : vector<8x128xf32>
    %280 = arith.divf %278, %279 : vector<8x128xf32>
    %281 = vector.extract_strided_slice %274 {offsets = [0, 128], sizes = [8, 128], strides = [1, 1]} : vector<8x512xf32> to vector<8x128xf32>
    %282 = arith.negf %281 : vector<8x128xf32>
    %283 = math.exp %282 : vector<8x128xf32>
    %cst_118 = arith.constant 1.000000e+00 : f32
    %284 = vector.broadcast %cst_118 : f32 to vector<8x128xf32>
    %285 = arith.addf %284, %283 : vector<8x128xf32>
    %286 = arith.divf %284, %285 : vector<8x128xf32>
    %287 = vector.extract_strided_slice %274 {offsets = [0, 256], sizes = [8, 128], strides = [1, 1]} : vector<8x512xf32> to vector<8x128xf32>
    %288 = math.tanh %287 : vector<8x128xf32>
    %289 = vector.extract_strided_slice %274 {offsets = [0, 384], sizes = [8, 128], strides = [1, 1]} : vector<8x512xf32> to vector<8x128xf32>
    %290 = arith.negf %289 : vector<8x128xf32>
    %291 = math.exp %290 : vector<8x128xf32>
    %cst_119 = arith.constant 1.000000e+00 : f32
    %292 = vector.broadcast %cst_119 : f32 to vector<8x128xf32>
    %293 = arith.addf %292, %291 : vector<8x128xf32>
    %294 = arith.divf %292, %293 : vector<8x128xf32>
    %295 = arith.mulf %286, %264 : vector<8x128xf32>
    %296 = arith.mulf %280, %288 : vector<8x128xf32>
    %297 = arith.addf %295, %296 : vector<8x128xf32>
    %298 = math.tanh %297 : vector<8x128xf32>
    %299 = arith.mulf %294, %298 : vector<8x128xf32>
    %c64_120 = arith.constant 64 : index
    %c0_121 = arith.constant 0 : index
    %300 = vector.load %arg10[%c64_120, %c0_121] : memref<80x128xf32, #tpu.memory_space<vmem>>, vector<8x128xf32>
    tpu.vector_store %arg10[%c64_120, %c0_121], %299 {strides = array<i32>} : memref<80x128xf32, #tpu.memory_space<vmem>>, vector<8x128xf32>,
    %c8_122 = arith.constant 8 : index
    %c0_123 = arith.constant 0 : index
    %301 = vector.load %arg11[%c8_122, %c0_123] : memref<80x128xf32, #tpu.memory_space<vmem>>, vector<8x128xf32>
    tpu.vector_store %arg11[%c8_122, %c0_123], %299 {strides = array<i32>} : memref<80x128xf32, #tpu.memory_space<vmem>>, vector<8x128xf32>,
    %302 = tpu.iota {dimensions = array<i32: 1>} : vector<80x128xi32>
    %c32_i32_124 = arith.constant 32 : i32
    %303 = vector.broadcast %c32_i32_124 : i32 to vector<80x128xi32>
    %304 = arith.cmpi slt, %302, %303 : vector<80x128xi32>
    %c0_125 = arith.constant 0 : index
    %c0_126 = arith.constant 0 : index
    %305 = vector.load %arg10[%c0_125, %c0_126] : memref<80x128xf32, #tpu.memory_space<vmem>>, vector<80x128xf32>
    %c0_127 = arith.constant 0 : index
    %c0_128 = arith.constant 0 : index
    %306 = vector.load %arg11[%c0_127, %c0_128] : memref<80x128xf32, #tpu.memory_space<vmem>>, vector<80x128xf32>
    %307 = arith.select %304, %305, %306 : vector<80x128xi1>, vector<80x128xf32>
    %308 = vector.extract_strided_slice %307 {offsets = [0, 0], sizes = [64, 128], strides = [1, 1]} : vector<80x128xf32> to vector<64x128xf32>
    %309 = vector.extract_strided_slice %307 {offsets = [8, 0], sizes = [64, 128], strides = [1, 1]} : vector<80x128xf32> to vector<64x128xf32>
    %310 = vector.extract_strided_slice %307 {offsets = [16, 0], sizes = [64, 128], strides = [1, 1]} : vector<80x128xf32> to vector<64x128xf32>
    %c0_129 = arith.constant 0 : index
    %c0_130 = arith.constant 0 : index
    %c0_131 = arith.constant 0 : index
    %311 = vector.load %arg4[%c0_129, %c0_130, %c0_131] : memref<3x128x128xf32, #tpu.memory_space<vmem>>, vector<1x128x128xf32>
    %312 = vector.shape_cast %311 : vector<1x128x128xf32> to vector<128x128xf32>
    %cst_132 = arith.constant dense<0.000000e+00> : vector<64x128xf32>
    %313 = tpu.matmul %308, %312, %cst_132 {dimension_numbers = #tpu.dot_dimension_numbers<[1], [0], [0], [1], [0, 0, 1, 1], [], []>} : vector<64x128xf32>, vector<128x128xf32>, vector<64x128xf32> -> vector<64x128xf32>
    %c1 = arith.constant 1 : index
    %c0_133 = arith.constant 0 : index
    %c0_134 = arith.constant 0 : index
    %314 = vector.load %arg4[%c1, %c0_133, %c0_134] : memref<3x128x128xf32, #tpu.memory_space<vmem>>, vector<1x128x128xf32>
    %315 = vector.shape_cast %314 : vector<1x128x128xf32> to vector<128x128xf32>
    %cst_135 = arith.constant dense<0.000000e+00> : vector<64x128xf32>
    %316 = tpu.matmul %309, %315, %cst_135 {dimension_numbers = #tpu.dot_dimension_numbers<[1], [0], [0], [1], [0, 0, 1, 1], [], []>} : vector<64x128xf32>, vector<128x128xf32>, vector<64x128xf32> -> vector<64x128xf32>
    %317 = arith.addf %313, %316 : vector<64x128xf32>
    %c2 = arith.constant 2 : index
    %c0_136 = arith.constant 0 : index
    %c0_137 = arith.constant 0 : index
    %318 = vector.load %arg4[%c2, %c0_136, %c0_137] : memref<3x128x128xf32, #tpu.memory_space<vmem>>, vector<1x128x128xf32>
    %319 = vector.shape_cast %318 : vector<1x128x128xf32> to vector<128x128xf32>
    %cst_138 = arith.constant dense<0.000000e+00> : vector<64x128xf32>
    %320 = tpu.matmul %310, %319, %cst_138 {dimension_numbers = #tpu.dot_dimension_numbers<[1], [0], [0], [1], [0, 0, 1, 1], [], []>} : vector<64x128xf32>, vector<128x128xf32>, vector<64x128xf32> -> vector<64x128xf32>
    %321 = arith.addf %317, %320 : vector<64x128xf32>
    %c0_139 = arith.constant 0 : index
    %c0_140 = arith.constant 0 : index
    %322 = vector.load %arg5[%c0_139, %c0_140] : memref<1x128xf32, #tpu.memory_space<vmem>>, vector<1x128xf32>
    %323 = vector.broadcast %322 : vector<1x128xf32> to vector<64x128xf32>
    %324 = arith.addf %321, %323 : vector<64x128xf32>
    %cst_141 = arith.constant 0.000000e+00 : f32
    %325 = vector.broadcast %cst_141 : f32 to vector<64x128xf32>
    %326 = arith.maximumf %324, %325 : vector<64x128xf32>
    %327 = vector.extract_strided_slice %326 {offsets = [0, 0], sizes = [32, 128], strides = [1, 1]} : vector<64x128xf32> to vector<32x128xf32>
    %328 = vector.extract_strided_slice %326 {offsets = [32, 0], sizes = [32, 128], strides = [1, 1]} : vector<64x128xf32> to vector<32x128xf32>
    %329 = arith.maximumf %327, %328 : vector<32x128xf32>
    %330 = vector.extract_strided_slice %329 {offsets = [0, 0], sizes = [16, 128], strides = [1, 1]} : vector<32x128xf32> to vector<16x128xf32>
    %331 = vector.extract_strided_slice %329 {offsets = [16, 0], sizes = [16, 128], strides = [1, 1]} : vector<32x128xf32> to vector<16x128xf32>
    %332 = arith.maximumf %330, %331 : vector<16x128xf32>
    %333 = vector.extract_strided_slice %332 {offsets = [0, 0], sizes = [8, 128], strides = [1, 1]} : vector<16x128xf32> to vector<8x128xf32>
    %334 = vector.extract_strided_slice %332 {offsets = [8, 0], sizes = [8, 128], strides = [1, 1]} : vector<16x128xf32> to vector<8x128xf32>
    %335 = arith.maximumf %333, %334 : vector<8x128xf32>
    %c0_142 = arith.constant 0 : index
    %c0_143 = arith.constant 0 : index
    %336 = vector.load %arg6[%c0_142, %c0_143] : memref<128x128xf32, #tpu.memory_space<vmem>>, vector<128x128xf32>
    %cst_144 = arith.constant dense<0.000000e+00> : vector<8x128xf32>
    %337 = tpu.matmul %335, %336, %cst_144 {dimension_numbers = #tpu.dot_dimension_numbers<[1], [0], [0], [1], [0, 0, 1, 1], [], []>} : vector<8x128xf32>, vector<128x128xf32>, vector<8x128xf32> -> vector<8x128xf32>
    %c0_145 = arith.constant 0 : index
    %c0_146 = arith.constant 0 : index
    %338 = vector.load %arg7[%c0_145, %c0_146] : memref<1x128xf32, #tpu.memory_space<vmem>>, vector<1x128xf32>
    %339 = vector.broadcast %338 : vector<1x128xf32> to vector<8x128xf32>
    %340 = arith.addf %337, %339 : vector<8x128xf32>
    %c0_147 = arith.constant 0 : index
    %c0_148 = arith.constant 0 : index
    %341 = vector.load %arg8[%c0_147, %c0_148] : memref<8x128xf32, #tpu.memory_space<vmem>>, vector<8x128xf32>
    tpu.vector_store %arg8[%c0_147, %c0_148], %340 {strides = array<i32>} : memref<8x128xf32, #tpu.memory_space<vmem>>, vector<8x128xf32>,
    return
  }
}

</mosaic_0001>

<bundles_post_ra>
// kernel: lstm_cnn_forward.1
= control target key start
LH: loop header
LB: loop body
LE: loop exit
PB: predicated region body
PF: predicated region fallthrough
CT: control target
= control target key end

     0   :  { %13 = vsyncpa [#allocation6], 0  ;;  %s4643_s0 = inlined_call_operand.vmem [shape: s32[64,1], index: 0, kind: input, shape index: {}]   ;;  %s4644_s1 = inlined_call_operand.hbm [shape: f32[128,512], index: 1, kind: input, shape index: {}]   ;;  %s4645_s2 = inlined_call_operand.hbm [shape: f32[128,512], index: 2, kind: input, shape index: {}]   ;;  %s4646_s3 = inlined_call_operand.vmem [shape: f32[1,512], index: 3, kind: input, shape index: {}]   ;;  %s4647_s4 = inlined_call_operand.hbm [shape: f32[3,128,128], index: 4, kind: input, shape index: {}]   ;;  %s4648_s5 = inlined_call_operand.vmem [shape: f32[1,128], index: 5, kind: input, shape index: {}]   ;;  %s4649_s6 = inlined_call_operand.hbm [shape: f32[128,128], index: 6, kind: input, shape index: {}]   ;;  %s4650_s7 = inlined_call_operand.vmem [shape: f32[1,128], index: 7, kind: input, shape index: {}]   ;;  %s4651_s8 = inlined_call_operand.vmem [shape: f32[8,128], index: 8, kind: output, shape index: {}]  }
   0x1   :  { %14 = vsyncpa [#allocation8], 0 }
   0x2   :  { %15 = vsyncpa [#allocation11], 0  ;;  %s35_s29 = sshll.u32 %s4645_s2, 4  ;;  %s2908_s30 = smov [#allocation7]   ;;  %s36_s29 = int_to_ptr.hbm [resolvable:$true] %s35_s29 }
   0x3   :  { %s37_s9 = sshll.u32 %s2908_s30, 4  ;;  %s22_s12 = sshll.u32 %s4644_s1, 4  ;;  %s38_s9 = int_to_ptr.vmem [resolvable:$true] %s37_s9  ;;  %s23_s12 = int_to_ptr.hbm [resolvable:$true] %s22_s12 }
   0x4   :  { %s2909_s13 = smov 512   ;;  %s2910_s14 = smov 32  }
   0x5   :  { %43 = dma.hbm_to_vmem [thread:$0]  %s36_s29, 8192, %s38_s9, [#allocation8], %s2909_s13, %s2909_s13, %s2910_s14  }
   0x6   :  { %s2911_s15 = smov [#allocation5]   ;;  %s50_s19 = sshll.u32 %s4647_s4, 4  ;;  %s51_s19 = int_to_ptr.hbm [resolvable:$true] %s50_s19 }
   0x7   :  { %s24_s16 = sshll.u32 %s2911_s15, 4  ;;  %s2912_s2 = smov [#allocation9]   ;;  %s25_s16 = int_to_ptr.vmem [resolvable:$true] %s24_s16 }
   0x8   :  { %30 = dma.hbm_to_vmem [thread:$0]  %s23_s12, 8192, %s25_s16, [#allocation6], %s2909_s13, %s2909_s13, %s2910_s14  }
   0x9   :  { %s52_s20 = sshll.u32 %s2912_s2, 4  ;;  %s65_s1 = sshll.u32 %s4649_s6, 4  ;;  %s53_s20 = int_to_ptr.vmem [resolvable:$true] %s52_s20  ;;  %s66_s1 = int_to_ptr.hbm [resolvable:$true] %s65_s1 }
   0xa   :  { %s2913_s23 = smov 128   ;;  %s2914_s24 = smov 8  }
   0xb   :  { %58 = dma.hbm_to_vmem [thread:$0]  %s51_s19, 6144, %s53_s20, [#allocation8], %s2913_s23, %s2913_s23, %s2914_s24  }
   0xc   :  { %s2915_s25 = smov [#allocation10]  }
   0xd   :  { %s67_s26 = sshll.u32 %s2915_s25, 4  ;;  %s68_s26 = int_to_ptr.vmem [resolvable:$true] %s67_s26 }
   0xe   :  { %73 = dma.hbm_to_vmem [thread:$0]  %s66_s1, 2048, %s68_s26, [#allocation11], %s2913_s23, %s2913_s23, %s2914_s24  }
   0xf   :  { %2902 = dma.done.wait [#allocation6], 8192  }
  0x10   :  { %2903 = vsyncadd [#allocation6], 4294959104 }
  0x11   :  { %2904 = dma.done.wait [#allocation8], 14336  }
  0x12   :  { %2905 = vsyncadd [#allocation8], 4294952960 }
  0x13   :  { %2906 = dma.done.wait [#allocation11], 2048  }
  0x14   :  { %2907 = vsyncadd [#allocation11], 4294965248  ;;  %v2916_v0 = vmov 0   ;;  %v98_v1 = vld [vmem:[%s4643_s0 + $0x30] sm:$0xff]  ;;  %v96_v2 = vld [vmem:[%s4643_s0 + $0x20] sm:$0xff]  ;;  %v100_v60 = vlaneseq }
  0x15   :  { %2674 = vset.pattern.permute.xlu1 %v2916_v0  ;;  %2673 = vset.pattern.permute.xlu0 %v2916_v0  ;;  %v92_v3 = vld [vmem:[%s4643_s0] sm:$0xff]  ;;  %v211_v5 = vld [vmem:[#allocation5 + $0x1e8] sm:$0xff]  ;;  %v212_v6 = vld [vmem:[#allocation5 + $0x1f0] sm:$0xff] }
  0x16   :  { %2675 = vset.pattern.permute.xlu2 %v2916_v0  ;;  %121 = vperm.xlu1 %2674, %v98_v1   ;;  %v210_v4 = vld [vmem:[#allocation5 + $0x1e0] sm:$0xff]  ;;  %v207_v8 = vld [vmem:[#allocation5 + $0x1c8] sm:$0xff]  ;;  %v208_v9 = vld [vmem:[#allocation5 + $0x1d0] sm:$0xff]  ;;  %v3008_v1 = vand.u32 127, %v100_v60 }
  0x17   :  { %115 = vperm.xlu0 %2673, %v96_v2   ;;  %103 = vperm.xlu2 %2675, %v92_v3   ;;  %v206_v7 = vld [vmem:[#allocation5 + $0x1c0] sm:$0xff]  ;;  %v203_v11 = vld [vmem:[#allocation5 + $0x1a8] sm:$0xff]  ;;  %v99_v12 = vld [vmem:[%s4643_s0 + $0x38] sm:$0xff] }
  0x18   :  { %224 = vmatpush.msra.mxu0 %v210_v4  ;;  %2630 = vmatpush.msra.mxu3 %v210_v4  ;;  %v202_v10 = vld [vmem:[#allocation5 + $0x1a0] sm:$0xff]  ;;  %v97_v13 = vld [vmem:[%s4643_s0 + $0x28] sm:$0xff]  ;;  %v204_v14 = vld [vmem:[#allocation5 + $0x1b0] sm:$0xff]  ;;  %4700 = vst [vmem:[#allocation15_spill] sm:$0xff] %v3008_v1  ;;  %vm475_vm8 = vcmp.lt.s32.totalorder %v3008_v1, 32 }
  0x19   :  { %265 = vmatpush.msra.mxu1 %v211_v5  ;;  %306 = vmatpush.msra.mxu2 %v212_v6  ;;  %v198_v15 = vld [vmem:[#allocation5 + $0x180] sm:$0xff]  ;;  %v93_v16 = vld [vmem:[%s4643_s0 + $0x8] sm:$0xff]  ;;  %v200_v18 = vld [vmem:[#allocation5 + $0x190] sm:$0xff] }
  0x1a   :  { %225 = vmatpush.msra.mxu0 %v206_v7  ;;  %2631 = vmatpush.msra.mxu3 %v206_v7  ;;  %v199_v17 = vld [vmem:[#allocation5 + $0x188] sm:$0xff]  ;;  %v194_v19 = vld [vmem:[#allocation5 + $0x160] sm:$0xff]  ;;  %v196_v21 = vld [vmem:[#allocation5 + $0x170] sm:$0xff]  ;;  %v2917_v7 = vmov 1.0  }
  0x1b   :  { %266 = vmatpush.msra.mxu1 %v207_v8  ;;  %307 = vmatpush.msra.mxu2 %v208_v9  ;;  %v195_v20 = vld [vmem:[#allocation5 + $0x168] sm:$0xff]  ;;  %v190_v22 = vld [vmem:[#allocation5 + $0x140] sm:$0xff]  ;;  %v192_v24 = vld [vmem:[#allocation5 + $0x150] sm:$0xff] }
  0x1c   :  { %226 = vmatpush.msra.mxu0 %v202_v10  ;;  %2632 = vmatpush.msra.mxu3 %v202_v10  ;;  %v191_v23 = vld [vmem:[#allocation5 + $0x148] sm:$0xff]  ;;  %v95_v25 = vld [vmem:[%s4643_s0 + $0x18] sm:$0xff]  ;;  %v94_v26 = vld [vmem:[%s4643_s0 + $0x10] sm:$0xff] }
  0x1d   :  { %267 = vmatpush.msra.mxu1 %v203_v11  ;;  %308 = vmatpush.msra.mxu2 %v204_v14  ;;  %v186_v27 = vld [vmem:[#allocation5 + $0x120] sm:$0xff]  ;;  %v187_v28 = vld [vmem:[#allocation5 + $0x128] sm:$0xff]  ;;  %v188_v29 = vld [vmem:[#allocation5 + $0x130] sm:$0xff] }
  0x1e   :  { %124 = vperm.xlu1 %2674, %v99_v12   ;;  %227 = vmatpush.msra.mxu0 %v198_v15  ;;  %v182_v30 = vld [vmem:[#allocation5 + $0x100] sm:$0xff]  ;;  %v183_v31 = vld [vmem:[#allocation5 + $0x108] sm:$0xff]  ;;  %v184_v32 = vld [vmem:[#allocation5 + $0x110] sm:$0xff] }
  0x1f   :  { %118 = vperm.xlu0 %2673, %v97_v13   ;;  %106 = vperm.xlu2 %2675, %v93_v16   ;;  %v178_v33 = vld [vmem:[#allocation5 + $0xe0] sm:$0xff]  ;;  %v179_v34 = vld [vmem:[#allocation5 + $0xe8] sm:$0xff]  ;;  %v180_v35 = vld [vmem:[#allocation5 + $0xf0] sm:$0xff] }
  0x20   :  { %2633 = vmatpush.msra.mxu3 %v198_v15  ;;  %268 = vmatpush.msra.mxu1 %v199_v17  ;;  %v174_v36 = vld [vmem:[#allocation5 + $0xc0] sm:$0xff]  ;;  %v175_v37 = vld [vmem:[#allocation5 + $0xc8] sm:$0xff]  ;;  %v176_v38 = vld [vmem:[#allocation5 + $0xd0] sm:$0xff] }
  0x21   :  { %309 = vmatpush.msra.mxu2 %v200_v18  ;;  %228 = vmatpush.msra.mxu0 %v194_v19  ;;  %v170_v39 = vld [vmem:[#allocation5 + $0xa0] sm:$0xff]  ;;  %v171_v40 = vld [vmem:[#allocation5 + $0xa8] sm:$0xff]  ;;  %v172_v41 = vld [vmem:[#allocation5 + $0xb0] sm:$0xff] }
  0x22   :  { %2634 = vmatpush.msra.mxu3 %v194_v19  ;;  %269 = vmatpush.msra.mxu1 %v195_v20  ;;  %v166_v42 = vld [vmem:[#allocation5 + $0x80] sm:$0xff]  ;;  %v167_v43 = vld [vmem:[#allocation5 + $0x88] sm:$0xff]  ;;  %v168_v44 = vld [vmem:[#allocation5 + $0x90] sm:$0xff] }
  0x23   :  { %310 = vmatpush.msra.mxu2 %v196_v21  ;;  %229 = vmatpush.msra.mxu0 %v190_v22  ;;  %v162_v45 = vld [vmem:[#allocation5 + $0x60] sm:$0xff]  ;;  %v163_v46 = vld [vmem:[#allocation5 + $0x68] sm:$0xff]  ;;  %v164_v47 = vld [vmem:[#allocation5 + $0x70] sm:$0xff] }
  0x24   :  { %2635 = vmatpush.msra.mxu3 %v190_v22  ;;  %270 = vmatpush.msra.mxu1 %v191_v23  ;;  %v158_v48 = vld [vmem:[#allocation5 + $0x40] sm:$0xff]  ;;  %v159_v49 = vld [vmem:[#allocation5 + $0x48] sm:$0xff]  ;;  %v160_v50 = vld [vmem:[#allocation5 + $0x50] sm:$0xff] }
  0x25   :  { %311 = vmatpush.msra.mxu2 %v192_v24  ;;  %230 = vmatpush.msra.mxu0 %v186_v27  ;;  %v154_v51 = vld [vmem:[#allocation5 + $0x20] sm:$0xff]  ;;  %v155_v52 = vld [vmem:[#allocation5 + $0x28] sm:$0xff]  ;;  %v156_v53 = vld [vmem:[#allocation5 + $0x30] sm:$0xff] }
  0x26   :  { %112 = vperm.xlu1 %2674, %v95_v25   ;;  %2636 = vmatpush.msra.mxu3 %v186_v27  ;;  %v150_v54 = vld [vmem:[#allocation5] sm:$0xff]  ;;  %v151_v55 = vld [vmem:[#allocation5 + $0x8] sm:$0xff]  ;;  %v152_v56 = vld [vmem:[#allocation5 + $0x10] sm:$0xff] }
  0x27   :  { %109 = vperm.xlu0 %2673, %v94_v26   ;;  %271 = vmatpush.msra.mxu1 %v187_v28  ;;  %v213_v57 = vld [vmem:[#allocation5 + $0x1f8] sm:$0xff]  ;;  %v3000_v59 = vld [vmem:[#allocation7 + $0x1e0] sm:$0xff]  ;;  %v3069_v24 = vld [vmem:[#allocation7 + $0x1e8] sm:$0xff] }
  0x28   :  { %312 = vmatpush.msra.mxu2 %v188_v29  ;;  %231 = vmatpush.msra.mxu0 %v182_v30  ;;  %v209_v58 = vld [vmem:[#allocation5 + $0x1d8] sm:$0xff]  ;;  %v3003_v61 = vld [vmem:[#allocation7 + $0x1c0] sm:$0xff]  ;;  %v3074_v26 = vld [vmem:[#allocation7 + $0x1c8] sm:$0xff] }
  0x29   :  { %2637 = vmatpush.msra.mxu3 %v182_v30  ;;  %272 = vmatpush.msra.mxu1 %v183_v31  ;;  %v205_v62 = vld [vmem:[#allocation5 + $0x1b8] sm:$0xff]  ;;  %v3005_v63 = vld [vmem:[#allocation7 + $0x1a0] sm:$0xff]  ;;  %v3200_v60 = vld [vmem:[#allocation7 + $0xd0] sm:$0xff] }
  0x2a   :  { %313 = vmatpush.msra.mxu2 %v184_v32  ;;  %232 = vmatpush.msra.mxu0 %v178_v33  ;;  %v201_v0 = vld [vmem:[#allocation5 + $0x198] sm:$0xff]  ;;  %v3011_v2 = vld [vmem:[#allocation7 + $0x180] sm:$0xff] }
  0x2b   :  { %2638 = vmatpush.msra.mxu3 %v178_v33  ;;  %273 = vmatpush.msra.mxu1 %v179_v34  ;;  %v197_v4 = vld [vmem:[#allocation5 + $0x178] sm:$0xff]  ;;  %v3018_v6 = vld [vmem:[#allocation7 + $0x160] sm:$0xff] }
  0x2c   :  { %314 = vmatpush.msra.mxu2 %v180_v35  ;;  %233 = vmatpush.msra.mxu0 %v174_v36  ;;  %v193_v5 = vld [vmem:[#allocation5 + $0x158] sm:$0xff]  ;;  %v3032_v9 = vld [vmem:[#allocation7 + $0x140] sm:$0xff]  ;;  %v3098_v35 = vld [vmem:[#allocation7 + $0x1f0] sm:$0xff] }
  0x2d   :  { %2639 = vmatpush.msra.mxu3 %v174_v36  ;;  %274 = vmatpush.msra.mxu1 %v175_v37  ;;  %v189_v8 = vld [vmem:[#allocation5 + $0x138] sm:$0xff]  ;;  %v3035_v11 = vld [vmem:[#allocation7 + $0x120] sm:$0xff]  ;;  %v3100_v36 = vld [vmem:[#allocation7 + $0x1a8] sm:$0xff] }
  0x2e   :  { %315 = vmatpush.msra.mxu2 %v176_v38  ;;  %234 = vmatpush.msra.mxu0 %v170_v39  ;;  %v185_v10 = vld [vmem:[#allocation5 + $0x118] sm:$0xff]  ;;  %v3043_v14 = vld [vmem:[#allocation7 + $0x100] sm:$0xff]  ;;  %v3104_v37 = vld [vmem:[#allocation7 + $0x1d0] sm:$0xff] }
  0x2f   :  { %2640 = vmatpush.msra.mxu3 %v170_v39  ;;  %275 = vmatpush.msra.mxu1 %v171_v40  ;;  %v181_v13 = vld [vmem:[#allocation5 + $0xf8] sm:$0xff]  ;;  %v3057_v16 = vld [vmem:[#allocation7 + $0xe0] sm:$0xff]  ;;  %v3110_v39 = vld [vmem:[#allocation7 + $0x188] sm:$0xff] }
  0x30   :  { %316 = vmatpush.msra.mxu2 %v172_v41  ;;  %235 = vmatpush.msra.mxu0 %v166_v42  ;;  %v177_v15 = vld [vmem:[#allocation5 + $0xd8] sm:$0xff]  ;;  %v3060_v18 = vld [vmem:[#allocation7 + $0xc0] sm:$0xff]  ;;  %v3114_v40 = vld [vmem:[#allocation7 + $0x1b0] sm:$0xff] }
  0x31   :  { %2641 = vmatpush.msra.mxu3 %v166_v42  ;;  %276 = vmatpush.msra.mxu1 %v167_v43  ;;  %v173_v17 = vld [vmem:[#allocation5 + $0xb8] sm:$0xff]  ;;  %v3063_v20 = vld [vmem:[#allocation7 + $0xa0] sm:$0xff]  ;;  %v3120_v42 = vld [vmem:[#allocation7 + $0x190] sm:$0xff] }
  0x32   :  { %317 = vmatpush.msra.mxu2 %v168_v44  ;;  %236 = vmatpush.msra.mxu0 %v162_v45  ;;  %v169_v19 = vld [vmem:[#allocation5 + $0x98] sm:$0xff]  ;;  %v3066_v22 = vld [vmem:[#allocation7 + $0x80] sm:$0xff]  ;;  %v3134_v44 = vld [vmem:[#allocation7 + $0x168] sm:$0xff] }
  0x33   :  { %2642 = vmatpush.msra.mxu3 %v162_v45  ;;  %277 = vmatpush.msra.mxu1 %v163_v46  ;;  %v165_v21 = vld [vmem:[#allocation5 + $0x78] sm:$0xff]  ;;  %v3071_v25 = vld [vmem:[#allocation7 + $0x60] sm:$0xff]  ;;  %v3136_v45 = vld [vmem:[#allocation7 + $0x170] sm:$0xff] }
  0x34   :  { %318 = vmatpush.msra.mxu2 %v164_v47  ;;  %237 = vmatpush.msra.mxu0 %v158_v48  ;;  %v161_v23 = vld [vmem:[#allocation5 + $0x58] sm:$0xff]  ;;  %v3077_v28 = vld [vmem:[#allocation7 + $0x40] sm:$0xff]  ;;  %v3142_v47 = vld [vmem:[#allocation7 + $0x148] sm:$0xff] }
  0x35   :  { %2643 = vmatpush.msra.mxu3 %v158_v48  ;;  %278 = vmatpush.msra.mxu1 %v159_v49  ;;  %v157_v27 = vld [vmem:[#allocation5 + $0x38] sm:$0xff]  ;;  %v3085_v31 = vld [vmem:[#allocation7 + $0x20] sm:$0xff]  ;;  %v3144_v48 = vld [vmem:[#allocation7 + $0x150] sm:$0xff] }
  0x36   :  { %319 = vmatpush.msra.mxu2 %v160_v50  ;;  %238 = vmatpush.msra.mxu0 %v154_v51  ;;  %v153_v30 = vld [vmem:[#allocation5 + $0x18] sm:$0xff]  ;;  %v3094_v33 = vld [vmem:[#allocation7] sm:$0xff]  ;;  %v3149_v50 = vld [vmem:[#allocation7 + $0x128] sm:$0xff] }
  0x37   :  { %2644 = vmatpush.msra.mxu3 %v154_v51  ;;  %279 = vmatpush.msra.mxu1 %v155_v52  ;;  %v3096_v34 = vld [vmem:[#allocation7 + $0x1f8] sm:$0xff]  ;;  %v3154_v51 = vld [vmem:[#allocation7 + $0x130] sm:$0xff] }
  0x38   :  { %320 = vmatpush.msra.mxu2 %v156_v53  ;;  %239 = vmatpush.msra.mxu0 %v150_v54  ;;  %v3106_v38 = vld [vmem:[#allocation7 + $0x1d8] sm:$0xff]  ;;  %v3166_v53 = vld [vmem:[#allocation7 + $0x108] sm:$0xff] }
  0x39   :  { %2645 = vmatpush.msra.mxu3 %v150_v54  ;;  %280 = vmatpush.msra.mxu1 %v151_v55  ;;  %v3132_v43 = vld [vmem:[#allocation7 + $0x1b8] sm:$0xff]  ;;  %v3168_v54 = vld [vmem:[#allocation7 + $0x110] sm:$0xff] }
  0x3a   :  { %321 = vmatpush.msra.mxu2 %v152_v56  ;;  %555 = vmatpush.msrb.mxu0 %v3000_v59  ;;  %v3146_v49 = vld [vmem:[#allocation7 + $0x198] sm:$0xff]  ;;  %v3189_v56 = vld [vmem:[#allocation7 + $0xe8] sm:$0xff] }
  0x3b   :  { %347 = vmatpush.msrb.mxu3 %v213_v57  ;;  %575 = vmatpush.msrb.mxu1 %v3069_v24  ;;  %v3187_v55 = vld [vmem:[#allocation7 + $0x178] sm:$0xff]  ;;  %v3191_v57 = vld [vmem:[#allocation7 + $0xf0] sm:$0xff] }
  0x3c   :  { %556 = vmatpush.msrb.mxu0 %v3003_v61  ;;  %595 = vmatpush.msrb.mxu2 %v3098_v35 }
  0x3d   :  { %348 = vmatpush.msrb.mxu3 %v209_v58  ;;  %576 = vmatpush.msrb.mxu1 %v3074_v26  ;;  %v3195_v58 = vld [vmem:[#allocation7 + $0x158] sm:$0xff] }
  0x3e   :  { %557 = vmatpush.msrb.mxu0 %v3005_v63  ;;  %596 = vmatpush.msrb.mxu2 %v3104_v37 }
  0x3f   :  { %349 = vmatpush.msrb.mxu3 %v205_v62  ;;  %577 = vmatpush.msrb.mxu1 %v3100_v36  ;;  %v3215_v62 = vld [vmem:[#allocation7 + $0xa8] sm:$0xff] }
  0x40   :  { %558 = vmatpush.msrb.mxu0 %v3011_v2  ;;  %597 = vmatpush.msrb.mxu2 %v3114_v40 }
  0x41   :  { %350 = vmatpush.msrb.mxu3 %v201_v0  ;;  %578 = vmatpush.msrb.mxu1 %v3110_v39  ;;  %v3236_v0 = vld [vmem:[#allocation7 + $0x88] sm:$0xff] }
  0x42   :  { %559 = vmatpush.msrb.mxu0 %v3018_v6  ;;  %598 = vmatpush.msrb.mxu2 %v3120_v42 }
  0x43   :  { %351 = vmatpush.msrb.mxu3 %v197_v4  ;;  %579 = vmatpush.msrb.mxu1 %v3134_v44  ;;  %v3240_v4 = vld [vmem:[#allocation7 + $0x138] sm:$0xff] }
  0x44   :  { %560 = vmatpush.msrb.mxu0 %v3032_v9  ;;  %599 = vmatpush.msrb.mxu2 %v3136_v45 }
  0x45   :  { %352 = vmatpush.msrb.mxu3 %v193_v5  ;;  %580 = vmatpush.msrb.mxu1 %v3142_v47  ;;  %v3244_v5 = vld [vmem:[#allocation7 + $0x118] sm:$0xff] }
  0x46   :  { %561 = vmatpush.msrb.mxu0 %v3035_v11  ;;  %600 = vmatpush.msrb.mxu2 %v3144_v48 }
  0x47   :  { %353 = vmatpush.msrb.mxu3 %v189_v8  ;;  %581 = vmatpush.msrb.mxu1 %v3149_v50  ;;  %v3249_v8 = vld [vmem:[#allocation7 + $0x70] sm:$0xff] }
  0x48   :  { %562 = vmatpush.msrb.mxu0 %v3043_v14  ;;  %601 = vmatpush.msrb.mxu2 %v3154_v51 }
  0x49   :  { %354 = vmatpush.msrb.mxu3 %v185_v10  ;;  %582 = vmatpush.msrb.mxu1 %v3166_v53  ;;  %v3260_v10 = vld [vmem:[#allocation7 + $0x50] sm:$0xff] }
  0x4a   :  { %563 = vmatpush.msrb.mxu0 %v3057_v16  ;;  %602 = vmatpush.msrb.mxu2 %v3168_v54 }
  0x4b   :  { %355 = vmatpush.msrb.mxu3 %v181_v13  ;;  %583 = vmatpush.msrb.mxu1 %v3189_v56  ;;  %v3276_v13 = vld [vmem:[#allocation7 + $0x28] sm:$0xff] }
  0x4c   :  { %564 = vmatpush.msrb.mxu0 %v3060_v18  ;;  %603 = vmatpush.msrb.mxu2 %v3191_v57 }
  0x4d   :  { %356 = vmatpush.msrb.mxu3 %v177_v15  ;;  %v3280_v15 = vld [vmem:[#allocation7 + $0xf8] sm:$0xff] }
  0x4e   :  { %565 = vmatpush.msrb.mxu0 %v3063_v20  ;;  %604 = vmatpush.msrb.mxu2 %v3200_v60 }
  0x4f   :  { %357 = vmatpush.msrb.mxu3 %v173_v17  ;;  %v3288_v17 = vld [vmem:[#allocation7 + $0x10] sm:$0xff] }
  0x50   :  { %566 = vmatpush.msrb.mxu0 %v3066_v22 }
  0x51   :  { %358 = vmatpush.msrb.mxu3 %v169_v19  ;;  %v3315_v19 = vld [vmem:[#allocation7 + $0x98] sm:$0xff] }
  0x52   :  { %567 = vmatpush.msrb.mxu0 %v3071_v25 }
  0x53   :  { %359 = vmatpush.msrb.mxu3 %v165_v21  ;;  %v3356_v21 = vld [vmem:[#allocation7 + $0x38] sm:$0xff] }
  0x54   :  { %568 = vmatpush.msrb.mxu0 %v3077_v28 }
  0x55   :  { %360 = vmatpush.msrb.mxu3 %v161_v23  ;;  %v3462_v23 = vld [vmem:[%s4646_s3] sm:$0xf] }
  0x56   :  { %569 = vmatpush.msrb.mxu0 %v3085_v31 }
  0x57   :  { %361 = vmatpush.msrb.mxu3 %v157_v27 }
  0x58   :  { %570 = vmatpush.msrb.mxu0 %v3094_v33 }
  0x59   :  { %362 = vmatpush.msrb.mxu3 %v153_v30 }
  0x71   :  { %v3013_v3 = vpop.permute.xlu2 %103 }
  0x72   :  { %vm126_vm0 = vcmp.eq.s32.totalorder %v3008_v1, %v3013_v3  ;;  %v3284_v3 = vld [vmem:[#allocation7 + $0xd8] sm:$0xff] }
  0x73   :  { %2574 = vmatmul.msk.f32.vlgmr.msra.gmra.mxu0 %vm126_vm0, %v2917_v7  ;;  %2582 = vmatmul.msk.f32.vlgmr.msra.gmra.mxu1 %vm126_vm0, %v2917_v7 }
  0x74   :  { %2590 = vmatmul.msk.f32.vlgmr.msra.gmra.mxu2 %vm126_vm0, %v2917_v7  ;;  %780 = vmatpush.msra.mxu0 %v3000_v59  ;;  %v3198_v59 = vld [vmem:[#allocation7 + $0xc8] sm:$0xff] }
  0x75   :  { %584 = vmatpush.msrb.mxu1 %v3198_v59 }
  0x76   :  { %781 = vmatpush.msra.mxu0 %v3003_v61 }
  0x77   :  { %585 = vmatpush.msrb.mxu1 %v3215_v62 }
  0x78   :  { %782 = vmatpush.msra.mxu0 %v3005_v63  ;;  %v3217_v63 = vld [vmem:[#allocation7 + $0xb0] sm:$0xff] }
  0x79   :  { %v3038_v12 = vpop.permute.xlu2 %106  ;;  %605 = vmatpush.msrb.mxu2 %v3217_v63  ;;  %586 = vmatpush.msrb.mxu1 %v3236_v0 }
  0x7a   :  { %vm127_vm1 = vcmp.eq.s32.totalorder %v3008_v1, %v3038_v12  ;;  %783 = vmatpush.msra.mxu0 %v3011_v2  ;;  %v3238_v2 = vld [vmem:[#allocation7 + $0x90] sm:$0xff]  ;;  %v3331_v12 = vld [vmem:[#allocation7 + $0x78] sm:$0xff] }
  0x7b   :  { %2575 = vmatmul.msk.f32.gmra.mxu0 %vm127_vm1, %v2917_v7  ;;  %2583 = vmatmul.msk.f32.gmra.mxu1 %vm127_vm1, %v2917_v7 }
  0x7c   :  { %2591 = vmatmul.msk.f32.gmra.mxu2 %vm127_vm1, %v2917_v7  ;;  %784 = vmatpush.msra.mxu0 %v3018_v6  ;;  %v3247_v6 = vld [vmem:[#allocation7 + $0x68] sm:$0xff] }
  0x7d   :  { %606 = vmatpush.msrb.mxu2 %v3238_v2  ;;  %587 = vmatpush.msrb.mxu1 %v3247_v6 }
  0x7e   :  { %785 = vmatpush.msra.mxu0 %v3032_v9  ;;  %v3258_v9 = vld [vmem:[#allocation7 + $0x48] sm:$0xff] }
  0x7f   :  { %607 = vmatpush.msrb.mxu2 %v3249_v8  ;;  %588 = vmatpush.msrb.mxu1 %v3258_v9 }
  0x80   :  { %786 = vmatpush.msra.mxu0 %v3035_v11  ;;  %v4652_v11 = vmov 0.0  }
  0x81   :  { %608 = vmatpush.msrb.mxu2 %v3260_v10  ;;  %589 = vmatpush.msrb.mxu1 %v3276_v13 }
  0x82   :  { %787 = vmatpush.msra.mxu0 %v3043_v14  ;;  %v3278_v14 = vld [vmem:[#allocation7 + $0x30] sm:$0xff] }
  0x83   :  { %609 = vmatpush.msrb.mxu2 %v3278_v14 }
  0x84   :  { %788 = vmatpush.msra.mxu0 %v3057_v16  ;;  %v3286_v16 = vld [vmem:[#allocation7 + $0x8] sm:$0xff] }
  0x85   :  { %590 = vmatpush.msrb.mxu1 %v3286_v16  ;;  %610 = vmatpush.msrb.mxu2 %v3288_v17 }
  0x86   :  { %789 = vmatpush.msra.mxu0 %v3060_v18  ;;  %v3304_v18 = vld [vmem:[#allocation7 + $0xb8] sm:$0xff] }
  0x87   :  { %800 = vmatpush.msra.mxu1 %v3069_v24  ;;  %820 = vmatpush.msra.mxu2 %v3098_v35 }
  0x88   :  { %v3087_v32 = vpop.permute.xlu1 %121  ;;  %790 = vmatpush.msra.mxu0 %v3063_v20  ;;  %v3342_v20 = vld [vmem:[#allocation7 + $0x58] sm:$0xff] }
  0x89   :  { %v3080_v29 = vpop.permute.xlu0 %115  ;;  %vm132_vm4 = vcmp.eq.s32.totalorder %v3008_v1, %v3087_v32  ;;  %801 = vmatpush.msra.mxu1 %v3074_v26  ;;  %821 = vmatpush.msra.mxu2 %v3104_v37 }
  0x8a   :  { %vm130_vm2 = vcmp.eq.s32.totalorder %v3008_v1, %v3080_v29  ;;  %791 = vmatpush.msra.mxu0 %v3066_v22  ;;  %v3367_v22 = vld [vmem:[#allocation7 + $0x18] sm:$0xff] }
  0x8b   :  { %2578 = vmatmul.msk.f32.vlgmr.msra.gmra.mxu3 %vm130_vm2, %v2917_v7  ;;  %802 = vmatpush.msra.mxu1 %v3100_v36 }
  0x8c   :  { %615 = vmatpush.msra.mxu3 %v3096_v34  ;;  %792 = vmatpush.msra.mxu0 %v3071_v25 }
  0x8d   :  { %822 = vmatpush.msra.mxu2 %v3114_v40  ;;  %803 = vmatpush.msra.mxu1 %v3110_v39 }
  0x8e   :  { %616 = vmatpush.msra.mxu3 %v3106_v38  ;;  %793 = vmatpush.msra.mxu0 %v3077_v28 }
  0x8f   :  { %823 = vmatpush.msra.mxu2 %v3120_v42  ;;  %804 = vmatpush.msra.mxu1 %v3134_v44 }
  0x90   :  { %v3138_v46 = vpop.permute.xlu1 %124  ;;  %617 = vmatpush.msra.mxu3 %v3132_v43  ;;  %794 = vmatpush.msra.mxu0 %v3085_v31 }
  0x91   :  { %v3118_v41 = vpop.permute.xlu0 %118  ;;  %vm133_vm6 = vcmp.eq.s32.totalorder %v3008_v1, %v3138_v46  ;;  %824 = vmatpush.msra.mxu2 %v3136_v45  ;;  %805 = vmatpush.msra.mxu1 %v3142_v47  ;;  %v424_v46 = vadd.s32 128, %v3008_v1 }
  0x92   :  { %vm131_vm3 = vcmp.eq.s32.totalorder %v3008_v1, %v3118_v41  ;;  %618 = vmatpush.msra.mxu3 %v3146_v49  ;;  %795 = vmatpush.msra.mxu0 %v3094_v33 }
  0x93   :  { %2579 = vmatmul.msk.f32.gmra.mxu3 %vm131_vm3, %v2917_v7  ;;  %825 = vmatpush.msra.mxu2 %v3144_v48 }
  0x94   :  { %619 = vmatpush.msra.mxu3 %v3187_v55  ;;  %806 = vmatpush.msra.mxu1 %v3149_v50 }
  0x95   :  { %826 = vmatpush.msra.mxu2 %v3154_v51 }
  0x96   :  { %620 = vmatpush.msra.mxu3 %v3195_v58  ;;  %807 = vmatpush.msra.mxu1 %v3166_v53 }
  0x97   :  { %827 = vmatpush.msra.mxu2 %v3168_v54 }
  0x98   :  { %v3203_v61 = vpop.permute.xlu1 %112  ;;  %621 = vmatpush.msra.mxu3 %v3240_v4  ;;  %808 = vmatpush.msra.mxu1 %v3189_v56 }
  0x99   :  { %v3160_v52 = vpop.permute.xlu0 %109  ;;  %vm129_vm7 = vcmp.eq.s32.totalorder %v3008_v1, %v3203_v61  ;;  %828 = vmatpush.msra.mxu2 %v3191_v57 }
  0x9a   :  { %vm128_vm5 = vcmp.eq.s32.totalorder %v3008_v1, %v3160_v52  ;;  %622 = vmatpush.msra.mxu3 %v3244_v5  ;;  %809 = vmatpush.msra.mxu1 %v3198_v59 }
  0x9b   :  { %2576 = vmatmul.msk.f32.gmra.mxu0 %vm128_vm5, %v2917_v7  ;;  %2580 = vmatmul.msk.f32.gmra.mxu3 %vm132_vm4, %v2917_v7 }
  0x9c   :  { %2584 = vmatmul.msk.f32.gmra.mxu1 %vm128_vm5, %v2917_v7  ;;  %2592 = vmatmul.msk.f32.gmra.mxu2 %vm128_vm5, %v2917_v7 }
  0x9d   :  { %623 = vmatpush.msra.mxu3 %v3280_v15  ;;  %829 = vmatpush.msra.mxu2 %v3200_v60 }
  0x9e   :  { %810 = vmatpush.msra.mxu1 %v3215_v62 }
  0x9f   :  { %624 = vmatpush.msra.mxu3 %v3284_v3  ;;  %830 = vmatpush.msra.mxu2 %v3217_v63 }
  0xa0   :  { %811 = vmatpush.msra.mxu1 %v3236_v0 }
  0xa1   :  { %625 = vmatpush.msra.mxu3 %v3304_v18  ;;  %831 = vmatpush.msra.mxu2 %v3238_v2 }
  0xa2   :  { %812 = vmatpush.msra.mxu1 %v3247_v6 }
  0xa3   :  { %2577 = vmatmul.msk.f32.gmra.mxu0 %vm129_vm7, %v2917_v7  ;;  %2581 = vmatmul.msk.f32.gmra.mxu3 %vm133_vm6, %v2917_v7 }
  0xa4   :  { %2585 = vmatmul.msk.f32.gmra.mxu1 %vm129_vm7, %v2917_v7  ;;  %2593 = vmatmul.msk.f32.gmra.mxu2 %vm129_vm7, %v2917_v7 }
  0xa5   :  { %626 = vmatpush.msra.mxu3 %v3315_v19  ;;  %832 = vmatpush.msra.mxu2 %v3249_v8 }
  0xa6   :  { %813 = vmatpush.msra.mxu1 %v3258_v9 }
  0xa7   :  { %627 = vmatpush.msra.mxu3 %v3331_v12  ;;  %833 = vmatpush.msra.mxu2 %v3260_v10 }
  0xa8   :  { %814 = vmatpush.msra.mxu1 %v3276_v13 }
  0xa9   :  { %628 = vmatpush.msra.mxu3 %v3342_v20  ;;  %834 = vmatpush.msra.mxu2 %v3278_v14 }
  0xaa   :  { %815 = vmatpush.msra.mxu1 %v3286_v16 }
  0xab   :  { %2598 = vmatmul.msk.f32.vlgmr.msrb.gmra.mxu3 %vm126_vm0, %v2917_v7  ;;  %571 = vmatmul.f32.vlgmr.msrb.gmra.mxu0 %v4652_v11 }
  0xac   :  { %2586 = vmatmul.msk.f32.gmra.mxu1 %vm130_vm2, %v2917_v7  ;;  %2594 = vmatmul.msk.f32.gmra.mxu2 %vm130_vm2, %v2917_v7 }
  0xad   :  { %629 = vmatpush.msra.mxu3 %v3356_v21  ;;  %835 = vmatpush.msra.mxu2 %v3288_v17 }
  0xaf   :  { %630 = vmatpush.msra.mxu3 %v3367_v22 }
  0xb1   :  { %840 = vmatpush.msrb.mxu3 %v3096_v34 }
  0xb3   :  { %2599 = vmatmul.msk.f32.gmra.mxu3 %vm127_vm1, %v2917_v7 }
  0xb4   :  { %2587 = vmatmul.msk.f32.gmra.mxu1 %vm131_vm3, %v2917_v7  ;;  %2595 = vmatmul.msk.f32.gmra.mxu2 %vm131_vm3, %v2917_v7 }
  0xb5   :  { %841 = vmatpush.msrb.mxu3 %v3106_v38 }
  0xb7   :  { %842 = vmatpush.msrb.mxu3 %v3132_v43 }
  0xb9   :  { %843 = vmatpush.msrb.mxu3 %v3146_v49 }
  0xbb   :  { %2600 = vmatmul.msk.f32.gmra.mxu3 %vm128_vm5, %v2917_v7 }
  0xbc   :  { %2588 = vmatmul.msk.f32.gmra.mxu1 %vm132_vm4, %v2917_v7  ;;  %2596 = vmatmul.msk.f32.gmra.mxu2 %vm132_vm4, %v2917_v7 }
  0xbd   :  { %844 = vmatpush.msrb.mxu3 %v3187_v55 }
  0xbf   :  { %845 = vmatpush.msrb.mxu3 %v3195_v58 }
  0xc1   :  { %846 = vmatpush.msrb.mxu3 %v3240_v4 }
  0xc3   :  { %2601 = vmatmul.msk.f32.gmra.mxu3 %vm129_vm7, %v2917_v7 }
  0xc4   :  { %2589 = vmatmul.msk.f32.gmra.mxu1 %vm133_vm6, %v2917_v7  ;;  %2597 = vmatmul.msk.f32.gmra.mxu2 %vm133_vm6, %v2917_v7 }
  0xc5   :  { %847 = vmatpush.msrb.mxu3 %v3244_v5 }
  0xc7   :  { %848 = vmatpush.msrb.mxu3 %v3280_v15 }
  0xc9   :  { %849 = vmatpush.msrb.mxu3 %v3284_v3 }
  0xcb   :  { %2602 = vmatmul.msk.f32.gmra.mxu3 %vm130_vm2, %v2917_v7 }
  0xcc   :  { %591 = vmatmul.f32.vlgmr.msrb.gmra.mxu1 %v4652_v11  ;;  %611 = vmatmul.f32.vlgmr.msrb.gmra.mxu2 %v4652_v11 }
  0xcd   :  { %1025 = vmatpush.msrb.mxu1 %v3069_v24  ;;  %1045 = vmatpush.msrb.mxu2 %v3098_v35  ;;  %v216_v24 = vperm.slane %v3462_v23, 0 }
  0xce   :  { %850 = vmatpush.msrb.mxu3 %v3304_v18 }
  0xcf   :  { %1026 = vmatpush.msrb.mxu1 %v3074_v26  ;;  %1046 = vmatpush.msrb.mxu2 %v3104_v37 }
  0xd0   :  { %851 = vmatpush.msrb.mxu3 %v3315_v19 }
  0xd1   :  { %1027 = vmatpush.msrb.mxu1 %v3100_v36  ;;  %1047 = vmatpush.msrb.mxu2 %v3114_v40 }
  0xd2   :  { %852 = vmatpush.msrb.mxu3 %v3331_v12 }
  0xd3   :  { %2603 = vmatmul.msk.f32.gmra.mxu3 %vm131_vm3, %v2917_v7  ;;  %1028 = vmatpush.msrb.mxu1 %v3110_v39 }
  0xd4   :  { %1048 = vmatpush.msrb.mxu2 %v3120_v42  ;;  %853 = vmatpush.msrb.mxu3 %v3342_v20 }
  0xd5   :  { %1029 = vmatpush.msrb.mxu1 %v3134_v44 }
  0xd6   :  { %1049 = vmatpush.msrb.mxu2 %v3136_v45  ;;  %854 = vmatpush.msrb.mxu3 %v3356_v21 }
  0xd7   :  { %1030 = vmatpush.msrb.mxu1 %v3142_v47 }
  0xd8   :  { %1050 = vmatpush.msrb.mxu2 %v3144_v48  ;;  %855 = vmatpush.msrb.mxu3 %v3367_v22 }
  0xd9   :  { %1031 = vmatpush.msrb.mxu1 %v3149_v50 }
  0xda   :  { %1051 = vmatpush.msrb.mxu2 %v3154_v51  ;;  %v438_v51 = vand.u32 127, %v424_v46 }
  0xdb   :  { %2604 = vmatmul.msk.f32.gmra.mxu3 %vm132_vm4, %v2917_v7  ;;  %1032 = vmatpush.msrb.mxu1 %v3166_v53 }
  0xdc   :  { %1052 = vmatpush.msrb.mxu2 %v3168_v54  ;;  %vm3510_vm9 = vcmp.lt.s32.totalorder %v438_v51, 32 }
  0xdd   :  { %1033 = vmatpush.msrb.mxu1 %v3189_v56  ;;  %v425_v56 = vadd.s32 256, %v3008_v1 }
  0xde   :  { %1053 = vmatpush.msrb.mxu2 %v3191_v57  ;;  %v217_v57 = vperm.slane %v3462_v23, 1 }
  0xdf   :  { %1034 = vmatpush.msrb.mxu1 %v3198_v59  ;;  %v4705_v59 = vmov 0 }
  0xe0   :  { %1054 = vmatpush.msrb.mxu2 %v3200_v60  ;;  %v4706_v59 = vsel %vm3510_vm9, 4294967295, %v4705_v59 }
  0xe1   :  { %1035 = vmatpush.msrb.mxu1 %v3215_v62  ;;  %4707 = vst [vmem:[#allocation20_spill] sm:$0xff] %v4706_v59 }
  0xe2   :  { %1055 = vmatpush.msrb.mxu2 %v3217_v63  ;;  %v445_v63 = vand.u32 127, %v425_v56 }
  0xe3   :  { %2605 = vmatmul.msk.f32.gmra.mxu3 %vm133_vm6, %v2917_v7  ;;  %1036 = vmatpush.msrb.mxu1 %v3236_v0 }
  0xe4   :  { %1056 = vmatpush.msrb.mxu2 %v3238_v2  ;;  %vm3533_vm10 = vcmp.lt.s32.totalorder %v445_v63, 32 }
  0xe5   :  { %1037 = vmatpush.msrb.mxu1 %v3247_v6 }
  0xe6   :  { %1057 = vmatpush.msrb.mxu2 %v3249_v8  ;;  %v4711_v8 = vmov 0 }
  0xe7   :  { %1038 = vmatpush.msrb.mxu1 %v3258_v9  ;;  %v4712_v8 = vsel %vm3533_vm10, 4294967295, %v4711_v8 }
  0xe8   :  { %1058 = vmatpush.msrb.mxu2 %v3260_v10  ;;  %4713 = vst [vmem:[#allocation24_spill] sm:$0xff] %v4712_v8 }
  0xe9   :  { %1039 = vmatpush.msrb.mxu1 %v3276_v13 }
  0xea   :  { %1059 = vmatpush.msrb.mxu2 %v3278_v14 }
  0xeb   :  { %631 = vmatmul.f32.vlgmr.msra.gmra.mxu3 %v4652_v11  ;;  %1040 = vmatpush.msrb.mxu1 %v3286_v16 }
  0xec   :  { %1065 = vmatpush.msra.mxu3 %v3096_v34  ;;  %1060 = vmatpush.msrb.mxu2 %v3288_v17 }
  0xee   :  { %1066 = vmatpush.msra.mxu3 %v3106_v38 }
  0xf0   :  { %1067 = vmatpush.msra.mxu3 %v3132_v43  ;;  %v241_v7 = vpop.f32.mrf.mxu0  ;;  %v3473_v27 = vpop.f32.mrf.mxu1 }
  0xf1   :  { %v242_v53 = vadd.f32 %v241_v7, %v216_v24 }
  0xf2   :  { %1068 = vmatpush.msra.mxu3 %v3146_v49 }
  0xf4   :  { %1069 = vmatpush.msra.mxu3 %v3187_v55 }
  0xf6   :  { %1070 = vmatpush.msra.mxu3 %v3195_v58 }
  0xf7   :  { %v3478_v28 = vpop.f32.mrf.mxu2 }
  0xf8   :  { %1071 = vmatpush.msra.mxu3 %v3240_v4  ;;  %v244_v25 = vpop.f32.mrf.mxu0  ;;  %v285_v31 = vpop.f32.mrf.mxu1  ;;  %v218_v4 = vperm.slane %v3462_v23, 2 }
  0xf9   :  { %v245_v26 = vadd.f32 %v244_v25, %v216_v24  ;;  %v3571_v25 = vadd.f32 %v285_v31, %v217_v57 }
  0xfa   :  { %1072 = vmatpush.msra.mxu3 %v3244_v5 }
  0xfb   :  { %4721 = vst [vmem:[#allocation32_spill] sm:$0xff] %v3571_v25 }
  0xfc   :  { %1073 = vmatpush.msra.mxu3 %v3280_v15 }
  0xfe   :  { %1074 = vmatpush.msra.mxu3 %v3284_v3 }
  0xff   :  { %v3480_v32 = vpop.f32.mrf.mxu2 }
 0x100   :  { %1075 = vmatpush.msra.mxu3 %v3304_v18 }
 0x102   :  { %1076 = vmatpush.msra.mxu3 %v3315_v19  ;;  %v3562_v19 = vperm.slane %v3462_v23, 3 }
 0x104   :  { %1077 = vmatpush.msra.mxu3 %v3331_v12 }
 0x106   :  { %1078 = vmatpush.msra.mxu3 %v3342_v20 }
 0x108   :  { %1079 = vmatpush.msra.mxu3 %v3356_v21 }
 0x10a   :  { %1080 = vmatpush.msra.mxu3 %v3367_v22 }
 0x10e   :  { %v253_v29 = vpop.f32.mrf.mxu3 }
 0x10f   :  { %v254_v30 = vadd.f32 %v253_v29, %v216_v24 }
 0x116   :  { %v256_v33 = vpop.f32.mrf.mxu3 }
 0x117   :  { %v257_v34 = vadd.f32 %v256_v33, %v216_v24 }
 0x118   :  { %v247_v35 = vpop.f32.mrf.mxu0 }
 0x119   :  { %v248_v36 = vadd.f32 %v247_v35, %v216_v24  ;;  %v288_v37 = vpop.f32.mrf.mxu1 }
 0x11a   :  { %v3541_v14 = vadd.f32 %v288_v37, %v217_v57 }
 0x11b   :  { %v3485_v38 = vsel %vm475_vm8, %v248_v36, %v257_v34  ;;  %v3489_v39 = vsel %vm475_vm8, %v257_v34, %v248_v36  ;;  %v3595_v36 = vadd.f32 %v3480_v32, %v218_v4 }
 0x11c   :  { %4701 = vst [vmem:[#allocation16_spill] sm:$0xff] %v3489_v39  ;;  %v3946_v39 = vld [vmem:[#allocation7 + $0x38] sm:$0xff] }
 0x11d   :  { %4716 = vst [vmem:[#allocation27_spill] sm:$0xff] %v3541_v14 }
 0x11e   :  { %v259_v40 = vpop.f32.mrf.mxu3  ;;  %4724 = vst [vmem:[#allocation35_spill] sm:$0xff] %v3595_v36 }
 0x11f   :  { %v260_v41 = vadd.f32 %v259_v40, %v216_v24  ;;  %v329_v42 = vpop.f32.mrf.mxu2 }
 0x120   :  { %v250_v43 = vpop.f32.mrf.mxu0  ;;  %v3567_v22 = vadd.f32 %v329_v42, %v218_v4 }
 0x121   :  { %v251_v44 = vadd.f32 %v250_v43, %v216_v24  ;;  %v291_v45 = vpop.f32.mrf.mxu1  ;;  %v3494_v47 = vsel %vm475_vm8, %v245_v26, %v260_v41  ;;  %v3498_v48 = vsel %vm475_vm8, %v260_v41, %v245_v26  ;;  %v3600_v41 = vadd.f32 %v3473_v27, %v217_v57 }
 0x122   :  { %4702 = vst [vmem:[#allocation17_spill] sm:$0xff] %v3498_v48  ;;  %v3518_v61 = vadd.f32 %v291_v45, %v217_v57  ;;  %v426_v27 = vadd.s32 384, %v3008_v1 }
 0x123   :  { %v3502_v49 = vsel %vm475_vm8, %v251_v44, %v254_v30  ;;  %v3506_v50 = vsel %vm475_vm8, %v254_v30, %v251_v44  ;;  %4719 = vst [vmem:[#allocation30_spill] sm:$0xff] %v3567_v22 }
 0x124   :  { %4703 = vst [vmem:[#allocation18_spill] sm:$0xff] %v3502_v49  ;;  %v452_v63 = vand.u32 127, %v426_v27 }
 0x125   :  { %4704 = vst [vmem:[#allocation19_spill] sm:$0xff] %v3506_v50 }
 0x126   :  { %v262_v52 = vpop.f32.mrf.mxu3  ;;  %4709 = vst [vmem:[#allocation22_spill] sm:$0xff] %v3518_v61  ;;  %vm3635_vm11 = vcmp.lt.s32.totalorder %v452_v63, 32 }
 0x127   :  { %v263_v54 = vadd.f32 %v262_v52, %v216_v24  ;;  %v332_v55 = vpop.f32.mrf.mxu2  ;;  %4726 = vst [vmem:[#allocation37_spill] sm:$0xff] %v3600_v41  ;;  %v3621_v52 = vadd.f32 %v3478_v28, %v218_v4 }
 0x128   :  { %v3537_v9 = vadd.f32 %v332_v55, %v218_v4  ;;  %v572_v28 = vpop.f32.mrf.mxu0 }
 0x129   :  { %v294_v58 = vpop.f32.mrf.mxu1  ;;  %v3516_v60 = vsel %vm475_vm8, %v263_v54, %v242_v53  ;;  %4729 = vst [vmem:[#allocation40_spill] sm:$0xff] %v3621_v52 }
 0x12a   :  { %4708 = vst [vmem:[#allocation21_spill] sm:$0xff] %v3516_v60  ;;  %v3520_v62 = vadd.f32 %v294_v58, %v217_v57 }
 0x12b   :  { %4714 = vst [vmem:[#allocation25_spill] sm:$0xff] %v3537_v9  ;;  %v3951_v9 = vld [vmem:[#allocation7 + $0x10] sm:$0xff] }
 0x12c   :  { %4710 = vst [vmem:[#allocation23_spill] sm:$0xff] %v3520_v62 }
 0x12e   :  { %v3531_v5 = vpop.f32.mrf.mxu3 }
 0x12f   :  { %v335_v6 = vpop.f32.mrf.mxu2 }
 0x130   :  { %v3539_v10 = vadd.f32 %v335_v6, %v218_v4 }
 0x131   :  { %v297_v13 = vpop.f32.mrf.mxu1 }
 0x132   :  { %4715 = vst [vmem:[#allocation26_spill] sm:$0xff] %v3539_v10  ;;  %v3543_v15 = vadd.f32 %v297_v13, %v217_v57  ;;  %v487_v13 = vsel %vm475_vm8, %v242_v53, %v263_v54  ;;  %v3949_v10 = vld [vmem:[#allocation7 + $0x8] sm:$0xff] }
 0x134   :  { %4717 = vst [vmem:[#allocation28_spill] sm:$0xff] %v3543_v15 }
 0x136   :  { %v367_v12 = vpop.f32.mrf.mxu3 }
 0x137   :  { %v338_v20 = vpop.f32.mrf.mxu2  ;;  %v3565_v21 = vadd.f32 %v367_v12, %v3562_v19  ;;  %v635_v12 = vadd.f32 %v572_v28, %v487_v13 }
 0x138   :  { %v3569_v7 = vadd.f32 %v338_v20, %v218_v4 }
 0x139   :  { %4718 = vst [vmem:[#allocation29_spill] sm:$0xff] %v3565_v21  ;;  %v300_v24 = vpop.f32.mrf.mxu1  ;;  %v2606_v54 = vmul.f32 -1.442695, %v635_v12 }
 0x13a   :  { %4720 = vst [vmem:[#allocation31_spill] sm:$0xff] %v3569_v7  ;;  %v3573_v26 = vadd.f32 %v300_v24, %v217_v57  ;;  %v4731_v24 = vmov 0 }
 0x13b   :  { %v4732_v24 = vsel %vm3635_vm11, 4294967295, %v4731_v24 }
 0x13c   :  { %4722 = vst [vmem:[#allocation33_spill] sm:$0xff] %v3573_v26  ;;  %v713_v30 = vsel %vm3510_vm9, %v3571_v25, %v3573_v26  ;;  %v3928_v25 = vld [vmem:[#allocation7 + $0x50] sm:$0xff] }
 0x13d   :  { %4733 = vst [vmem:[#allocation42_spill] sm:$0xff] %v4732_v24 }
 0x13e   :  { %v370_v33 = vpop.f32.mrf.mxu3 }
 0x13f   :  { %v341_v34 = vpop.f32.mrf.mxu2  ;;  %v3592_v35 = vadd.f32 %v370_v33, %v3562_v19 }
 0x140   :  { %v3597_v37 = vadd.f32 %v341_v34, %v218_v4 }
 0x141   :  { %4723 = vst [vmem:[#allocation34_spill] sm:$0xff] %v3592_v35  ;;  %v303_v40 = vpop.f32.mrf.mxu1 }
 0x142   :  { %4725 = vst [vmem:[#allocation36_spill] sm:$0xff] %v3597_v37  ;;  %v3602_v42 = vadd.f32 %v303_v40, %v217_v57  ;;  %v714_v43 = vsel %vm3533_vm10, %v3595_v36, %v3597_v37 }
 0x144   :  { %4727 = vst [vmem:[#allocation38_spill] sm:$0xff] %v3602_v42  ;;  %v488_v56 = vsel %vm3510_vm9, %v3600_v41, %v3602_v42 }
 0x146   :  { %v373_v45 = vpop.f32.mrf.mxu3 }
 0x147   :  { %v344_v46 = vpop.f32.mrf.mxu2  ;;  %v3618_v51 = vadd.f32 %v373_v45, %v3562_v19 }
 0x148   :  { %v3623_v55 = vadd.f32 %v344_v46, %v218_v4 }
 0x149   :  { %4728 = vst [vmem:[#allocation39_spill] sm:$0xff] %v3618_v51  ;;  %v592_v57 = vpop.f32.mrf.mxu1  ;;  %v4747_v51 = vsel %vm3533_vm10, %v3567_v22, %v3569_v7 }
 0x14a   :  { %4730 = vst [vmem:[#allocation41_spill] sm:$0xff] %v3623_v55  ;;  %v636_v58 = vadd.f32 %v592_v57, %v488_v56  ;;  %v489_v56 = vsel %vm3533_vm10, %v3621_v52, %v3623_v55 }
 0x14c   :  { %v2607_v4 = vmul.f32 -1.442695, %v636_v58 }
 0x14e   :  { %v376_v20 = vpop.f32.mrf.mxu3  ;;  %2678 = vpow2.f32 %v2607_v4 }
 0x14f   :  { %v3640_v33 = vadd.f32 %v376_v20, %v3562_v19  ;;  %2680 = vpow2.f32 %v2606_v54 }
 0x151   :  { %4734 = vst [vmem:[#allocation43_spill] sm:$0xff] %v3640_v33 }
 0x154   :  { %v2679_v45 = vpop.eup %2678 }
 0x155   :  { %v661_v57 = vadd.f32 1.0, %v2679_v45  ;;  %v2681_v58 = vpop.eup %2680 }
 0x156   :  { %v379_v40 = vpop.f32.mrf.mxu3  ;;  %v642_v13 = vadd.f32 1.0, %v2681_v58 }
 0x157   :  { %v3651_v27 = vadd.f32 %v379_v40, %v3562_v19  ;;  %2682 = vrcp.f32 %v661_v57  ;;  %v3674_v40 = vadd.f32 %v3531_v5, %v3562_v19  ;;  %v673_v16 = vand.u32 2147483648, %v661_v57 }
 0x158   :  { %2684 = vrcp.f32 %v642_v13  ;;  %vm667_vm13 = vweird.f32 %v661_v57  ;;  %v671_v53 = vand.u32 2147483647, %v661_v57  ;;  %vm648_vm0 = vweird.f32 %v642_v13 }
 0x159   :  { %4735 = vst [vmem:[#allocation44_spill] sm:$0xff] %v3651_v27  ;;  %v652_v2 = vand.u32 2147483647, %v642_v13  ;;  %v4746_v48 = vsel %vm3635_vm11, %v3592_v35, %v3651_v27 }
 0x15a   :  { %4737 = vst [vmem:[#allocation46_spill] sm:$0xff] %v3674_v40  ;;  %vm672_vm1 = vcmp.eq.f32.partialorder %v671_v53, 8.507059e+37 }
 0x15b   :  { %vm653_vm3 = vcmp.eq.f32.partialorder %v652_v2, 8.507059e+37 }
 0x15d   :  { %v2683_v20 = vpop.eup %2682 }
 0x15e   :  { %v382_v63 = vpop.f32.mrf.mxu3  ;;  %v663_v58 = vmul.f32 %v2683_v20, %v661_v57  ;;  %vm668_vm12 = vweird.f32 %v2683_v20 }
 0x15f   :  { %v3662_v28 = vadd.f32 %v382_v63, %v3562_v19  ;;  %v2685_v63 = vpop.eup %2684  ;;  %vm669_vm14 = vmor %vm667_vm13, %vm668_vm12 }
 0x160   :  { %v644_v6 = vmul.f32 %v2685_v63, %v642_v13  ;;  %v664_v32 = vsub.f32 1.0, %v663_v58  ;;  %vm649_vm15 = vweird.f32 %v2685_v63 }
 0x161   :  { %4736 = vst [vmem:[#allocation45_spill] sm:$0xff] %v3662_v28  ;;  %v715_v12 = vsel %vm3635_vm11, %v3565_v21, %v3662_v28  ;;  %vm650_vm2 = vmor %vm648_vm0, %vm649_vm15  ;;  %v3919_v21 = vld [vmem:[#allocation7 + $0x68] sm:$0xff] }
 0x162   :  { %v645_v31 = vsub.f32 1.0, %v644_v6  ;;  %v665_v29 = vmul.f32 %v2683_v20, %v664_v32  ;;  %v3926_v28 = vld [vmem:[#allocation7 + $0x48] sm:$0xff] }
 0x164   :  { %v646_v11 = vmul.f32 %v2685_v63, %v645_v31  ;;  %v666_v58 = vadd.f32 %v2683_v20, %v665_v29 }
 0x166   :  { %v385_v54 = vpop.f32.mrf.mxu3  ;;  %v670_v32 = vsel %vm669_vm14, %v2683_v20, %v666_v58 }
 0x167   :  { %v3677_v45 = vadd.f32 %v385_v54, %v3562_v19  ;;  %v612_v19 = vpop.f32.mrf.mxu2 }
 0x168   :  { %v637_v18 = vadd.f32 %v612_v19, %v489_v56 }
 0x169   :  { %4738 = vst [vmem:[#allocation47_spill] sm:$0xff] %v3677_v45  ;;  %v490_v44 = vsel %vm3635_vm11, %v3674_v40, %v3677_v45 }
 0x16e   :  { %v632_v4 = vpop.f32.mrf.mxu3 }
 0x16f   :  { %v638_v5 = vadd.f32 %v632_v4, %v490_v44  ;;  %v647_v44 = vadd.f32 %v2685_v63, %v646_v11  ;;  %v674_v4 = vor.u32 1.1754944e-38, %v673_v16 }
 0x171   :  { %v2608_v54 = vmul.f32 -1.442695, %v638_v5  ;;  %v654_v5 = vand.u32 2147483648, %v642_v13  ;;  %v675_v56 = vsel %vm672_vm1, %v674_v4, %v670_v32  ;;  %v651_v31 = vsel %vm650_vm2, %v2685_v63, %v647_v44 }
 0x172   :  { %v697_v57 = vmul.f32 0.0, %v675_v56  ;;  %v3706_v56 = vld [vmem:[#allocation7 + $0x1a0] sm:$0xff] }
 0x173   :  { %2686 = vpow2.f32 %v2608_v54  ;;  %v655_v19 = vor.u32 1.1754944e-38, %v654_v5  ;;  %v3700_v5 = vld [vmem:[#allocation7 + $0x1e0] sm:$0xff] }
 0x174   :  { %2688 = vtanh.f32 %v637_v18  ;;  %1005 = vmatpush.msrb.mxu0 %v3700_v5 }
 0x175   :  { %v656_v54 = vsel %vm653_vm3, %v655_v19, %v651_v31  ;;  %v3709_v31 = vld [vmem:[#allocation7 + $0x180] sm:$0xff] }
 0x176   :  { %v3715_v19 = vld [vmem:[#allocation7 + $0x140] sm:$0xff] }
 0x179   :  { %v2687_v6 = vpop.eup %2686 }
 0x17a   :  { %v681_v3 = vadd.f32 1.0, %v2687_v6  ;;  %v2689_v29 = vpop.eup %2688 }
 0x17b   :  { %v698_v18 = vmul.f32 %v2689_v29, %v656_v54  ;;  %v3712_v29 = vld [vmem:[#allocation7 + $0x160] sm:$0xff] }
 0x17c   :  { %2690 = vrcp.f32 %v681_v3  ;;  %v693_v13 = vand.u32 2147483648, %v681_v3  ;;  %v691_v58 = vand.u32 2147483647, %v681_v3  ;;  %vm687_vm5 = vweird.f32 %v681_v3  ;;  %v3721_v54 = vld [vmem:[#allocation7 + $0x100] sm:$0xff] }
 0x17d   :  { %v3691_v34 = vadd.f32 %v698_v18, %v697_v57  ;;  %v3718_v57 = vld [vmem:[#allocation7 + $0x120] sm:$0xff] }
 0x17e   :  { %v694_v63 = vor.u32 1.1754944e-38, %v693_v13  ;;  %vm692_vm7 = vcmp.eq.f32.partialorder %v691_v58, 8.507059e+37  ;;  %v3724_v18 = vld [vmem:[#allocation7 + $0xe0] sm:$0xff] }
 0x17f   :  { %2692 = vtanh.f32 %v3691_v34  ;;  %v3736_v58 = vld [vmem:[#allocation7 + $0xa0] sm:$0xff] }
 0x182   :  { %v2691_v11 = vpop.eup %2690 }
 0x183   :  { %v683_v20 = vmul.f32 %v2691_v11, %v681_v3  ;;  %vm688_vm4 = vweird.f32 %v2691_v11  ;;  %v3703_v3 = vld [vmem:[#allocation7 + $0x1c0] sm:$0xff] }
 0x184   :  { %vm689_vm6 = vmor %vm687_vm5, %vm688_vm4  ;;  %1006 = vmatpush.msrb.mxu0 %v3703_v3 }
 0x185   :  { %v684_v16 = vsub.f32 1.0, %v683_v20  ;;  %v2693_v2 = vpop.eup %2692 }
 0x186   :  { %1007 = vmatpush.msrb.mxu0 %v3706_v56 }
 0x187   :  { %v685_v53 = vmul.f32 %v2691_v11, %v684_v16  ;;  %v3727_v16 = vld [vmem:[#allocation7 + $0xc0] sm:$0xff] }
 0x188   :  { %1008 = vmatpush.msrb.mxu0 %v3709_v31 }
 0x189   :  { %v686_v32 = vadd.f32 %v2691_v11, %v685_v53 }
 0x18a   :  { %1009 = vmatpush.msrb.mxu0 %v3712_v29 }
 0x18b   :  { %v690_v44 = vsel %vm689_vm6, %v2691_v11, %v686_v32 }
 0x18c   :  { %v695_v6 = vsel %vm692_vm7, %v694_v63, %v690_v44  ;;  %1010 = vmatpush.msrb.mxu0 %v3715_v19  ;;  %v3739_v44 = vld [vmem:[#allocation7 + $0x80] sm:$0xff] }
 0x18d   :  { %v3694_v4 = vmul.f32 %v2693_v2, %v695_v6  ;;  %v3741_v2 = vld [vmem:[#allocation7 + $0x60] sm:$0xff] }
 0x18e   :  { %1011 = vmatpush.msrb.mxu0 %v3718_v57 }
 0x18f   :  { %4739 = vst [vmem:[#allocation48_spill] sm:$0xff] %v3694_v4  ;;  %796 = vmatmul.f32.vlgmr.msra.gmra.mxu0 %v3694_v4  ;;  %816 = vmatmul.f32.vlgmr.msra.gmra.mxu1 %v3694_v4 }
 0x190   :  { %836 = vmatmul.f32.vlgmr.msra.gmra.mxu2 %v3694_v4  ;;  %856 = vmatmul.f32.vlgmr.msrb.gmra.mxu3 %v3694_v4 }
 0x191   :  { %1012 = vmatpush.msrb.mxu0 %v3721_v54 }
 0x193   :  { %1013 = vmatpush.msrb.mxu0 %v3724_v18 }
 0x195   :  { %1014 = vmatpush.msrb.mxu0 %v3727_v16 }
 0x197   :  { %1015 = vmatpush.msrb.mxu0 %v3736_v58 }
 0x199   :  { %1016 = vmatpush.msrb.mxu0 %v3739_v44 }
 0x19b   :  { %1017 = vmatpush.msrb.mxu0 %v3741_v2 }
 0x20c   :  { %v797_v11 = vpop.f32.mrf.mxu0  ;;  %v817_v20 = vpop.f32.mrf.mxu1 }
 0x20d   :  { %v860_v13 = vadd.f32 %v797_v11, %v3494_v47  ;;  %v861_v53 = vadd.f32 %v817_v20, %v713_v30  ;;  %v3744_v47 = vld [vmem:[#allocation7 + $0x40] sm:$0xff] }
 0x20e   :  { %v3752_v11 = vld [vmem:[#allocation7 + $0x20] sm:$0xff]  ;;  %1018 = vmatpush.msrb.mxu0 %v3744_v47 }
 0x20f   :  { %v2609_v32 = vmul.f32 -1.442695, %v860_v13  ;;  %v2610_v63 = vmul.f32 -1.442695, %v861_v53  ;;  %v3755_v13 = vld [vmem:[#allocation7] sm:$0xff] }
 0x210   :  { %1019 = vmatpush.msrb.mxu0 %v3752_v11 }
 0x211   :  { %2694 = vpow2.f32 %v2609_v32 }
 0x212   :  { %2696 = vpow2.f32 %v2610_v63  ;;  %1020 = vmatpush.msrb.mxu0 %v3755_v13 }
 0x213   :  { %v857_v6 = vpop.f32.mrf.mxu3 }
 0x214   :  { %v863_v30 = vadd.f32 %v857_v6, %v715_v12  ;;  %1230 = vmatpush.msra.mxu0 %v3700_v5  ;;  %v837_v12 = vpop.f32.mrf.mxu2 }
 0x216   :  { %v2611_v20 = vmul.f32 -1.442695, %v863_v30  ;;  %1231 = vmatpush.msra.mxu0 %v3703_v3 }
 0x217   :  { %v2695_v53 = vpop.eup %2694 }
 0x218   :  { %v2697_v32 = vpop.eup %2696  ;;  %v867_v63 = vadd.f32 1.0, %v2695_v53  ;;  %2698 = vpow2.f32 %v2611_v20  ;;  %1232 = vmatpush.msra.mxu0 %v3706_v56  ;;  %v862_v20 = vadd.f32 %v837_v12, %v714_v43 }
 0x219   :  { %v886_v0 = vadd.f32 1.0, %v2697_v32 }
 0x21a   :  { %2700 = vrcp.f32 %v867_v63  ;;  %1233 = vmatpush.msra.mxu0 %v3709_v31  ;;  %v879_v52 = vand.u32 2147483648, %v867_v63  ;;  %v877_v40 = vand.u32 2147483647, %v867_v63  ;;  %vm873_vm14 = vweird.f32 %v867_v63 }
 0x21b   :  { %2702 = vrcp.f32 %v886_v0  ;;  %v896_v43 = vand.u32 2147483647, %v886_v0  ;;  %vm892_vm15 = vweird.f32 %v886_v0 }
 0x21c   :  { %1234 = vmatpush.msra.mxu0 %v3712_v29  ;;  %vm878_vm2 = vcmp.eq.f32.partialorder %v877_v40, 8.507059e+37 }
 0x21d   :  { %vm897_vm3 = vcmp.eq.f32.partialorder %v896_v43, 8.507059e+37  ;;  %v3862_v43 = vld [vmem:[#allocation7 + $0x130] sm:$0xff] }
 0x21e   :  { %v2699_v6 = vpop.eup %2698  ;;  %1235 = vmatpush.msra.mxu0 %v3715_v19 }
 0x21f   :  { %v906_v30 = vadd.f32 1.0, %v2699_v6  ;;  %v898_v6 = vand.u32 2147483648, %v886_v0 }
 0x220   :  { %v2701_v23 = vpop.eup %2700  ;;  %1236 = vmatpush.msra.mxu0 %v3718_v57 }
 0x221   :  { %v2703_v53 = vpop.eup %2702  ;;  %v869_v32 = vmul.f32 %v2701_v23, %v867_v63  ;;  %2704 = vrcp.f32 %v906_v30  ;;  %vm874_vm12 = vweird.f32 %v2701_v23  ;;  %vm912_vm5 = vweird.f32 %v906_v30 }
 0x222   :  { %v888_v46 = vmul.f32 %v2703_v53, %v886_v0  ;;  %2706 = vtanh.f32 %v862_v20  ;;  %vm893_vm13 = vweird.f32 %v2703_v53  ;;  %vm875_vm0 = vmor %vm873_vm14, %vm874_vm12  ;;  %1237 = vmatpush.msra.mxu0 %v3721_v54  ;;  %v899_v20 = vor.u32 1.1754944e-38, %v898_v6  ;;  %v3860_v6 = vld [vmem:[#allocation7 + $0x128] sm:$0xff] }
 0x223   :  { %v870_v17 = vsub.f32 1.0, %v869_v32  ;;  %v880_v32 = vor.u32 1.1754944e-38, %v879_v52  ;;  %vm894_vm1 = vmor %vm892_vm15, %vm893_vm13  ;;  %4743 = vst [vmem:[#allocation52_spill] sm:$0xff] %v3860_v6 }
 0x224   :  { %v889_v4 = vsub.f32 1.0, %v888_v46  ;;  %1238 = vmatpush.msra.mxu0 %v3724_v18 }
 0x225   :  { %v871_v55 = vmul.f32 %v2701_v23, %v870_v17 }
 0x226   :  { %v890_v45 = vmul.f32 %v2703_v53, %v889_v4  ;;  %1239 = vmatpush.msra.mxu0 %v3727_v16 }
 0x227   :  { %v2705_v12 = vpop.eup %2704  ;;  %v872_v41 = vadd.f32 %v2701_v23, %v871_v55 }
 0x228   :  { %v891_v46 = vadd.f32 %v2703_v53, %v890_v45  ;;  %v908_v42 = vmul.f32 %v2705_v12, %v906_v30  ;;  %v2707_v60 = vpop.eup %2706  ;;  %1240 = vmatpush.msra.mxu0 %v3736_v58  ;;  %vm913_vm4 = vweird.f32 %v2705_v12 }
 0x229   :  { %v876_v17 = vsel %vm875_vm0, %v2701_v23, %v872_v41  ;;  %v918_v41 = vand.u32 2147483648, %v906_v30  ;;  %vm914_vm6 = vmor %vm912_vm5, %vm913_vm4 }
 0x22a   :  { %v881_v4 = vsel %vm878_vm2, %v880_v32, %v876_v17  ;;  %v895_v1 = vsel %vm894_vm1, %v2703_v53, %v891_v46  ;;  %v909_v36 = vsub.f32 1.0, %v908_v42  ;;  %1241 = vmatpush.msra.mxu0 %v3739_v44  ;;  %v916_v42 = vand.u32 2147483647, %v906_v30  ;;  %v3853_v30 = vld [vmem:[#allocation7 + $0x150] sm:$0xff]  ;;  %v3855_v53 = vld [vmem:[#allocation7 + $0x158] sm:$0xff]  ;;  %v3869_v32 = vld [vmem:[#allocation7 + $0x108] sm:$0xff] }
 0x22b   :  { %v900_v55 = vsel %vm897_vm3, %v899_v20, %v895_v1  ;;  %v923_v63 = vmul.f32 %v2707_v60, %v881_v4  ;;  %v919_v60 = vor.u32 1.1754944e-38, %v918_v41  ;;  %4741 = vst [vmem:[#allocation50_spill] sm:$0xff] %v3853_v30  ;;  %v3871_v46 = vld [vmem:[#allocation7 + $0x110] sm:$0xff]  ;;  %v3873_v20 = vld [vmem:[#allocation7 + $0x118] sm:$0xff]  ;;  %v3878_v17 = vld [vmem:[#allocation7 + $0xe8] sm:$0xff] }
 0x22c   :  { %v922_v0 = vmul.f32 %v900_v55, %v3691_v34  ;;  %v910_v52 = vmul.f32 %v2705_v12, %v909_v36  ;;  %1242 = vmatpush.msra.mxu0 %v3741_v2  ;;  %vm917_vm7 = vcmp.eq.f32.partialorder %v916_v42, 8.507059e+37  ;;  %4742 = vst [vmem:[#allocation51_spill] sm:$0xff] %v3855_v53  ;;  %v3880_v4 = vld [vmem:[#allocation7 + $0xf0] sm:$0xff]  ;;  %v3882_v55 = vld [vmem:[#allocation7 + $0xf8] sm:$0xff] }
 0x22d   :  { %v3891_v41 = vld [vmem:[#allocation7 + $0xd8] sm:$0xff] }
 0x22e   :  { %v3775_v45 = vadd.f32 %v923_v63, %v922_v0  ;;  %v911_v23 = vadd.f32 %v2705_v12, %v910_v52  ;;  %1243 = vmatpush.msra.mxu0 %v3744_v47  ;;  %v3887_v52 = vld [vmem:[#allocation7 + $0xc8] sm:$0xff] }
 0x230   :  { %2708 = vtanh.f32 %v3775_v45  ;;  %v915_v1 = vsel %vm914_vm6, %v2705_v12, %v911_v23  ;;  %1244 = vmatpush.msra.mxu0 %v3752_v11  ;;  %v3864_v12 = vld [vmem:[#allocation7 + $0x138] sm:$0xff]  ;;  %v3889_v23 = vld [vmem:[#allocation7 + $0xd0] sm:$0xff] }
 0x231   :  { %v920_v34 = vsel %vm917_vm7, %v919_v60, %v915_v1  ;;  %4744 = vst [vmem:[#allocation53_spill] sm:$0xff] %v3864_v12  ;;  %v4745_v1 = vsel %vm3510_vm9, %v3541_v14, %v3543_v15  ;;  %v3942_v15 = vld [vmem:[#allocation7 + $0x30] sm:$0xff] }
 0x232   :  { %1245 = vmatpush.msra.mxu0 %v3755_v13 }
 0x236   :  { %v2709_v36 = vpop.eup %2708 }
 0x237   :  { %v3783_v40 = vmul.f32 %v2709_v36, %v920_v34  ;;  %v3902_v36 = vld [vmem:[#allocation7 + $0xa8] sm:$0xff]  ;;  %v3904_v34 = vld [vmem:[#allocation7 + $0xb0] sm:$0xff] }
 0x239   :  { %4740 = vst [vmem:[#allocation49_spill] sm:$0xff] %v3783_v40  ;;  %1021 = vmatmul.f32.vlgmr.msrb.gmra.mxu0 %v3783_v40  ;;  %1041 = vmatmul.f32.vlgmr.msrb.gmra.mxu1 %v3783_v40 }
 0x23a   :  { %1061 = vmatmul.f32.vlgmr.msrb.gmra.mxu2 %v3783_v40  ;;  %1081 = vmatmul.f32.vlgmr.msra.gmra.mxu3 %v3783_v40  ;;  %v3906_v40 = vld [vmem:[#allocation7 + $0xb8] sm:$0xff] }
 0x23b   :  { %1455 = vmatpush.msrb.mxu0 %v3700_v5  ;;  %v3806_v5 = vld [vmem:[#allocation7 + $0x1e8] sm:$0xff] }
 0x23c   :  { %1250 = vmatpush.msra.mxu1 %v3806_v5 }
 0x23d   :  { %1456 = vmatpush.msrb.mxu0 %v3703_v3  ;;  %v3808_v3 = vld [vmem:[#allocation7 + $0x1f0] sm:$0xff] }
 0x23e   :  { %1270 = vmatpush.msra.mxu2 %v3808_v3 }
 0x23f   :  { %1457 = vmatpush.msrb.mxu0 %v3706_v56  ;;  %v3810_v56 = vld [vmem:[#allocation7 + $0x1f8] sm:$0xff] }
 0x240   :  { %1290 = vmatpush.msrb.mxu3 %v3810_v56 }
 0x241   :  { %1458 = vmatpush.msrb.mxu0 %v3709_v31  ;;  %v3815_v31 = vld [vmem:[#allocation7 + $0x1c8] sm:$0xff] }
 0x242   :  { %1251 = vmatpush.msra.mxu1 %v3815_v31 }
 0x243   :  { %1459 = vmatpush.msrb.mxu0 %v3712_v29  ;;  %v3817_v29 = vld [vmem:[#allocation7 + $0x1d0] sm:$0xff] }
 0x244   :  { %1271 = vmatpush.msra.mxu2 %v3817_v29 }
 0x245   :  { %1460 = vmatpush.msrb.mxu0 %v3715_v19  ;;  %v3819_v19 = vld [vmem:[#allocation7 + $0x1d8] sm:$0xff] }
 0x246   :  { %1291 = vmatpush.msrb.mxu3 %v3819_v19 }
 0x247   :  { %1461 = vmatpush.msrb.mxu0 %v3718_v57  ;;  %v3824_v57 = vld [vmem:[#allocation7 + $0x1a8] sm:$0xff] }
 0x248   :  { %1252 = vmatpush.msra.mxu1 %v3824_v57 }
 0x249   :  { %1462 = vmatpush.msrb.mxu0 %v3721_v54  ;;  %v3826_v54 = vld [vmem:[#allocation7 + $0x1b0] sm:$0xff] }
 0x24a   :  { %1272 = vmatpush.msra.mxu2 %v3826_v54 }
 0x24b   :  { %1463 = vmatpush.msrb.mxu0 %v3724_v18  ;;  %v3828_v18 = vld [vmem:[#allocation7 + $0x1b8] sm:$0xff] }
 0x24c   :  { %1292 = vmatpush.msrb.mxu3 %v3828_v18 }
 0x24d   :  { %1464 = vmatpush.msrb.mxu0 %v3727_v16  ;;  %v3833_v16 = vld [vmem:[#allocation7 + $0x188] sm:$0xff] }
 0x24e   :  { %1253 = vmatpush.msra.mxu1 %v3833_v16 }
 0x24f   :  { %1465 = vmatpush.msrb.mxu0 %v3736_v58  ;;  %v3835_v58 = vld [vmem:[#allocation7 + $0x190] sm:$0xff] }
 0x250   :  { %1273 = vmatpush.msra.mxu2 %v3835_v58 }
 0x251   :  { %1466 = vmatpush.msrb.mxu0 %v3739_v44  ;;  %v3837_v44 = vld [vmem:[#allocation7 + $0x198] sm:$0xff] }
 0x252   :  { %1293 = vmatpush.msrb.mxu3 %v3837_v44 }
 0x253   :  { %1467 = vmatpush.msrb.mxu0 %v3741_v2  ;;  %v3842_v2 = vld [vmem:[#allocation7 + $0x168] sm:$0xff] }
 0x254   :  { %1254 = vmatpush.msra.mxu1 %v3842_v2 }
 0x255   :  { %1468 = vmatpush.msrb.mxu0 %v3744_v47  ;;  %v3844_v47 = vld [vmem:[#allocation7 + $0x170] sm:$0xff] }
 0x256   :  { %1274 = vmatpush.msra.mxu2 %v3844_v47 }
 0x257   :  { %1469 = vmatpush.msrb.mxu0 %v3752_v11  ;;  %v3846_v11 = vld [vmem:[#allocation7 + $0x178] sm:$0xff] }
 0x258   :  { %1294 = vmatpush.msrb.mxu3 %v3846_v11  ;;  %1275 = vmatpush.msra.mxu2 %v3853_v30 }
 0x259   :  { %1470 = vmatpush.msrb.mxu0 %v3755_v13  ;;  %v3851_v13 = vld [vmem:[#allocation7 + $0x148] sm:$0xff] }
 0x25a   :  { %1255 = vmatpush.msra.mxu1 %v3851_v13  ;;  %1295 = vmatpush.msrb.mxu3 %v3855_v53 }
 0x25b   :  { %1276 = vmatpush.msra.mxu2 %v3862_v43 }
 0x25c   :  { %1256 = vmatpush.msra.mxu1 %v3860_v6  ;;  %1296 = vmatpush.msrb.mxu3 %v3864_v12 }
 0x25d   :  { %1277 = vmatpush.msra.mxu2 %v3871_v46 }
 0x25e   :  { %1257 = vmatpush.msra.mxu1 %v3869_v32  ;;  %1297 = vmatpush.msrb.mxu3 %v3873_v20 }
 0x25f   :  { %1278 = vmatpush.msra.mxu2 %v3880_v4 }
 0x260   :  { %1258 = vmatpush.msra.mxu1 %v3878_v17  ;;  %1298 = vmatpush.msrb.mxu3 %v3882_v55 }
 0x261   :  { %1279 = vmatpush.msra.mxu2 %v3889_v23 }
 0x262   :  { %1259 = vmatpush.msra.mxu1 %v3887_v52  ;;  %1299 = vmatpush.msrb.mxu3 %v3891_v41 }
 0x263   :  { %1280 = vmatpush.msra.mxu2 %v3904_v34 }
 0x264   :  { %1260 = vmatpush.msra.mxu1 %v3902_v36  ;;  %1300 = vmatpush.msrb.mxu3 %v3906_v40 }
 0x2b6   :  { %v1022_v63 = vpop.f32.mrf.mxu0  ;;  %v1042_v0 = vpop.f32.mrf.mxu1 }
 0x2b7   :  { %v1085_v42 = vadd.f32 %v1022_v63, %v3485_v38  ;;  %v1086_v60 = vadd.f32 %v1042_v0, %v4745_v1  ;;  %v3911_v63 = vld [vmem:[#allocation7 + $0x88] sm:$0xff]  ;;  %v3913_v0 = vld [vmem:[#allocation7 + $0x90] sm:$0xff]  ;;  %v3915_v1 = vld [vmem:[#allocation7 + $0x98] sm:$0xff] }
 0x2b8   :  { %1261 = vmatpush.msra.mxu1 %v3911_v63  ;;  %1281 = vmatpush.msra.mxu2 %v3913_v0 }
 0x2b9   :  { %v2612_v37 = vmul.f32 -1.442695, %v1085_v42  ;;  %v2613_v38 = vmul.f32 -1.442695, %v1086_v60  ;;  %v3921_v42 = vld [vmem:[#allocation7 + $0x70] sm:$0xff]  ;;  %v3923_v60 = vld [vmem:[#allocation7 + $0x78] sm:$0xff]  ;;  %1301 = vmatpush.msrb.mxu3 %v3915_v1 }
 0x2ba   :  { %1262 = vmatpush.msra.mxu1 %v3919_v21  ;;  %1282 = vmatpush.msra.mxu2 %v3921_v42 }
 0x2bb   :  { %2710 = vpow2.f32 %v2612_v37  ;;  %v3932_v37 = vld [vmem:[#allocation7 + $0x58] sm:$0xff]  ;;  %1302 = vmatpush.msrb.mxu3 %v3923_v60 }
 0x2bc   :  { %2712 = vpow2.f32 %v2613_v38  ;;  %v3940_v38 = vld [vmem:[#allocation7 + $0x28] sm:$0xff]  ;;  %1263 = vmatpush.msra.mxu1 %v3926_v28  ;;  %1283 = vmatpush.msra.mxu2 %v3928_v25 }
 0x2bd   :  { %v1082_v26 = vpop.f32.mrf.mxu3  ;;  %1303 = vmatpush.msrb.mxu3 %v3932_v37 }
 0x2be   :  { %v1088_v14 = vadd.f32 %v1082_v26, %v4746_v48  ;;  %1264 = vmatpush.msra.mxu1 %v3940_v38  ;;  %1284 = vmatpush.msra.mxu2 %v3942_v15  ;;  %v3955_v26 = vld [vmem:[#allocation7 + $0x18] sm:$0xff] }
 0x2bf   :  { %1304 = vmatpush.msrb.mxu3 %v3946_v39 }
 0x2c0   :  { %v2614_v50 = vmul.f32 -1.442695, %v1088_v14  ;;  %1265 = vmatpush.msra.mxu1 %v3949_v10  ;;  %1285 = vmatpush.msra.mxu2 %v3951_v9 }
 0x2c1   :  { %v2711_v48 = vpop.eup %2710  ;;  %1305 = vmatpush.msrb.mxu3 %v3955_v26 }
 0x2c2   :  { %v2713_v35 = vpop.eup %2712  ;;  %v3957_v27 = vadd.f32 1.0, %v2711_v48  ;;  %2714 = vpow2.f32 %v2614_v50  ;;  %1475 = vmatpush.msrb.mxu1 %v3806_v5  ;;  %1495 = vmatpush.msrb.mxu2 %v3808_v3  ;;  %v1062_v50 = vpop.f32.mrf.mxu2 }
 0x2c3   :  { %v3960_v14 = vadd.f32 1.0, %v2713_v35  ;;  %1515 = vmatpush.msra.mxu3 %v3810_v56  ;;  %v1087_v24 = vadd.f32 %v1062_v50, %v4747_v51 }
 0x2c4   :  { %2716 = vrcp.f32 %v3957_v27  ;;  %1476 = vmatpush.msrb.mxu1 %v3815_v31  ;;  %1496 = vmatpush.msrb.mxu2 %v3817_v29  ;;  %v1104_v50 = vand.u32 2147483648, %v3957_v27  ;;  %v1102_v59 = vand.u32 2147483647, %v3957_v27  ;;  %vm1098_vm14 = vweird.f32 %v3957_v27 }
 0x2c5   :  { %2718 = vrcp.f32 %v3960_v14  ;;  %1516 = vmatpush.msra.mxu3 %v3819_v19  ;;  %v1123_v22 = vand.u32 2147483648, %v3960_v14  ;;  %v1121_v49 = vand.u32 2147483647, %v3960_v14  ;;  %vm1117_vm15 = vweird.f32 %v3960_v14 }
 0x2c6   :  { %1477 = vmatpush.msrb.mxu1 %v3824_v57  ;;  %1497 = vmatpush.msrb.mxu2 %v3826_v54  ;;  %vm1103_vm2 = vcmp.eq.f32.partialorder %v1102_v59, 8.507059e+37 }
 0x2c7   :  { %1517 = vmatpush.msra.mxu3 %v3828_v18  ;;  %vm1122_vm3 = vcmp.eq.f32.partialorder %v1121_v49, 8.507059e+37 }
 0x2c8   :  { %v2715_v35 = vpop.eup %2714  ;;  %1478 = vmatpush.msrb.mxu1 %v3833_v16  ;;  %1498 = vmatpush.msrb.mxu2 %v3835_v58 }
 0x2c9   :  { %v3974_v48 = vadd.f32 1.0, %v2715_v35  ;;  %1518 = vmatpush.msra.mxu3 %v3837_v44 }
 0x2ca   :  { %v2717_v33 = vpop.eup %2716  ;;  %1479 = vmatpush.msrb.mxu1 %v3842_v2  ;;  %1499 = vmatpush.msrb.mxu2 %v3844_v47 }
 0x2cb   :  { %v2719_v62 = vpop.eup %2718  ;;  %v1094_v61 = vmul.f32 %v2717_v33, %v3957_v27  ;;  %2720 = vrcp.f32 %v3974_v48  ;;  %1519 = vmatpush.msra.mxu3 %v3846_v11  ;;  %vm1099_vm12 = vweird.f32 %v2717_v33  ;;  %vm1137_vm5 = vweird.f32 %v3974_v48 }
 0x2cc   :  { %v1113_v35 = vmul.f32 %v2719_v62, %v3960_v14  ;;  %2722 = vtanh.f32 %v1087_v24  ;;  %1480 = vmatpush.msrb.mxu1 %v3851_v13  ;;  %1500 = vmatpush.msrb.mxu2 %v3853_v30  ;;  %vm1118_vm13 = vweird.f32 %v2719_v62  ;;  %vm1100_vm0 = vmor %vm1098_vm14, %vm1099_vm12 }
 0x2cd   :  { %v1095_v8 = vsub.f32 1.0, %v1094_v61  ;;  %1520 = vmatpush.msra.mxu3 %v3855_v53  ;;  %vm1119_vm1 = vmor %vm1117_vm15, %vm1118_vm13  ;;  %v1124_v53 = vor.u32 1.1754944e-38, %v1123_v22 }
 0x2ce   :  { %v1114_v51 = vsub.f32 1.0, %v1113_v35  ;;  %1481 = vmatpush.msrb.mxu1 %v3860_v6  ;;  %1501 = vmatpush.msrb.mxu2 %v3862_v43 }
 0x2cf   :  { %v1096_v7 = vmul.f32 %v2717_v33, %v1095_v8  ;;  %1521 = vmatpush.msra.mxu3 %v3864_v12  ;;  %v1105_v8 = vor.u32 1.1754944e-38, %v1104_v50 }
 0x2d0   :  { %v1115_v61 = vmul.f32 %v2719_v62, %v1114_v51  ;;  %1482 = vmatpush.msrb.mxu1 %v3869_v32  ;;  %1502 = vmatpush.msrb.mxu2 %v3871_v46 }
 0x2d1   :  { %v2721_v35 = vpop.eup %2720  ;;  %v1097_v24 = vadd.f32 %v2717_v33, %v1096_v7  ;;  %1522 = vmatpush.msra.mxu3 %v3873_v20 }
 0x2d2   :  { %v1116_v30 = vadd.f32 %v2719_v62, %v1115_v61  ;;  %v1133_v51 = vmul.f32 %v2721_v35, %v3974_v48  ;;  %v2723_v7 = vpop.eup %2722  ;;  %1483 = vmatpush.msrb.mxu1 %v3878_v17  ;;  %1503 = vmatpush.msrb.mxu2 %v3880_v4  ;;  %vm1138_vm4 = vweird.f32 %v2721_v35 }
 0x2d3   :  { %v1101_v6 = vsel %vm1100_vm0, %v2717_v33, %v1097_v24  ;;  %1523 = vmatpush.msra.mxu3 %v3882_v55  ;;  %v1143_v33 = vand.u32 2147483648, %v3974_v48  ;;  %vm1139_vm6 = vmor %vm1137_vm5, %vm1138_vm4 }
 0x2d4   :  { %v1106_v27 = vsel %vm1103_vm2, %v1105_v8, %v1101_v6  ;;  %v1120_v12 = vsel %vm1119_vm1, %v2719_v62, %v1116_v30  ;;  %v1134_v14 = vsub.f32 1.0, %v1133_v51  ;;  %1484 = vmatpush.msrb.mxu1 %v3887_v52  ;;  %1504 = vmatpush.msrb.mxu2 %v3889_v23 }
 0x2d5   :  { %v1125_v50 = vsel %vm1122_vm3, %v1124_v53, %v1120_v12  ;;  %v1148_v61 = vmul.f32 %v2723_v7, %v1106_v27  ;;  %1524 = vmatpush.msra.mxu3 %v3891_v41  ;;  %v1144_v53 = vor.u32 1.1754944e-38, %v1143_v33 }
 0x2d6   :  { %v1147_v22 = vmul.f32 %v1125_v50, %v3775_v45  ;;  %v1135_v59 = vmul.f32 %v2721_v35, %v1134_v14  ;;  %1485 = vmatpush.msrb.mxu1 %v3902_v36  ;;  %1505 = vmatpush.msrb.mxu2 %v3904_v34  ;;  %v1141_v45 = vand.u32 2147483647, %v3974_v48 }
 0x2d7   :  { %1525 = vmatpush.msra.mxu3 %v3906_v40 }
 0x2d8   :  { %v4015_v62 = vadd.f32 %v1148_v61, %v1147_v22  ;;  %v1136_v49 = vadd.f32 %v2721_v35, %v1135_v59  ;;  %1486 = vmatpush.msrb.mxu1 %v3911_v63  ;;  %1506 = vmatpush.msrb.mxu2 %v3913_v0  ;;  %vm1142_vm7 = vcmp.eq.f32.partialorder %v1141_v45, 8.507059e+37 }
 0x2d9   :  { %1526 = vmatpush.msra.mxu3 %v3915_v1 }
 0x2da   :  { %2724 = vtanh.f32 %v4015_v62  ;;  %1487 = vmatpush.msrb.mxu1 %v3919_v21  ;;  %v1140_v30 = vsel %vm1139_vm6, %v2721_v35, %v1136_v49  ;;  %1507 = vmatpush.msrb.mxu2 %v3921_v42 }
 0x2db   :  { %1527 = vmatpush.msra.mxu3 %v3923_v60  ;;  %v1145_v12 = vsel %vm1142_vm7, %v1144_v53, %v1140_v30 }
 0x2dc   :  { %1488 = vmatpush.msrb.mxu1 %v3926_v28  ;;  %1508 = vmatpush.msrb.mxu2 %v3928_v25 }
 0x2dd   :  { %1528 = vmatpush.msra.mxu3 %v3932_v37 }
 0x2de   :  { %1489 = vmatpush.msrb.mxu1 %v3940_v38  ;;  %1509 = vmatpush.msrb.mxu2 %v3942_v15 }
 0x2df   :  { %1529 = vmatpush.msra.mxu3 %v3946_v39 }
 0x2e0   :  { %v2725_v6 = vpop.eup %2724  ;;  %1490 = vmatpush.msrb.mxu1 %v3949_v10  ;;  %1510 = vmatpush.msrb.mxu2 %v3951_v9 }
 0x2e1   :  { %v4034_v48 = vmul.f32 %v2725_v6, %v1145_v12  ;;  %1530 = vmatpush.msra.mxu3 %v3955_v26 }
 0x2e3   :  { %1246 = vmatmul.f32.vlgmr.msra.gmra.mxu0 %v4034_v48  ;;  %1266 = vmatmul.f32.vlgmr.msra.gmra.mxu1 %v4034_v48 }
 0x2e4   :  { %1286 = vmatmul.f32.vlgmr.msra.gmra.mxu2 %v4034_v48  ;;  %1306 = vmatmul.f32.vlgmr.msrb.gmra.mxu3 %v4034_v48 }
 0x2e5   :  { %1700 = vmatpush.msra.mxu1 %v3806_v5  ;;  %1720 = vmatpush.msra.mxu2 %v3808_v3  ;;  %v4748_v5 = vld [vmem:[#allocation50_spill] sm:$0xff]  ;;  %v4749_v3 = vld [vmem:[#allocation51_spill] sm:$0xff] }
 0x2e6   :  { %1740 = vmatpush.msrb.mxu3 %v3810_v56  ;;  %v4750_v56 = vld [vmem:[#allocation52_spill] sm:$0xff] }
 0x2e7   :  { %1701 = vmatpush.msra.mxu1 %v3815_v31  ;;  %1721 = vmatpush.msra.mxu2 %v3817_v29  ;;  %v4751_v31 = vld [vmem:[#allocation53_spill] sm:$0xff]  ;;  %v4752_v29 = vld [vmem:[#allocation18_spill] sm:$0xff] }
 0x2e8   :  { %1741 = vmatpush.msrb.mxu3 %v3819_v19  ;;  %v4566_v19 = vld [vmem:[#allocation9 + $0x18] sm:$0xff] }
 0x2e9   :  { %1702 = vmatpush.msra.mxu1 %v3824_v57  ;;  %1722 = vmatpush.msra.mxu2 %v3826_v54  ;;  %v4755_v57 = vld [vmem:[#allocation23_spill] sm:$0xff] }
 0x2ea   :  { %1742 = vmatpush.msrb.mxu3 %v3828_v18 }
 0x2eb   :  { %1703 = vmatpush.msra.mxu1 %v3833_v16  ;;  %1723 = vmatpush.msra.mxu2 %v3835_v58  ;;  %v4759_v58 = vld [vmem:[#allocation43_spill] sm:$0xff] }
 0x2ec   :  { %1743 = vmatpush.msrb.mxu3 %v3837_v44 }
 0x2ed   :  { %1704 = vmatpush.msra.mxu1 %v3842_v2  ;;  %1724 = vmatpush.msra.mxu2 %v3844_v47 }
 0x2ee   :  { %1744 = vmatpush.msrb.mxu3 %v3846_v11 }
 0x2ef   :  { %1705 = vmatpush.msra.mxu1 %v3851_v13  ;;  %1725 = vmatpush.msra.mxu2 %v4748_v5 }
 0x2f0   :  { %1745 = vmatpush.msrb.mxu3 %v4749_v3 }
 0x2f1   :  { %1706 = vmatpush.msra.mxu1 %v4750_v56  ;;  %1726 = vmatpush.msra.mxu2 %v3862_v43 }
 0x2f2   :  { %1746 = vmatpush.msrb.mxu3 %v4751_v31 }
 0x2f3   :  { %1707 = vmatpush.msra.mxu1 %v3869_v32  ;;  %1727 = vmatpush.msra.mxu2 %v3871_v46 }
 0x2f4   :  { %1747 = vmatpush.msrb.mxu3 %v3873_v20 }
 0x2f5   :  { %1708 = vmatpush.msra.mxu1 %v3878_v17  ;;  %1728 = vmatpush.msra.mxu2 %v3880_v4 }
 0x2f6   :  { %1748 = vmatpush.msrb.mxu3 %v3882_v55 }
 0x2f7   :  { %1709 = vmatpush.msra.mxu1 %v3887_v52  ;;  %1729 = vmatpush.msra.mxu2 %v3889_v23  ;;  %v4762_v52 = vld [vmem:[#allocation25_spill] sm:$0xff]  ;;  %v4763_v23 = vld [vmem:[#allocation26_spill] sm:$0xff] }
 0x2f8   :  { %1749 = vmatpush.msrb.mxu3 %v3891_v41  ;;  %v4764_v41 = vsel %vm3533_vm10, %v4762_v52, %v4763_v23 }
 0x2f9   :  { %1710 = vmatpush.msra.mxu1 %v3902_v36  ;;  %1730 = vmatpush.msra.mxu2 %v3904_v34 }
 0x2fa   :  { %1750 = vmatpush.msrb.mxu3 %v3906_v40 }
 0x2fb   :  { %1711 = vmatpush.msra.mxu1 %v3911_v63  ;;  %1731 = vmatpush.msra.mxu2 %v3913_v0 }
 0x2fc   :  { %1751 = vmatpush.msrb.mxu3 %v3915_v1 }
 0x2fd   :  { %1712 = vmatpush.msra.mxu1 %v3919_v21  ;;  %1732 = vmatpush.msra.mxu2 %v3921_v42 }
 0x2fe   :  { %1752 = vmatpush.msrb.mxu3 %v3923_v60 }
 0x2ff   :  { %1713 = vmatpush.msra.mxu1 %v3926_v28  ;;  %1733 = vmatpush.msra.mxu2 %v3928_v25  ;;  %v4754_v25 = vld [vmem:[#allocation22_spill] sm:$0xff] }
 0x300   :  { %1753 = vmatpush.msrb.mxu3 %v3932_v37  ;;  %v4756_v54 = vsel %vm3510_vm9, %v4754_v25, %v4755_v57 }
 0x301   :  { %1714 = vmatpush.msra.mxu1 %v3940_v38  ;;  %1734 = vmatpush.msra.mxu2 %v3942_v15 }
 0x302   :  { %1754 = vmatpush.msrb.mxu3 %v3946_v39 }
 0x303   :  { %1715 = vmatpush.msra.mxu1 %v3949_v10  ;;  %1735 = vmatpush.msra.mxu2 %v3951_v9  ;;  %v4758_v9 = vld [vmem:[#allocation39_spill] sm:$0xff] }
 0x304   :  { %1755 = vmatpush.msrb.mxu3 %v3955_v26  ;;  %v4760_v44 = vsel %vm3635_vm11, %v4758_v9, %v4759_v58 }
 0x360   :  { %v1247_v21 = vpop.f32.mrf.mxu0  ;;  %v1267_v40 = vpop.f32.mrf.mxu1 }
 0x361   :  { %v1310_v28 = vadd.f32 %v1247_v21, %v4752_v29  ;;  %v1311_v18 = vadd.f32 %v1267_v40, %v4756_v54  ;;  %v4122_v54 = vld [vmem:[#allocation7 + $0x1c0] sm:$0xff] }
 0x363   :  { %v2615_v16 = vmul.f32 -1.442695, %v1310_v28  ;;  %v2616_v15 = vmul.f32 -1.442695, %v1311_v18  ;;  %v4125_v18 = vld [vmem:[#allocation7 + $0x1a0] sm:$0xff] }
 0x365   :  { %2726 = vpow2.f32 %v2615_v16  ;;  %v4128_v16 = vld [vmem:[#allocation7 + $0x180] sm:$0xff] }
 0x366   :  { %2728 = vpow2.f32 %v2616_v15  ;;  %v4131_v15 = vld [vmem:[#allocation7 + $0x160] sm:$0xff] }
 0x367   :  { %v1307_v39 = vpop.f32.mrf.mxu3  ;;  %v1287_v46 = vpop.f32.mrf.mxu2 }
 0x368   :  { %v1313_v2 = vadd.f32 %v1307_v39, %v4760_v44  ;;  %v1312_v36 = vadd.f32 %v1287_v46, %v4764_v41  ;;  %v4134_v39 = vld [vmem:[#allocation7 + $0x140] sm:$0xff] }
 0x369   :  { %v4137_v44 = vld [vmem:[#allocation7 + $0x120] sm:$0xff] }
 0x36a   :  { %v2617_v47 = vmul.f32 -1.442695, %v1313_v2  ;;  %v4140_v2 = vld [vmem:[#allocation7 + $0x100] sm:$0xff] }
 0x36b   :  { %v2727_v11 = vpop.eup %2726 }
 0x36c   :  { %v2729_v13 = vpop.eup %2728  ;;  %v1317_v43 = vadd.f32 1.0, %v2727_v11  ;;  %2730 = vpow2.f32 %v2617_v47  ;;  %v4143_v47 = vld [vmem:[#allocation7 + $0xe0] sm:$0xff] }
 0x36d   :  { %v1336_v32 = vadd.f32 1.0, %v2729_v13 }
 0x36e   :  { %2732 = vrcp.f32 %v1317_v43  ;;  %v1329_v60 = vand.u32 2147483648, %v1317_v43  ;;  %v1327_v26 = vand.u32 2147483647, %v1317_v43  ;;  %vm1323_vm14 = vweird.f32 %v1317_v43 }
 0x36f   :  { %2734 = vrcp.f32 %v1336_v32  ;;  %v1348_v37 = vand.u32 2147483648, %v1336_v32  ;;  %v1346_v24 = vand.u32 2147483647, %v1336_v32  ;;  %vm1342_vm15 = vweird.f32 %v1336_v32 }
 0x370   :  { %v1330_v7 = vor.u32 1.1754944e-38, %v1329_v60  ;;  %vm1328_vm2 = vcmp.eq.f32.partialorder %v1327_v26, 8.507059e+37 }
 0x371   :  { %v1349_v50 = vor.u32 1.1754944e-38, %v1348_v37  ;;  %vm1347_vm3 = vcmp.eq.f32.partialorder %v1346_v24, 8.507059e+37  ;;  %v4174_v37 = vld [vmem:[#allocation7] sm:$0xff] }
 0x372   :  { %v2731_v20 = vpop.eup %2730 }
 0x373   :  { %v1356_v17 = vadd.f32 1.0, %v2731_v20  ;;  %v4766_v20 = vsel %vm3510_vm9, %v4755_v57, %v4754_v25  ;;  %v4767_v57 = vsel %vm3635_vm11, %v4759_v58, %v4758_v9 }
 0x374   :  { %v2733_v4 = vpop.eup %2732 }
 0x375   :  { %v2735_v34 = vpop.eup %2734  ;;  %v1319_v63 = vmul.f32 %v2733_v4, %v1317_v43  ;;  %2736 = vrcp.f32 %v1356_v17  ;;  %vm1324_vm12 = vweird.f32 %v2733_v4  ;;  %v1368_v3 = vand.u32 2147483648, %v1356_v17  ;;  %v4146_v43 = vld [vmem:[#allocation7 + $0xc0] sm:$0xff] }
 0x376   :  { %v1338_v0 = vmul.f32 %v2735_v34, %v1336_v32  ;;  %2738 = vtanh.f32 %v1312_v36  ;;  %vm1343_vm13 = vweird.f32 %v2735_v34  ;;  %vm1325_vm0 = vmor %vm1323_vm14, %vm1324_vm12  ;;  %vm1362_vm5 = vweird.f32 %v1356_v17  ;;  %v4765_v32 = vld [vmem:[#allocation19_spill] sm:$0xff] }
 0x377   :  { %v1320_v1 = vsub.f32 1.0, %v1319_v63  ;;  %vm1344_vm1 = vmor %vm1342_vm15, %vm1343_vm13  ;;  %v1366_v56 = vand.u32 2147483647, %v1356_v17  ;;  %v1369_v21 = vor.u32 1.1754944e-38, %v1368_v3  ;;  %v4160_v63 = vld [vmem:[#allocation7 + $0x60] sm:$0xff] }
 0x378   :  { %v1339_v42 = vsub.f32 1.0, %v1338_v0  ;;  %v4163_v0 = vld [vmem:[#allocation7 + $0x40] sm:$0xff] }
 0x379   :  { %v1321_v38 = vmul.f32 %v2733_v4, %v1320_v1  ;;  %vm1367_vm7 = vcmp.eq.f32.partialorder %v1366_v56, 8.507059e+37 }
 0x37a   :  { %v1340_v35 = vmul.f32 %v2735_v34, %v1339_v42  ;;  %v4171_v42 = vld [vmem:[#allocation7 + $0x20] sm:$0xff] }
 0x37b   :  { %v2737_v8 = vpop.eup %2736  ;;  %v1322_v51 = vadd.f32 %v2733_v4, %v1321_v38 }
 0x37c   :  { %v1341_v27 = vadd.f32 %v2735_v34, %v1340_v35  ;;  %v1358_v14 = vmul.f32 %v2737_v8, %v1356_v17  ;;  %v2739_v22 = vpop.eup %2738  ;;  %vm1363_vm4 = vweird.f32 %v2737_v8 }
 0x37d   :  { %v1326_v61 = vsel %vm1325_vm0, %v2733_v4, %v1322_v51  ;;  %vm1364_vm6 = vmor %vm1362_vm5, %vm1363_vm4  ;;  %v4155_v4 = vld [vmem:[#allocation7 + $0xa0] sm:$0xff] }
 0x37e   :  { %v1331_v59 = vsel %vm1328_vm2, %v1330_v7, %v1326_v61  ;;  %v1345_v49 = vsel %vm1344_vm1, %v2735_v34, %v1341_v27  ;;  %v1359_v33 = vsub.f32 1.0, %v1358_v14  ;;  %v4158_v34 = vld [vmem:[#allocation7 + $0x80] sm:$0xff]  ;;  %v4768_v7 = vsel %vm3533_vm10, %v4763_v23, %v4762_v52 }
 0x37f   :  { %v1350_v45 = vsel %vm1347_vm3, %v1349_v50, %v1345_v49  ;;  %v1373_v30 = vmul.f32 %v2739_v22, %v1331_v59 }
 0x380   :  { %v1372_v53 = vmul.f32 %v1350_v45, %v4015_v62  ;;  %v1360_v6 = vmul.f32 %v2737_v8, %v1359_v33  ;;  %v4119_v62 = vld [vmem:[#allocation7 + $0x1e0] sm:$0xff] }
 0x381   :  { %1680 = vmatpush.msra.mxu0 %v4119_v62 }
 0x382   :  { %v4110_v12 = vadd.f32 %v1373_v30, %v1372_v53  ;;  %v1361_v5 = vadd.f32 %v2737_v8, %v1360_v6 }
 0x383   :  { %1681 = vmatpush.msra.mxu0 %v4122_v54 }
 0x384   :  { %2740 = vtanh.f32 %v4110_v12  ;;  %v1365_v31 = vsel %vm1364_vm6, %v2737_v8, %v1361_v5 }
 0x385   :  { %v1370_v29 = vsel %vm1367_vm7, %v1369_v21, %v1365_v31  ;;  %1682 = vmatpush.msra.mxu0 %v4125_v18 }
 0x387   :  { %1683 = vmatpush.msra.mxu0 %v4128_v16 }
 0x389   :  { %1684 = vmatpush.msra.mxu0 %v4131_v15 }
 0x38a   :  { %v2741_v40 = vpop.eup %2740 }
 0x38b   :  { %v4113_v28 = vmul.f32 %v2741_v40, %v1370_v29  ;;  %1685 = vmatpush.msra.mxu0 %v4134_v39 }
 0x38d   :  { %1471 = vmatmul.f32.vlgmr.msrb.gmra.mxu0 %v4113_v28  ;;  %1491 = vmatmul.f32.vlgmr.msrb.gmra.mxu1 %v4113_v28 }
 0x38e   :  { %1511 = vmatmul.f32.vlgmr.msrb.gmra.mxu2 %v4113_v28  ;;  %1531 = vmatmul.f32.vlgmr.msra.gmra.mxu3 %v4113_v28 }
 0x38f   :  { %1686 = vmatpush.msra.mxu0 %v4137_v44 }
 0x391   :  { %1687 = vmatpush.msra.mxu0 %v4140_v2 }
 0x393   :  { %1688 = vmatpush.msra.mxu0 %v4143_v47 }
 0x395   :  { %1689 = vmatpush.msra.mxu0 %v4146_v43 }
 0x397   :  { %1690 = vmatpush.msra.mxu0 %v4155_v4 }
 0x399   :  { %1691 = vmatpush.msra.mxu0 %v4158_v34 }
 0x39b   :  { %1692 = vmatpush.msra.mxu0 %v4160_v63 }
 0x39d   :  { %1693 = vmatpush.msra.mxu0 %v4163_v0 }
 0x39f   :  { %1694 = vmatpush.msra.mxu0 %v4171_v42 }
 0x3a1   :  { %1695 = vmatpush.msra.mxu0 %v4174_v37 }
 0x3a3   :  { %1905 = vmatpush.msrb.mxu0 %v4119_v62 }
 0x3a5   :  { %1906 = vmatpush.msrb.mxu0 %v4122_v54 }
 0x3a7   :  { %1907 = vmatpush.msrb.mxu0 %v4125_v18 }
 0x3a9   :  { %1908 = vmatpush.msrb.mxu0 %v4128_v16 }
 0x3ab   :  { %1909 = vmatpush.msrb.mxu0 %v4131_v15 }
 0x3ad   :  { %1910 = vmatpush.msrb.mxu0 %v4134_v39 }
 0x3af   :  { %1911 = vmatpush.msrb.mxu0 %v4137_v44 }
 0x3b1   :  { %1912 = vmatpush.msrb.mxu0 %v4140_v2 }
 0x3b3   :  { %1913 = vmatpush.msrb.mxu0 %v4143_v47 }
 0x3b5   :  { %1914 = vmatpush.msrb.mxu0 %v4146_v43 }
 0x3b7   :  { %1915 = vmatpush.msrb.mxu0 %v4155_v4 }
 0x3b9   :  { %1916 = vmatpush.msrb.mxu0 %v4158_v34 }
 0x3bb   :  { %1917 = vmatpush.msrb.mxu0 %v4160_v63 }
 0x3bd   :  { %1918 = vmatpush.msrb.mxu0 %v4163_v0 }
 0x3bf   :  { %1919 = vmatpush.msrb.mxu0 %v4171_v42 }
 0x3c1   :  { %1920 = vmatpush.msrb.mxu0 %v4174_v37 }
 0x40a   :  { %v1472_v11 = vpop.f32.mrf.mxu0  ;;  %v1492_v13 = vpop.f32.mrf.mxu1 }
 0x40b   :  { %v1535_v46 = vadd.f32 %v1472_v11, %v4765_v32  ;;  %v1536_v17 = vadd.f32 %v1492_v13, %v4766_v20 }
 0x40d   :  { %v2618_v41 = vmul.f32 -1.442695, %v1535_v46  ;;  %v2619_v36 = vmul.f32 -1.442695, %v1536_v17 }
 0x40f   :  { %2742 = vpow2.f32 %v2618_v41 }
 0x410   :  { %2744 = vpow2.f32 %v2619_v36 }
 0x411   :  { %v1532_v25 = vpop.f32.mrf.mxu3  ;;  %v1512_v9 = vpop.f32.mrf.mxu2 }
 0x412   :  { %v1538_v1 = vadd.f32 %v1532_v25, %v4767_v57  ;;  %v1537_v27 = vadd.f32 %v1512_v9, %v4768_v7  ;;  %v4279_v9 = vld [vmem:[#allocation7 + $0x128] sm:$0xff]  ;;  %v4290_v7 = vld [vmem:[#allocation7 + $0x110] sm:$0xff] }
 0x414   :  { %v2620_v60 = vmul.f32 -1.442695, %v1538_v1 }
 0x415   :  { %v2743_v38 = vpop.eup %2742 }
 0x416   :  { %v2745_v26 = vpop.eup %2744  ;;  %v1542_v35 = vadd.f32 1.0, %v2743_v38  ;;  %2746 = vpow2.f32 %v2620_v60 }
 0x417   :  { %v1561_v24 = vadd.f32 1.0, %v2745_v26 }
 0x418   :  { %2748 = vrcp.f32 %v1542_v35  ;;  %v1554_v49 = vand.u32 2147483648, %v1542_v35  ;;  %v1552_v30 = vand.u32 2147483647, %v1542_v35  ;;  %vm1548_vm14 = vweird.f32 %v1542_v35 }
 0x419   :  { %2750 = vrcp.f32 %v1561_v24  ;;  %v1573_v33 = vand.u32 2147483648, %v1561_v24  ;;  %v1571_v23 = vand.u32 2147483647, %v1561_v24  ;;  %vm1567_vm15 = vweird.f32 %v1561_v24 }
 0x41a   :  { %v1555_v5 = vor.u32 1.1754944e-38, %v1554_v49  ;;  %vm1553_vm2 = vcmp.eq.f32.partialorder %v1552_v30, 8.507059e+37  ;;  %v4306_v49 = vld [vmem:[#allocation7 + $0xc8] sm:$0xff] }
 0x41b   :  { %v1574_v31 = vor.u32 1.1754944e-38, %v1573_v33  ;;  %vm1572_vm3 = vcmp.eq.f32.partialorder %v1571_v23, 8.507059e+37  ;;  %v4308_v33 = vld [vmem:[#allocation7 + $0xd0] sm:$0xff]  ;;  %v4769_v30 = vld [vmem:[#allocation16_spill] sm:$0xff] }
 0x41c   :  { %v2747_v58 = vpop.eup %2746  ;;  %v4770_v23 = vld [vmem:[#allocation28_spill] sm:$0xff] }
 0x41d   :  { %v1581_v8 = vadd.f32 1.0, %v2747_v58  ;;  %v4281_v58 = vld [vmem:[#allocation7 + $0x130] sm:$0xff] }
 0x41e   :  { %v2749_v51 = vpop.eup %2748 }
 0x41f   :  { %v2751_v14 = vpop.eup %2750  ;;  %v1544_v50 = vmul.f32 %v2749_v51, %v1542_v35  ;;  %2752 = vrcp.f32 %v1581_v8  ;;  %vm1549_vm12 = vweird.f32 %v2749_v51  ;;  %v1593_v25 = vand.u32 2147483648, %v1581_v8  ;;  %v4272_v35 = vld [vmem:[#allocation7 + $0x150] sm:$0xff] }
 0x420   :  { %v1563_v61 = vmul.f32 %v2751_v14, %v1561_v24  ;;  %2754 = vtanh.f32 %v1537_v27  ;;  %vm1568_vm13 = vweird.f32 %v2751_v14  ;;  %vm1550_vm0 = vmor %vm1548_vm14, %vm1549_vm12  ;;  %vm1587_vm5 = vweird.f32 %v1581_v8  ;;  %v4274_v24 = vld [vmem:[#allocation7 + $0x158] sm:$0xff] }
 0x421   :  { %v1545_v22 = vsub.f32 1.0, %v1544_v50  ;;  %vm1569_vm1 = vmor %vm1567_vm15, %vm1568_vm13  ;;  %v1591_v57 = vand.u32 2147483647, %v1581_v8  ;;  %v1594_v1 = vor.u32 1.1754944e-38, %v1593_v25  ;;  %v4292_v27 = vld [vmem:[#allocation7 + $0x118] sm:$0xff]  ;;  %v4299_v50 = vld [vmem:[#allocation7 + $0xf0] sm:$0xff] }
 0x422   :  { %v1564_v59 = vsub.f32 1.0, %v1563_v61  ;;  %v4301_v61 = vld [vmem:[#allocation7 + $0xf8] sm:$0xff] }
 0x423   :  { %v1546_v45 = vmul.f32 %v2749_v51, %v1545_v22  ;;  %vm1592_vm7 = vcmp.eq.f32.partialorder %v1591_v57, 8.507059e+37  ;;  %v4351_v57 = vld [vmem:[#allocation7 + $0x58] sm:$0xff] }
 0x424   :  { %v1565_v52 = vmul.f32 %v2751_v14, %v1564_v59 }
 0x425   :  { %v2753_v53 = vpop.eup %2752  ;;  %v1547_v6 = vadd.f32 %v2749_v51, %v1546_v45  ;;  %v4310_v45 = vld [vmem:[#allocation7 + $0xd8] sm:$0xff] }
 0x426   :  { %v1566_v3 = vadd.f32 %v2751_v14, %v1565_v52  ;;  %v1583_v56 = vmul.f32 %v2753_v53, %v1581_v8  ;;  %v2755_v40 = vpop.eup %2754  ;;  %vm1588_vm4 = vweird.f32 %v2753_v53  ;;  %v4283_v8 = vld [vmem:[#allocation7 + $0x138] sm:$0xff] }
 0x427   :  { %v1551_v21 = vsel %vm1550_vm0, %v2749_v51, %v1547_v6  ;;  %vm1589_vm6 = vmor %vm1587_vm5, %vm1588_vm4  ;;  %v4288_v51 = vld [vmem:[#allocation7 + $0x108] sm:$0xff] }
 0x428   :  { %v1556_v29 = vsel %vm1553_vm2, %v1555_v5, %v1551_v21  ;;  %v1570_v11 = vsel %vm1569_vm1, %v2751_v14, %v1566_v3  ;;  %v1584_v13 = vsub.f32 1.0, %v1583_v56  ;;  %v4297_v14 = vld [vmem:[#allocation7 + $0xe8] sm:$0xff]  ;;  %v4323_v56 = vld [vmem:[#allocation7 + $0xb0] sm:$0xff] }
 0x429   :  { %v1575_v32 = vsel %vm1572_vm3, %v1574_v31, %v1570_v11  ;;  %v1598_v46 = vmul.f32 %v2755_v40, %v1556_v29  ;;  %v4321_v3 = vld [vmem:[#allocation7 + $0xa8] sm:$0xff]  ;;  %v4325_v31 = vld [vmem:[#allocation7 + $0xb8] sm:$0xff]  ;;  %v4332_v11 = vld [vmem:[#allocation7 + $0x90] sm:$0xff] }
 0x42a   :  { %v1597_v20 = vmul.f32 %v1575_v32, %v4110_v12  ;;  %v1585_v17 = vmul.f32 %v2753_v53, %v1584_v13  ;;  %v4330_v29 = vld [vmem:[#allocation7 + $0x88] sm:$0xff]  ;;  %v4334_v13 = vld [vmem:[#allocation7 + $0x98] sm:$0xff] }
 0x42b   :  { %v4338_v32 = vld [vmem:[#allocation7 + $0x68] sm:$0xff] }
 0x42c   :  { %v4194_v41 = vadd.f32 %v1598_v46, %v1597_v20  ;;  %v1586_v36 = vadd.f32 %v2753_v53, %v1585_v17  ;;  %v4340_v46 = vld [vmem:[#allocation7 + $0x70] sm:$0xff]  ;;  %v4342_v20 = vld [vmem:[#allocation7 + $0x78] sm:$0xff]  ;;  %v4345_v17 = vld [vmem:[#allocation7 + $0x48] sm:$0xff] }
 0x42e   :  { %2756 = vtanh.f32 %v4194_v41  ;;  %v1590_v12 = vsel %vm1589_vm6, %v2753_v53, %v1586_v36  ;;  %v4771_v53 = vld [vmem:[#allocation27_spill] sm:$0xff]  ;;  %v4347_v36 = vld [vmem:[#allocation7 + $0x50] sm:$0xff] }
 0x42f   :  { %v1595_v38 = vsel %vm1592_vm7, %v1594_v1, %v1590_v12  ;;  %v4772_v6 = vsel %vm3510_vm9, %v4770_v23, %v4771_v53  ;;  %v4773_v12 = vld [vmem:[#allocation44_spill] sm:$0xff]  ;;  %v4774_v1 = vld [vmem:[#allocation34_spill] sm:$0xff]  ;;  %v4370_v53 = vld [vmem:[#allocation7 + $0x10] sm:$0xff] }
 0x430   :  { %v4368_v23 = vld [vmem:[#allocation7 + $0x8] sm:$0xff] }
 0x434   :  { %v2757_v60 = vpop.eup %2756 }
 0x435   :  { %v4202_v26 = vmul.f32 %v2757_v60, %v1595_v38  ;;  %v4775_v60 = vsel %vm3635_vm11, %v4773_v12, %v4774_v1 }
 0x437   :  { %1696 = vmatmul.f32.vlgmr.msra.gmra.mxu0 %v4202_v26  ;;  %1716 = vmatmul.f32.vlgmr.msra.gmra.mxu1 %v4202_v26 }
 0x438   :  { %1736 = vmatmul.f32.vlgmr.msra.gmra.mxu2 %v4202_v26  ;;  %1756 = vmatmul.f32.vlgmr.msrb.gmra.mxu3 %v4202_v26 }
 0x439   :  { %2130 = vmatpush.msra.mxu0 %v4119_v62  ;;  %v4225_v62 = vld [vmem:[#allocation7 + $0x1e8] sm:$0xff] }
 0x43a   :  { %1925 = vmatpush.msrb.mxu1 %v4225_v62 }
 0x43b   :  { %2131 = vmatpush.msra.mxu0 %v4122_v54  ;;  %v4227_v54 = vld [vmem:[#allocation7 + $0x1f0] sm:$0xff] }
 0x43c   :  { %1945 = vmatpush.msrb.mxu2 %v4227_v54 }
 0x43d   :  { %2132 = vmatpush.msra.mxu0 %v4125_v18  ;;  %v4229_v18 = vld [vmem:[#allocation7 + $0x1f8] sm:$0xff] }
 0x43e   :  { %1965 = vmatpush.msra.mxu3 %v4229_v18 }
 0x43f   :  { %2133 = vmatpush.msra.mxu0 %v4128_v16  ;;  %v4234_v16 = vld [vmem:[#allocation7 + $0x1c8] sm:$0xff] }
 0x440   :  { %1926 = vmatpush.msrb.mxu1 %v4234_v16 }
 0x441   :  { %2134 = vmatpush.msra.mxu0 %v4131_v15  ;;  %v4236_v15 = vld [vmem:[#allocation7 + $0x1d0] sm:$0xff] }
 0x442   :  { %1946 = vmatpush.msrb.mxu2 %v4236_v15 }
 0x443   :  { %2135 = vmatpush.msra.mxu0 %v4134_v39  ;;  %v4238_v39 = vld [vmem:[#allocation7 + $0x1d8] sm:$0xff] }
 0x444   :  { %1966 = vmatpush.msra.mxu3 %v4238_v39 }
 0x445   :  { %2136 = vmatpush.msra.mxu0 %v4137_v44  ;;  %v4243_v44 = vld [vmem:[#allocation7 + $0x1a8] sm:$0xff] }
 0x446   :  { %1927 = vmatpush.msrb.mxu1 %v4243_v44 }
 0x447   :  { %2137 = vmatpush.msra.mxu0 %v4140_v2  ;;  %v4245_v2 = vld [vmem:[#allocation7 + $0x1b0] sm:$0xff] }
 0x448   :  { %1947 = vmatpush.msrb.mxu2 %v4245_v2 }
 0x449   :  { %2138 = vmatpush.msra.mxu0 %v4143_v47  ;;  %v4247_v47 = vld [vmem:[#allocation7 + $0x1b8] sm:$0xff] }
 0x44a   :  { %1967 = vmatpush.msra.mxu3 %v4247_v47 }
 0x44b   :  { %2139 = vmatpush.msra.mxu0 %v4146_v43  ;;  %v4252_v43 = vld [vmem:[#allocation7 + $0x188] sm:$0xff] }
 0x44c   :  { %1928 = vmatpush.msrb.mxu1 %v4252_v43 }
 0x44d   :  { %2140 = vmatpush.msra.mxu0 %v4155_v4  ;;  %v4254_v4 = vld [vmem:[#allocation7 + $0x190] sm:$0xff] }
 0x44e   :  { %1948 = vmatpush.msrb.mxu2 %v4254_v4 }
 0x44f   :  { %2141 = vmatpush.msra.mxu0 %v4158_v34  ;;  %v4256_v34 = vld [vmem:[#allocation7 + $0x198] sm:$0xff] }
 0x450   :  { %1968 = vmatpush.msra.mxu3 %v4256_v34 }
 0x451   :  { %2142 = vmatpush.msra.mxu0 %v4160_v63  ;;  %v4261_v63 = vld [vmem:[#allocation7 + $0x168] sm:$0xff] }
 0x452   :  { %1929 = vmatpush.msrb.mxu1 %v4261_v63 }
 0x453   :  { %2143 = vmatpush.msra.mxu0 %v4163_v0  ;;  %v4263_v0 = vld [vmem:[#allocation7 + $0x170] sm:$0xff] }
 0x454   :  { %1949 = vmatpush.msrb.mxu2 %v4263_v0 }
 0x455   :  { %2144 = vmatpush.msra.mxu0 %v4171_v42  ;;  %v4265_v42 = vld [vmem:[#allocation7 + $0x178] sm:$0xff] }
 0x456   :  { %1969 = vmatpush.msra.mxu3 %v4265_v42  ;;  %1950 = vmatpush.msrb.mxu2 %v4272_v35 }
 0x457   :  { %2145 = vmatpush.msra.mxu0 %v4174_v37  ;;  %v4270_v37 = vld [vmem:[#allocation7 + $0x148] sm:$0xff] }
 0x458   :  { %1930 = vmatpush.msrb.mxu1 %v4270_v37  ;;  %1970 = vmatpush.msra.mxu3 %v4274_v24 }
 0x459   :  { %1951 = vmatpush.msrb.mxu2 %v4281_v58 }
 0x45a   :  { %1931 = vmatpush.msrb.mxu1 %v4279_v9  ;;  %1971 = vmatpush.msra.mxu3 %v4283_v8 }
 0x45b   :  { %1952 = vmatpush.msrb.mxu2 %v4290_v7 }
 0x45c   :  { %1932 = vmatpush.msrb.mxu1 %v4288_v51  ;;  %1972 = vmatpush.msra.mxu3 %v4292_v27 }
 0x45d   :  { %1953 = vmatpush.msrb.mxu2 %v4299_v50 }
 0x45e   :  { %1933 = vmatpush.msrb.mxu1 %v4297_v14  ;;  %1973 = vmatpush.msra.mxu3 %v4301_v61 }
 0x45f   :  { %1954 = vmatpush.msrb.mxu2 %v4308_v33 }
 0x460   :  { %1934 = vmatpush.msrb.mxu1 %v4306_v49  ;;  %1974 = vmatpush.msra.mxu3 %v4310_v45 }
 0x461   :  { %1955 = vmatpush.msrb.mxu2 %v4323_v56 }
 0x462   :  { %1935 = vmatpush.msrb.mxu1 %v4321_v3  ;;  %1975 = vmatpush.msra.mxu3 %v4325_v31 }
 0x463   :  { %1956 = vmatpush.msrb.mxu2 %v4332_v11 }
 0x464   :  { %1936 = vmatpush.msrb.mxu1 %v4330_v29  ;;  %1976 = vmatpush.msra.mxu3 %v4334_v13 }
 0x465   :  { %1957 = vmatpush.msrb.mxu2 %v4340_v46 }
 0x466   :  { %1937 = vmatpush.msrb.mxu1 %v4338_v32  ;;  %1977 = vmatpush.msra.mxu3 %v4342_v20 }
 0x467   :  { %1958 = vmatpush.msrb.mxu2 %v4347_v36 }
 0x468   :  { %1938 = vmatpush.msrb.mxu1 %v4345_v17  ;;  %1978 = vmatpush.msra.mxu3 %v4351_v57 }
 0x4b4   :  { %v1697_v22 = vpop.f32.mrf.mxu0  ;;  %v1717_v59 = vpop.f32.mrf.mxu1 }
 0x4b5   :  { %v1760_v52 = vadd.f32 %v1697_v22, %v4769_v30  ;;  %v1761_v5 = vadd.f32 %v1717_v59, %v4772_v6  ;;  %v4359_v22 = vld [vmem:[#allocation7 + $0x28] sm:$0xff]  ;;  %v4361_v59 = vld [vmem:[#allocation7 + $0x30] sm:$0xff]  ;;  %v4365_v30 = vld [vmem:[#allocation7 + $0x38] sm:$0xff] }
 0x4b6   :  { %1939 = vmatpush.msrb.mxu1 %v4359_v22  ;;  %1959 = vmatpush.msrb.mxu2 %v4361_v59 }
 0x4b7   :  { %v2621_v21 = vmul.f32 -1.442695, %v1760_v52  ;;  %v2622_v40 = vmul.f32 -1.442695, %v1761_v5  ;;  %v4374_v5 = vld [vmem:[#allocation7 + $0x18] sm:$0xff]  ;;  %1979 = vmatpush.msra.mxu3 %v4365_v30 }
 0x4b8   :  { %1940 = vmatpush.msrb.mxu1 %v4368_v23  ;;  %1960 = vmatpush.msrb.mxu2 %v4370_v53 }
 0x4b9   :  { %2758 = vpow2.f32 %v2621_v21  ;;  %1980 = vmatpush.msra.mxu3 %v4374_v5 }
 0x4ba   :  { %2760 = vpow2.f32 %v2622_v40  ;;  %2170 = vmatpush.msra.mxu2 %v4227_v54  ;;  %2150 = vmatpush.msra.mxu1 %v4225_v62  ;;  %v4776_v62 = vld [vmem:[#allocation31_spill] sm:$0xff] }
 0x4bb   :  { %v1757_v25 = vpop.f32.mrf.mxu3  ;;  %2190 = vmatpush.msrb.mxu3 %v4229_v18  ;;  %v1737_v12 = vpop.f32.mrf.mxu2  ;;  %v4777_v18 = vld [vmem:[#allocation30_spill] sm:$0xff] }
 0x4bc   :  { %v1763_v38 = vadd.f32 %v1757_v25, %v4775_v60  ;;  %2171 = vmatpush.msra.mxu2 %v4236_v15  ;;  %2151 = vmatpush.msra.mxu1 %v4234_v16  ;;  %v4778_v15 = vsel %vm3533_vm10, %v4776_v62, %v4777_v18  ;;  %v2432_v62 = vld [vmem:[#allocation9 + $0x130] sm:$0xff] }
 0x4bd   :  { %2191 = vmatpush.msrb.mxu3 %v4238_v39 }
 0x4be   :  { %v2623_v52 = vmul.f32 -1.442695, %v1763_v38  ;;  %2172 = vmatpush.msra.mxu2 %v4245_v2  ;;  %2152 = vmatpush.msra.mxu1 %v4243_v44  ;;  %v1762_v38 = vadd.f32 %v1737_v12, %v4778_v15  ;;  %v4783_v15 = vld [vmem:[#allocation45_spill] sm:$0xff] }
 0x4bf   :  { %v2759_v6 = vpop.eup %2758  ;;  %2192 = vmatpush.msrb.mxu3 %v4247_v47 }
 0x4c0   :  { %v2761_v21 = vpop.eup %2760  ;;  %v4376_v40 = vadd.f32 1.0, %v2759_v6  ;;  %2762 = vpow2.f32 %v2623_v52  ;;  %2173 = vmatpush.msra.mxu2 %v4254_v4  ;;  %2153 = vmatpush.msra.mxu1 %v4252_v43 }
 0x4c1   :  { %v4379_v25 = vadd.f32 1.0, %v2761_v21  ;;  %2193 = vmatpush.msrb.mxu3 %v4256_v34 }
 0x4c2   :  { %2764 = vrcp.f32 %v4376_v40  ;;  %2174 = vmatpush.msra.mxu2 %v4263_v0  ;;  %2154 = vmatpush.msra.mxu1 %v4261_v63  ;;  %v1779_v4 = vand.u32 2147483648, %v4376_v40  ;;  %v1777_v34 = vand.u32 2147483647, %v4376_v40  ;;  %vm1773_vm14 = vweird.f32 %v4376_v40 }
 0x4c3   :  { %2766 = vrcp.f32 %v4379_v25  ;;  %2194 = vmatpush.msrb.mxu3 %v4265_v42  ;;  %v1798_v52 = vand.u32 2147483648, %v4379_v25  ;;  %v1796_v63 = vand.u32 2147483647, %v4379_v25  ;;  %vm1792_vm15 = vweird.f32 %v4379_v25 }
 0x4c4   :  { %2175 = vmatpush.msra.mxu2 %v4272_v35  ;;  %2155 = vmatpush.msra.mxu1 %v4270_v37  ;;  %v1780_v37 = vor.u32 1.1754944e-38, %v1779_v4  ;;  %vm1778_vm2 = vcmp.eq.f32.partialorder %v1777_v34, 8.507059e+37 }
 0x4c5   :  { %2195 = vmatpush.msrb.mxu3 %v4274_v24  ;;  %v1799_v21 = vor.u32 1.1754944e-38, %v1798_v52  ;;  %vm1797_vm3 = vcmp.eq.f32.partialorder %v1796_v63, 8.507059e+37  ;;  %v2428_v63 = vld [vmem:[#allocation9 + $0x110] sm:$0xff] }
 0x4c6   :  { %v2763_v1 = vpop.eup %2762  ;;  %2176 = vmatpush.msra.mxu2 %v4281_v58  ;;  %2156 = vmatpush.msra.mxu1 %v4279_v9 }
 0x4c7   :  { %v4393_v60 = vadd.f32 1.0, %v2763_v1  ;;  %2196 = vmatpush.msrb.mxu3 %v4283_v8 }
 0x4c8   :  { %v2765_v54 = vpop.eup %2764  ;;  %2177 = vmatpush.msra.mxu2 %v4290_v7  ;;  %2157 = vmatpush.msra.mxu1 %v4288_v51 }
 0x4c9   :  { %v2767_v16 = vpop.eup %2766  ;;  %v1769_v39 = vmul.f32 %v2765_v54, %v4376_v40  ;;  %2768 = vrcp.f32 %v4393_v60  ;;  %vm1774_vm12 = vweird.f32 %v2765_v54  ;;  %2197 = vmatpush.msrb.mxu3 %v4292_v27  ;;  %vm1812_vm5 = vweird.f32 %v4393_v60 }
 0x4ca   :  { %v1788_v44 = vmul.f32 %v2767_v16, %v4379_v25  ;;  %2770 = vtanh.f32 %v1762_v38  ;;  %vm1793_vm13 = vweird.f32 %v2767_v16  ;;  %vm1775_vm0 = vmor %vm1773_vm14, %vm1774_vm12  ;;  %2178 = vmatpush.msra.mxu2 %v4299_v50  ;;  %2158 = vmatpush.msra.mxu1 %v4297_v14  ;;  %v1816_v14 = vand.u32 2147483647, %v4393_v60  ;;  %v4784_v38 = vld [vmem:[#allocation29_spill] sm:$0xff] }
 0x4cb   :  { %v1770_v2 = vsub.f32 1.0, %v1769_v39  ;;  %vm1794_vm1 = vmor %vm1792_vm15, %vm1793_vm13  ;;  %2198 = vmatpush.msrb.mxu3 %v4301_v61 }
 0x4cc   :  { %v1789_v47 = vsub.f32 1.0, %v1788_v44  ;;  %2179 = vmatpush.msra.mxu2 %v4308_v33  ;;  %2159 = vmatpush.msra.mxu1 %v4306_v49  ;;  %vm1817_vm7 = vcmp.eq.f32.partialorder %v1816_v14, 8.507059e+37  ;;  %v2431_v44 = vld [vmem:[#allocation9 + $0x128] sm:$0xff] }
 0x4cd   :  { %v1771_v43 = vmul.f32 %v2765_v54, %v1770_v2  ;;  %2199 = vmatpush.msrb.mxu3 %v4310_v45 }
 0x4ce   :  { %v1790_v0 = vmul.f32 %v2767_v16, %v1789_v47  ;;  %2180 = vmatpush.msra.mxu2 %v4323_v56  ;;  %2160 = vmatpush.msra.mxu1 %v4321_v3  ;;  %v2441_v3 = vld [vmem:[#allocation9 + $0x178] sm:$0xff]  ;;  %v2440_v56 = vld [vmem:[#allocation9 + $0x170] sm:$0xff]  ;;  %v2430_v47 = vld [vmem:[#allocation9 + $0x120] sm:$0xff] }
 0x4cf   :  { %v2769_v42 = vpop.eup %2768  ;;  %v1772_v6 = vadd.f32 %v2765_v54, %v1771_v43  ;;  %2200 = vmatpush.msrb.mxu3 %v4325_v31  ;;  %v2439_v31 = vld [vmem:[#allocation9 + $0x168] sm:$0xff] }
 0x4d0   :  { %v1791_v35 = vadd.f32 %v2767_v16, %v1790_v0  ;;  %v1808_v24 = vmul.f32 %v2769_v42, %v4393_v60  ;;  %v2771_v9 = vpop.eup %2770  ;;  %vm1813_vm4 = vweird.f32 %v2769_v42  ;;  %2181 = vmatpush.msra.mxu2 %v4332_v11  ;;  %2161 = vmatpush.msra.mxu1 %v4330_v29  ;;  %v2438_v29 = vld [vmem:[#allocation9 + $0x160] sm:$0xff]  ;;  %v2437_v11 = vld [vmem:[#allocation9 + $0x158] sm:$0xff] }
 0x4d1   :  { %v1776_v58 = vsel %vm1775_vm0, %v2765_v54, %v1772_v6  ;;  %2201 = vmatpush.msrb.mxu3 %v4334_v13  ;;  %vm1814_vm6 = vmor %vm1812_vm5, %vm1813_vm4  ;;  %v2429_v0 = vld [vmem:[#allocation9 + $0x118] sm:$0xff] }
 0x4d2   :  { %v1781_v40 = vsel %vm1778_vm2, %v1780_v37, %v1776_v58  ;;  %v1795_v8 = vsel %vm1794_vm1, %v2767_v16, %v1791_v35  ;;  %v1809_v25 = vsub.f32 1.0, %v1808_v24  ;;  %2182 = vmatpush.msra.mxu2 %v4340_v46  ;;  %2162 = vmatpush.msra.mxu1 %v4338_v32  ;;  %v2436_v46 = vld [vmem:[#allocation9 + $0x150] sm:$0xff]  ;;  %v4785_v16 = vsel %vm3635_vm11, %v4783_v15, %v4784_v38  ;;  %v2426_v35 = vld [vmem:[#allocation9 + $0x100] sm:$0xff]  ;;  %v4786_v58 = vld [vmem:[#allocation36_spill] sm:$0xff] }
 0x4d3   :  { %v1800_v12 = vsel %vm1797_vm3, %v1799_v21, %v1795_v8  ;;  %v1823_v1 = vmul.f32 %v2771_v9, %v1781_v40  ;;  %2202 = vmatpush.msrb.mxu3 %v4342_v20  ;;  %v4779_v20 = vld [vmem:[#allocation17_spill] sm:$0xff]  ;;  %v4787_v9 = vld [vmem:[#allocation35_spill] sm:$0xff] }
 0x4d4   :  { %v1822_v7 = vmul.f32 %v1800_v12, %v4194_v41  ;;  %v1810_v54 = vmul.f32 %v2769_v42, %v1809_v25  ;;  %v1818_v41 = vand.u32 2147483648, %v4393_v60  ;;  %2183 = vmatpush.msra.mxu2 %v4347_v36  ;;  %2163 = vmatpush.msra.mxu1 %v4345_v17  ;;  %v4780_v36 = vld [vmem:[#allocation33_spill] sm:$0xff]  ;;  %v2433_v60 = vld [vmem:[#allocation9 + $0x138] sm:$0xff]  ;;  %v4788_v40 = vsel %vm3533_vm10, %v4786_v58, %v4787_v9  ;;  %v2335_v58 = vld [vmem:[#allocation9 + $0xc0] sm:$0xff] }
 0x4d5   :  { %2203 = vmatpush.msrb.mxu3 %v4351_v57  ;;  %v4781_v57 = vld [vmem:[#allocation32_spill] sm:$0xff]  ;;  %v4545_v9 = vld [vmem:[#allocation9 + $0x40] sm:$0xff] }
 0x4d6   :  { %v4434_v51 = vadd.f32 %v1823_v1, %v1822_v7  ;;  %v1811_v27 = vadd.f32 %v2769_v42, %v1810_v54  ;;  %v1819_v61 = vor.u32 1.1754944e-38, %v1818_v41  ;;  %2184 = vmatpush.msra.mxu2 %v4361_v59  ;;  %2164 = vmatpush.msra.mxu1 %v4359_v22  ;;  %v4782_v22 = vsel %vm3510_vm9, %v4780_v36, %v4781_v57 }
 0x4d7   :  { %2204 = vmatpush.msrb.mxu3 %v4365_v30  ;;  %v2435_v30 = vld [vmem:[#allocation9 + $0x148] sm:$0xff] }
 0x4d8   :  { %2772 = vtanh.f32 %v4434_v51  ;;  %v1815_v50 = vsel %vm1814_vm6, %v2769_v42, %v1811_v27  ;;  %2185 = vmatpush.msra.mxu2 %v4370_v53  ;;  %2165 = vmatpush.msra.mxu1 %v4368_v23  ;;  %v2427_v42 = vld [vmem:[#allocation9 + $0x108] sm:$0xff] }
 0x4d9   :  { %v1820_v33 = vsel %vm1817_vm7, %v1819_v61, %v1815_v50  ;;  %2205 = vmatpush.msrb.mxu3 %v4374_v5  ;;  %v2434_v5 = vld [vmem:[#allocation9 + $0x140] sm:$0xff] }
 0x4de   :  { %v2773_v49 = vpop.eup %2772 }
 0x4df   :  { %v4453_v45 = vmul.f32 %v2773_v49, %v1820_v33 }
 0x4e1   :  { %1921 = vmatmul.f32.vlgmr.msrb.gmra.mxu0 %v4453_v45  ;;  %1941 = vmatmul.f32.vlgmr.msrb.gmra.mxu1 %v4453_v45 }
 0x4e2   :  { %1961 = vmatmul.f32.vlgmr.msrb.gmra.mxu2 %v4453_v45  ;;  %1981 = vmatmul.f32.vlgmr.msra.gmra.mxu3 %v4453_v45 }
 0x4e3   :  { %2442 = vmatpush.msrb.mxu2 %v2441_v3 }
 0x4e5   :  { %2443 = vmatpush.msrb.mxu2 %v2440_v56 }
 0x4e7   :  { %2444 = vmatpush.msrb.mxu2 %v2439_v31 }
 0x4e9   :  { %2445 = vmatpush.msrb.mxu2 %v2438_v29 }
 0x4eb   :  { %2446 = vmatpush.msrb.mxu2 %v2437_v11 }
 0x4ed   :  { %2447 = vmatpush.msrb.mxu2 %v2436_v46 }
 0x4ef   :  { %2448 = vmatpush.msrb.mxu2 %v2435_v30 }
 0x4f1   :  { %2449 = vmatpush.msrb.mxu2 %v2434_v5 }
 0x4f3   :  { %2450 = vmatpush.msrb.mxu2 %v2433_v60 }
 0x4f5   :  { %2451 = vmatpush.msrb.mxu2 %v2432_v62 }
 0x4f7   :  { %2452 = vmatpush.msrb.mxu2 %v2431_v44  ;;  %v4494_v44 = vsel %vm475_vm8, %v4034_v48, %v4453_v45 }
 0x4f9   :  { %2453 = vmatpush.msrb.mxu2 %v2430_v47  ;;  %v4508_v47 = vsel %vm475_vm8, %v4202_v26, %v4113_v28 }
 0x4fb   :  { %2454 = vmatpush.msrb.mxu2 %v2429_v0  ;;  %v2339_v0 = vld [vmem:[#allocation9 + $0xe0] sm:$0xff] }
 0x4fd   :  { %2455 = vmatpush.msrb.mxu2 %v2428_v63  ;;  %v4533_v63 = vld [vmem:[#allocation9 + $0x60] sm:$0xff] }
 0x4ff   :  { %2456 = vmatpush.msrb.mxu2 %v2427_v42  ;;  %v2338_v42 = vld [vmem:[#allocation9 + $0xd8] sm:$0xff] }
 0x501   :  { %2457 = vmatpush.msrb.mxu2 %v2426_v35  ;;  %v4539_v35 = vld [vmem:[#allocation9 + $0x50] sm:$0xff] }
 0x55e   :  { %v1922_v13 = vpop.f32.mrf.mxu0  ;;  %v1942_v32 = vpop.f32.mrf.mxu1 }
 0x55f   :  { %v1985_v17 = vadd.f32 %v1922_v13, %v4779_v20  ;;  %v1986_v59 = vadd.f32 %v1942_v32, %v4782_v22 }
 0x561   :  { %v2624_v23 = vmul.f32 -1.442695, %v1985_v17  ;;  %v2625_v53 = vmul.f32 -1.442695, %v1986_v59 }
 0x563   :  { %2774 = vpow2.f32 %v2624_v23 }
 0x564   :  { %2776 = vpow2.f32 %v2625_v53 }
 0x565   :  { %v1982_v18 = vpop.f32.mrf.mxu3  ;;  %v1962_v6 = vpop.f32.mrf.mxu2 }
 0x566   :  { %v1988_v39 = vadd.f32 %v1982_v18, %v4785_v16  ;;  %v1987_v8 = vadd.f32 %v1962_v6, %v4788_v40  ;;  %v4536_v6 = vld [vmem:[#allocation9 + $0x58] sm:$0xff] }
 0x567   :  { %v2334_v40 = vld [vmem:[#allocation9 + $0xb8] sm:$0xff] }
 0x568   :  { %v2626_v2 = vmul.f32 -1.442695, %v1988_v39 }
 0x569   :  { %v2775_v4 = vpop.eup %2774 }
 0x56a   :  { %v2777_v52 = vpop.eup %2776  ;;  %v1992_v43 = vadd.f32 1.0, %v2775_v4  ;;  %2778 = vpow2.f32 %v2626_v2  ;;  %v4501_v2 = vsel %vm475_vm8, %v4113_v28, %v4202_v26  ;;  %v4515_v4 = vsel %vm475_vm8, %v4453_v45, %v4034_v48  ;;  %v4524_v28 = vld [vmem:[#allocation9 + $0x78] sm:$0xff]  ;;  %v2341_v26 = vld [vmem:[#allocation9 + $0xf0] sm:$0xff]  ;;  %v2340_v48 = vld [vmem:[#allocation9 + $0xe8] sm:$0xff] }
 0x56b   :  { %v2011_v34 = vadd.f32 1.0, %v2777_v52  ;;  %2646 = vmatpush.msrb.mxu1 %v4524_v28  ;;  %v4530_v45 = vld [vmem:[#allocation9 + $0x68] sm:$0xff] }
 0x56c   :  { %2780 = vrcp.f32 %v1992_v43  ;;  %v2004_v27 = vand.u32 2147483648, %v1992_v43  ;;  %v2002_v50 = vand.u32 2147483647, %v1992_v43  ;;  %vm1998_vm14 = vweird.f32 %v1992_v43 }
 0x56d   :  { %2782 = vrcp.f32 %v2011_v34  ;;  %v2023_v41 = vand.u32 2147483648, %v2011_v34  ;;  %v2021_v49 = vand.u32 2147483647, %v2011_v34  ;;  %vm2017_vm15 = vweird.f32 %v2011_v34 }
 0x56e   :  { %v2005_v56 = vor.u32 1.1754944e-38, %v2004_v27  ;;  %vm2003_vm2 = vcmp.eq.f32.partialorder %v2002_v50, 8.507059e+37 }
 0x56f   :  { %v2024_v11 = vor.u32 1.1754944e-38, %v2023_v41  ;;  %vm2022_vm3 = vcmp.eq.f32.partialorder %v2021_v49, 8.507059e+37  ;;  %v4792_v41 = vld [vmem:[#allocation38_spill] sm:$0xff]  ;;  %v2332_v49 = vld [vmem:[#allocation9 + $0xa8] sm:$0xff] }
 0x570   :  { %v2779_v37 = vpop.eup %2778 }
 0x571   :  { %v2031_v24 = vadd.f32 1.0, %v2779_v37  ;;  %v2337_v37 = vld [vmem:[#allocation9 + $0xd0] sm:$0xff] }
 0x572   :  { %v2781_v21 = vpop.eup %2780 }
 0x573   :  { %v2783_v25 = vpop.eup %2782  ;;  %v1994_v12 = vmul.f32 %v2781_v21, %v1992_v43  ;;  %2784 = vrcp.f32 %v2031_v24  ;;  %vm1999_vm12 = vweird.f32 %v2781_v21  ;;  %v2043_v53 = vand.u32 2147483648, %v2031_v24  ;;  %v2342_v43 = vld [vmem:[#allocation9 + $0xf8] sm:$0xff] }
 0x574   :  { %v2013_v1 = vmul.f32 %v2783_v25, %v2011_v34  ;;  %2786 = vtanh.f32 %v1987_v8  ;;  %vm2018_vm13 = vweird.f32 %v2783_v25  ;;  %vm2000_vm0 = vmor %vm1998_vm14, %vm1999_vm12  ;;  %vm2037_vm5 = vweird.f32 %v2031_v24  ;;  %2343 = vmatpush.msrb.mxu0 %v2342_v43  ;;  %v4527_v34 = vld [vmem:[#allocation9 + $0x70] sm:$0xff]  ;;  %v4548_v8 = vld [vmem:[#allocation9 + $0x38] sm:$0xff] }
 0x575   :  { %v1995_v7 = vsub.f32 1.0, %v1994_v12  ;;  %vm2019_vm1 = vmor %vm2017_vm15, %vm2018_vm13  ;;  %v2041_v5 = vand.u32 2147483647, %v2031_v24  ;;  %v2044_v62 = vor.u32 1.1754944e-38, %v2043_v53  ;;  %2647 = vmatpush.msrb.mxu1 %v4527_v34  ;;  %v2327_v53 = vld [vmem:[#allocation9 + $0x80] sm:$0xff] }
 0x576   :  { %v2014_v54 = vsub.f32 1.0, %v2013_v1  ;;  %2344 = vmatpush.msrb.mxu0 %v2341_v26  ;;  %v2333_v1 = vld [vmem:[#allocation9 + $0xb0] sm:$0xff] }
 0x577   :  { %v1996_v14 = vmul.f32 %v2781_v21, %v1995_v7  ;;  %vm2042_vm7 = vcmp.eq.f32.partialorder %v2041_v5, 8.507059e+37  ;;  %2648 = vmatpush.msrb.mxu1 %v4530_v45  ;;  %v4551_v7 = vld [vmem:[#allocation9 + $0x30] sm:$0xff]  ;;  %v4579_v5 = vld [vmem:[#allocation9] sm:$0xff] }
 0x578   :  { %v2015_v61 = vmul.f32 %v2783_v25, %v2014_v54  ;;  %2345 = vmatpush.msrb.mxu0 %v2340_v48  ;;  %v4791_v54 = vld [vmem:[#allocation21_spill] sm:$0xff]  ;;  %v4799_v48 = vld [vmem:[#allocation40_spill] sm:$0xff] }
 0x579   :  { %v2785_v33 = vpop.eup %2784  ;;  %v1997_v3 = vadd.f32 %v2781_v21, %v1996_v14  ;;  %2649 = vmatpush.msrb.mxu1 %v4533_v63  ;;  %v4793_v14 = vld [vmem:[#allocation37_spill] sm:$0xff] }
 0x57a   :  { %v2016_v31 = vadd.f32 %v2783_v25, %v2015_v61  ;;  %v2033_v29 = vmul.f32 %v2785_v33, %v2031_v24  ;;  %v2787_v32 = vpop.eup %2786  ;;  %vm2038_vm4 = vweird.f32 %v2785_v33  ;;  %2346 = vmatpush.msrb.mxu0 %v2339_v0  ;;  %v2336_v24 = vld [vmem:[#allocation9 + $0xc8] sm:$0xff]  ;;  %v4794_v50 = vsel %vm3510_vm9, %v4792_v41, %v4793_v14  ;;  %v4798_v26 = vld [vmem:[#allocation41_spill] sm:$0xff] }
 0x57b   :  { %v2001_v13 = vsel %vm2000_vm0, %v2781_v21, %v1997_v3  ;;  %vm2039_vm6 = vmor %vm2037_vm5, %vm2038_vm4  ;;  %2650 = vmatpush.msrb.mxu1 %v4536_v6  ;;  %v4542_v21 = vld [vmem:[#allocation9 + $0x48] sm:$0xff]  ;;  %v4800_v0 = vsel %vm3533_vm10, %v4798_v26, %v4799_v48  ;;  %v2525_v48 = vld [vmem:[#allocation10 + $0x38] sm:$0xff] }
 0x57c   :  { %v2006_v46 = vsel %vm2003_vm2, %v2005_v56, %v2001_v13  ;;  %v2020_v20 = vsel %vm2019_vm1, %v2783_v25, %v2016_v31  ;;  %v2034_v17 = vsub.f32 1.0, %v2033_v29  ;;  %2347 = vmatpush.msrb.mxu0 %v2338_v42  ;;  %v2331_v31 = vld [vmem:[#allocation9 + $0xa0] sm:$0xff] }
 0x57d   :  { %v2025_v36 = vsel %vm2022_vm3, %v2024_v11, %v2020_v20  ;;  %v2048_v57 = vmul.f32 %v2787_v32, %v2006_v46  ;;  %2651 = vmatpush.msrb.mxu1 %v4539_v35  ;;  %v4563_v29 = vld [vmem:[#allocation9 + $0x20] sm:$0xff]  ;;  %v2330_v11 = vld [vmem:[#allocation9 + $0x98] sm:$0xff]  ;;  %v2329_v32 = vld [vmem:[#allocation9 + $0x90] sm:$0xff] }
 0x57e   :  { %v2047_v22 = vmul.f32 %v2025_v36, %v4434_v51  ;;  %v2035_v59 = vmul.f32 %v2785_v33, %v2034_v17  ;;  %v4789_v51 = vld [vmem:[#allocation49_spill] sm:$0xff]  ;;  %2348 = vmatpush.msrb.mxu0 %v2337_v37  ;;  %v4795_v20 = vld [vmem:[#allocation47_spill] sm:$0xff]  ;;  %v4796_v17 = vld [vmem:[#allocation46_spill] sm:$0xff] }
 0x57f   :  { %2652 = vmatpush.msrb.mxu1 %v4542_v21  ;;  %v4569_v46 = vld [vmem:[#allocation9 + $0x10] sm:$0xff]  ;;  %v4797_v36 = vsel %vm3635_vm11, %v4795_v20, %v4796_v17 }
 0x580   :  { %v4481_v30 = vadd.f32 %v2048_v57, %v2047_v22  ;;  %v2036_v23 = vadd.f32 %v2785_v33, %v2035_v59  ;;  %2349 = vmatpush.msrb.mxu0 %v2336_v24  ;;  %v2328_v22 = vld [vmem:[#allocation9 + $0x88] sm:$0xff] }
 0x581   :  { %2653 = vmatpush.msrb.mxu1 %v4545_v9  ;;  %v4576_v59 = vld [vmem:[#allocation9 + $0x8] sm:$0xff] }
 0x582   :  { %2788 = vtanh.f32 %v4481_v30  ;;  %v2040_v60 = vsel %vm2039_vm6, %v2785_v33, %v2036_v23  ;;  %2350 = vmatpush.msrb.mxu0 %v2335_v58  ;;  %v4560_v33 = vld [vmem:[#allocation9 + $0x28] sm:$0xff] }
 0x583   :  { %v2045_v15 = vsel %vm2042_vm7, %v2044_v62, %v2040_v60  ;;  %2654 = vmatpush.msrb.mxu1 %v4548_v8 }
 0x584   :  { %2351 = vmatpush.msrb.mxu0 %v2334_v40 }
 0x585   :  { %2655 = vmatpush.msrb.mxu1 %v4551_v7 }
 0x586   :  { %2352 = vmatpush.msrb.mxu0 %v2333_v1 }
 0x587   :  { %2656 = vmatpush.msrb.mxu1 %v4560_v33 }
 0x588   :  { %v2789_v18 = vpop.eup %2788  ;;  %2353 = vmatpush.msrb.mxu0 %v2332_v49 }
 0x589   :  { %v2051_v38 = vmul.f32 %v2789_v18, %v2045_v15  ;;  %2657 = vmatpush.msrb.mxu1 %v4563_v29 }
 0x58a   :  { %2354 = vmatpush.msrb.mxu0 %v2331_v31 }
 0x58b   :  { %2146 = vmatmul.f32.vlgmr.msra.gmra.mxu0 %v2051_v38  ;;  %2166 = vmatmul.f32.vlgmr.msra.gmra.mxu1 %v2051_v38  ;;  %v4487_v39 = vsel %vm475_vm8, %v4789_v51, %v2051_v38  ;;  %v4521_v52 = vsel %vm475_vm8, %v2051_v38, %v4789_v51 }
 0x58c   :  { %2186 = vmatmul.f32.vlgmr.msra.gmra.mxu2 %v2051_v38  ;;  %2206 = vmatmul.f32.vlgmr.msrb.gmra.mxu3 %v2051_v38 }
 0x58d   :  { %2355 = vmatpush.msrb.mxu0 %v2330_v11  ;;  %2658 = vmatpush.msrb.mxu1 %v4566_v19 }
 0x58f   :  { %2356 = vmatpush.msrb.mxu0 %v2329_v32  ;;  %2659 = vmatpush.msrb.mxu1 %v4569_v46 }
 0x591   :  { %2357 = vmatpush.msrb.mxu0 %v2328_v22  ;;  %2660 = vmatpush.msrb.mxu1 %v4576_v59 }
 0x593   :  { %2358 = vmatpush.msrb.mxu0 %v2327_v53  ;;  %2661 = vmatpush.msrb.mxu1 %v4579_v5  ;;  %v2532_v53 = vld [vmem:[#allocation10 + $0x70] sm:$0xff] }
 0x594   :  { %2458 = vmatmul.f32.vlgmr.msrb.gmra.mxu2 %v4487_v39 }
 0x595   :  { %2384 = vmatpush.msra.mxu0 %v4524_v28 }
 0x597   :  { %2385 = vmatpush.msra.mxu0 %v4527_v34 }
 0x599   :  { %2386 = vmatpush.msra.mxu0 %v4530_v45 }
 0x59b   :  { %2387 = vmatpush.msra.mxu0 %v4533_v63 }
 0x59c   :  { %2461 = vmatmul.f32.gmra.mxu2 %v4494_v44 }
 0x59d   :  { %2388 = vmatpush.msra.mxu0 %v4536_v6 }
 0x59f   :  { %2389 = vmatpush.msra.mxu0 %v4539_v35 }
 0x5a1   :  { %2390 = vmatpush.msra.mxu0 %v4542_v21 }
 0x5a3   :  { %2391 = vmatpush.msra.mxu0 %v4545_v9 }
 0x5a4   :  { %2464 = vmatmul.f32.gmra.mxu2 %v4501_v2 }
 0x5a5   :  { %2392 = vmatpush.msra.mxu0 %v4548_v8 }
 0x5a7   :  { %2393 = vmatpush.msra.mxu0 %v4551_v7 }
 0x5a9   :  { %2394 = vmatpush.msra.mxu0 %v4560_v33 }
 0x5ab   :  { %2395 = vmatpush.msra.mxu0 %v4563_v29 }
 0x5ac   :  { %2467 = vmatmul.f32.gmra.mxu2 %v4508_v47 }
 0x5ad   :  { %2396 = vmatpush.msra.mxu0 %v4566_v19 }
 0x5af   :  { %2397 = vmatpush.msra.mxu0 %v4569_v46  ;;  %v4802_v46 = vmov 0.0  }
 0x5b1   :  { %2398 = vmatpush.msra.mxu0 %v4576_v59 }
 0x5b3   :  { %2399 = vmatpush.msra.mxu0 %v4579_v5 }
 0x5b4   :  { %2470 = vmatmul.f32.gmra.mxu2 %v4515_v4 }
 0x5bc   :  { %2473 = vmatmul.f32.gmra.mxu2 %v4521_v52 }
 0x608   :  { %v2147_v25 = vpop.f32.mrf.mxu0  ;;  %v2167_v12 = vpop.f32.mrf.mxu1 }
 0x609   :  { %v2210_v27 = vadd.f32 %v2147_v25, %v4791_v54  ;;  %v2211_v61 = vadd.f32 %v2167_v12, %v4794_v50 }
 0x60b   :  { %v2627_v3 = vmul.f32 -1.442695, %v2210_v27  ;;  %v2628_v56 = vmul.f32 -1.442695, %v2211_v61 }
 0x60d   :  { %2790 = vpow2.f32 %v2627_v3 }
 0x60e   :  { %2792 = vpow2.f32 %v2628_v56 }
 0x60f   :  { %v2207_v13 = vpop.f32.mrf.mxu3  ;;  %v2187_v15 = vpop.f32.mrf.mxu2 }
 0x610   :  { %v2213_v57 = vadd.f32 %v2207_v13, %v4797_v36  ;;  %v2212_v42 = vadd.f32 %v2187_v15, %v4800_v0  ;;  %v4801_v36 = vld [vmem:[#allocation48_spill] sm:$0xff]  ;;  %v2528_v15 = vld [vmem:[#allocation10 + $0x50] sm:$0xff] }
 0x611   :  { %v2524_v0 = vld [vmem:[#allocation10 + $0x30] sm:$0xff] }
 0x612   :  { %v2629_v23 = vmul.f32 -1.442695, %v2213_v57 }
 0x613   :  { %v2791_v60 = vpop.eup %2790 }
 0x614   :  { %v2793_v62 = vpop.eup %2792  ;;  %v2217_v10 = vadd.f32 1.0, %v2791_v60  ;;  %2794 = vpow2.f32 %v2629_v23  ;;  %v2530_v60 = vld [vmem:[#allocation10 + $0x60] sm:$0xff] }
 0x615   :  { %v2236_v18 = vadd.f32 1.0, %v2793_v62 }
 0x616   :  { %2796 = vrcp.f32 %v2217_v10  ;;  %v2229_v40 = vand.u32 2147483648, %v2217_v10  ;;  %v2227_v25 = vand.u32 2147483647, %v2217_v10  ;;  %vm2223_vm11 = vweird.f32 %v2217_v10 }
 0x617   :  { %2798 = vrcp.f32 %v2236_v18  ;;  %v2248_v45 = vand.u32 2147483648, %v2236_v18  ;;  %v2246_v1 = vand.u32 2147483647, %v2236_v18  ;;  %vm2242_vm12 = vweird.f32 %v2236_v18  ;;  %v4625_v16 = vpop.f32.mrf.mxu2 }
 0x618   :  { %v2230_v6 = vor.u32 1.1754944e-38, %v2229_v40  ;;  %vm2228_vm15 = vcmp.eq.f32.partialorder %v2227_v25, 8.507059e+37  ;;  %v2520_v40 = vld [vmem:[#allocation10 + $0x10] sm:$0xff] }
 0x619   :  { %v2249_v35 = vor.u32 1.1754944e-38, %v2248_v45  ;;  %vm2247_vm0 = vcmp.eq.f32.partialorder %v2246_v1, 8.507059e+37  ;;  %v2519_v45 = vld [vmem:[#allocation10 + $0x8] sm:$0xff] }
 0x61a   :  { %v2795_v38 = vpop.eup %2794 }
 0x61b   :  { %v2256_v51 = vadd.f32 1.0, %v2795_v38  ;;  %v2527_v38 = vld [vmem:[#allocation10 + $0x48] sm:$0xff] }
 0x61c   :  { %v2797_v43 = vpop.eup %2796 }
 0x61d   :  { %v2799_v37 = vpop.eup %2798  ;;  %v2219_v24 = vmul.f32 %v2797_v43, %v2217_v10  ;;  %2800 = vrcp.f32 %v2256_v51  ;;  %vm2224_vm9 = vweird.f32 %v2797_v43  ;;  %v2268_v32 = vand.u32 2147483648, %v2256_v51  ;;  %v2529_v10 = vld [vmem:[#allocation10 + $0x58] sm:$0xff] }
 0x61e   :  { %v2238_v28 = vmul.f32 %v2799_v37, %v2236_v18  ;;  %2802 = vtanh.f32 %v2212_v42  ;;  %vm2243_vm10 = vweird.f32 %v2799_v37  ;;  %vm2225_vm13 = vmor %vm2223_vm11, %vm2224_vm9  ;;  %vm2262_vm2 = vweird.f32 %v2256_v51 }
 0x61f   :  { %v2220_v34 = vsub.f32 1.0, %v2219_v24  ;;  %vm2244_vm14 = vmor %vm2242_vm12, %vm2243_vm10  ;;  %v2266_v20 = vand.u32 2147483647, %v2256_v51  ;;  %v2269_v17 = vor.u32 1.1754944e-38, %v2268_v32  ;;  %v2522_v24 = vld [vmem:[#allocation10 + $0x20] sm:$0xff] }
 0x620   :  { %v2239_v58 = vsub.f32 1.0, %v2238_v28 }
 0x621   :  { %v2221_v55 = vmul.f32 %v2797_v43, %v2220_v34  ;;  %vm2267_vm4 = vcmp.eq.f32.partialorder %v2266_v20, 8.507059e+37 }
 0x622   :  { %v2240_v12 = vmul.f32 %v2799_v37, %v2239_v58  ;;  %v2521_v58 = vld [vmem:[#allocation10 + $0x18] sm:$0xff] }
 0x623   :  { %v2801_v63 = vpop.eup %2800  ;;  %v2222_v54 = vadd.f32 %v2797_v43, %v2221_v55  ;;  %v2518_v55 = vld [vmem:[#allocation10] sm:$0xff] }
 0x624   :  { %v2241_v27 = vadd.f32 %v2799_v37, %v2240_v12  ;;  %v2258_v41 = vmul.f32 %v2801_v63, %v2256_v51  ;;  %v2803_v50 = vpop.eup %2802  ;;  %vm2263_vm1 = vweird.f32 %v2801_v63 }
 0x625   :  { %v2226_v14 = vsel %vm2225_vm13, %v2797_v43, %v2222_v54  ;;  %vm2264_vm3 = vmor %vm2262_vm2, %vm2263_vm1  ;;  %v2526_v43 = vld [vmem:[#allocation10 + $0x40] sm:$0xff] }
 0x626   :  { %v2231_v61 = vsel %vm2228_vm15, %v2230_v6, %v2226_v14  ;;  %v2245_v49 = vsel %vm2244_vm14, %v2799_v37, %v2241_v27  ;;  %v2259_v3 = vsub.f32 1.0, %v2258_v41  ;;  %v2523_v37 = vld [vmem:[#allocation10 + $0x28] sm:$0xff] }
 0x627   :  { %v2250_v21 = vsel %vm2247_vm0, %v2249_v35, %v2245_v49  ;;  %v2273_v56 = vmul.f32 %v2803_v50, %v2231_v61 }
 0x628   :  { %v2272_v31 = vmul.f32 %v2250_v21, %v4481_v30  ;;  %v2260_v11 = vmul.f32 %v2801_v63, %v2259_v3  ;;  %v2676_v21 = vld [vmem:[%s4648_s5] ss:$0 sm:$0xff] }
 0x62a   :  { %v2274_v13 = vadd.f32 %v2273_v56, %v2272_v31  ;;  %v2261_v9 = vadd.f32 %v2801_v63, %v2260_v11 }
 0x62c   :  { %2804 = vtanh.f32 %v2274_v13  ;;  %v2265_v8 = vsel %vm2264_vm3, %v2801_v63, %v2261_v9 }
 0x62d   :  { %v2270_v7 = vsel %vm2267_vm4, %v2269_v17, %v2265_v8 }
 0x632   :  { %v2805_v30 = vpop.eup %2804 }
 0x633   :  { %v2276_v33 = vmul.f32 %v2805_v30, %v2270_v7 }
 0x635   :  { %v2301_v29 = vsel %vm475_vm8, %v4801_v36, %v2276_v33  ;;  %v2308_v19 = vsel %vm475_vm8, %v2276_v33, %v4801_v36 }
 0x636   :  { %2359 = vmatmul.f32.vlgmr.msrb.gmra.mxu0 %v2301_v29  ;;  %2403 = vmatmul.f32.vlgmr.msrb.gmra.mxu1 %v2301_v29 }
 0x637   :  { %2476 = vmatmul.f32.gmra.mxu2 %v2308_v19 }
 0x63e   :  { %2362 = vmatmul.f32.gmra.mxu0 %v4487_v39  ;;  %2406 = vmatmul.f32.gmra.mxu1 %v4487_v39  ;;  %v4627_v39 = vpop.f32.mrf.mxu2 }
 0x63f   :  { %2479 = vmatmul.f32.gmra.mxu2 %v4802_v46 }
 0x646   :  { %2365 = vmatmul.f32.gmra.mxu0 %v4494_v44  ;;  %2409 = vmatmul.f32.gmra.mxu1 %v4494_v44  ;;  %v2465_v22 = vpop.f32.mrf.mxu2 }
 0x64e   :  { %2368 = vmatmul.f32.gmra.mxu0 %v4501_v2  ;;  %2412 = vmatmul.f32.gmra.mxu1 %v4501_v2  ;;  %v2468_v5 = vpop.f32.mrf.mxu2 }
 0x656   :  { %2371 = vmatmul.f32.gmra.mxu0 %v4508_v47  ;;  %2415 = vmatmul.f32.gmra.mxu1 %v4508_v47  ;;  %v2471_v51 = vpop.f32.mrf.mxu2 }
 0x65e   :  { %2374 = vmatmul.f32.gmra.mxu0 %v4515_v4  ;;  %2418 = vmatmul.f32.gmra.mxu1 %v4515_v4  ;;  %v2533_v4 = vld [vmem:[#allocation10 + $0x78] sm:$0xff]  ;;  %v2474_v28 = vpop.f32.mrf.mxu2 }
 0x65f   :  { %2538 = vmatpush.msra.mxu3 %v2533_v4 }
 0x661   :  { %2539 = vmatpush.msra.mxu3 %v2532_v53 }
 0x666   :  { %2377 = vmatmul.f32.gmra.mxu0 %v4521_v52  ;;  %2421 = vmatmul.f32.gmra.mxu1 %v4521_v52  ;;  %v2531_v52 = vld [vmem:[#allocation10 + $0x68] sm:$0xff] }
 0x667   :  { %2540 = vmatpush.msra.mxu3 %v2531_v52 }
 0x669   :  { %2541 = vmatpush.msra.mxu3 %v2530_v60 }
 0x66b   :  { %2542 = vmatpush.msra.mxu3 %v2529_v10 }
 0x66d   :  { %2543 = vmatpush.msra.mxu3 %v2528_v15 }
 0x66e   :  { %2380 = vmatmul.f32.gmra.mxu0 %v2308_v19 }
 0x66f   :  { %2544 = vmatpush.msra.mxu3 %v2527_v38 }
 0x671   :  { %2545 = vmatpush.msra.mxu3 %v2526_v43 }
 0x673   :  { %2546 = vmatpush.msra.mxu3 %v2525_v48 }
 0x675   :  { %2547 = vmatpush.msra.mxu3 %v2524_v0 }
 0x676   :  { %2400 = vmatmul.f32.vlgmr.msra.gmra.mxu0 %v4802_v46 }
 0x677   :  { %2548 = vmatpush.msra.mxu3 %v2523_v37 }
 0x679   :  { %2549 = vmatpush.msra.mxu3 %v2522_v24 }
 0x67b   :  { %2550 = vmatpush.msra.mxu3 %v2521_v58 }
 0x67d   :  { %2551 = vmatpush.msra.mxu3 %v2520_v40 }
 0x67f   :  { %2552 = vmatpush.msra.mxu3 %v2519_v45 }
 0x681   :  { %2553 = vmatpush.msra.mxu3 %v2518_v55 }
 0x6b3   :  { %v4629_v44 = vpop.f32.mrf.mxu0  ;;  %v2404_v2 = vpop.f32.mrf.mxu1 }
 0x6ba   :  { %v2477_v12 = vpop.f32.mrf.mxu2 }
 0x6bb   :  { %v2363_v57 = vpop.f32.mrf.mxu0  ;;  %v2407_v47 = vpop.f32.mrf.mxu1 }
 0x6bc   :  { %v2405_v50 = vadd.f32 %v2404_v2, %v2363_v57 }
 0x6be   :  { %v2484_v13 = vadd.f32 %v4627_v39, %v2405_v50 }
 0x6c0   :  { %v2496_v36 = vadd.f32 %v2676_v21, %v2484_v13 }
 0x6c2   :  { %v2480_v63 = vpop.f32.mrf.mxu2  ;;  %v2504_v39 = vmax.f32 %v2496_v36, 0.0 }
 0x6c3   :  { %v2366_v59 = vpop.f32.mrf.mxu0  ;;  %v2410_v23 = vpop.f32.mrf.mxu1 }
 0x6c4   :  { %v2408_v61 = vadd.f32 %v2407_v47, %v2366_v59 }
 0x6c6   :  { %v2485_v9 = vadd.f32 %v2465_v22, %v2408_v61 }
 0x6c8   :  { %v2497_v29 = vadd.f32 %v2676_v21, %v2485_v9 }
 0x6ca   :  { %v2505_v22 = vmax.f32 %v2497_v29, 0.0 }
 0x6cb   :  { %v2369_v62 = vpop.f32.mrf.mxu0  ;;  %v2413_v18 = vpop.f32.mrf.mxu1 }
 0x6cc   :  { %v2411_v27 = vadd.f32 %v2410_v23, %v2369_v62 }
 0x6ce   :  { %v2486_v56 = vadd.f32 %v2468_v5, %v2411_v27 }
 0x6d0   :  { %v2498_v17 = vadd.f32 %v2676_v21, %v2486_v56 }
 0x6d2   :  { %v2506_v57 = vmax.f32 %v2498_v17, 0.0 }
 0x6d3   :  { %v2372_v26 = vpop.f32.mrf.mxu0  ;;  %v2416_v42 = vpop.f32.mrf.mxu1 }
 0x6d4   :  { %v2414_v49 = vadd.f32 %v2413_v18, %v2372_v26 }
 0x6d6   :  { %v2487_v32 = vadd.f32 %v2471_v51, %v2414_v49 }
 0x6d8   :  { %v2499_v19 = vadd.f32 %v2676_v21, %v2487_v32 }
 0x6da   :  { %v2507_v4 = vmax.f32 %v2499_v19, 0.0 }
 0x6db   :  { %v2375_v34 = vpop.f32.mrf.mxu0  ;;  %v2419_v25 = vpop.f32.mrf.mxu1 }
 0x6dc   :  { %v2417_v41 = vadd.f32 %v2416_v42, %v2375_v34 }
 0x6de   :  { %v2488_v31 = vadd.f32 %v2474_v28, %v2417_v41 }
 0x6e0   :  { %v2500_v30 = vadd.f32 %v2676_v21, %v2488_v31 }
 0x6e2   :  { %v2508_v47 = vmax.f32 %v2500_v30, 0.0 }
 0x6e3   :  { %v2378_v1 = vpop.f32.mrf.mxu0  ;;  %v2422_v54 = vpop.f32.mrf.mxu1 }
 0x6e4   :  { %v2420_v35 = vadd.f32 %v2419_v25, %v2378_v1  ;;  %v2512_v52 = vmax.f32 %v2504_v39, %v2508_v47 }
 0x6e6   :  { %v2489_v11 = vadd.f32 %v2477_v12, %v2420_v35 }
 0x6e8   :  { %v2501_v7 = vadd.f32 %v2676_v21, %v2489_v11 }
 0x6ea   :  { %v2509_v59 = vmax.f32 %v2501_v7, 0.0 }
 0x6eb   :  { %v2381_v6 = vpop.f32.mrf.mxu0 }
 0x6ec   :  { %v2423_v14 = vadd.f32 %v2422_v54, %v2381_v6  ;;  %v2513_v60 = vmax.f32 %v2505_v22, %v2509_v59 }
 0x6ee   :  { %v2490_v3 = vadd.f32 %v2480_v63, %v2423_v14 }
 0x6f0   :  { %v2502_v20 = vadd.f32 %v2676_v21, %v2490_v3 }
 0x6f2   :  { %v2510_v46 = vmax.f32 %v2502_v20, 0.0 }
 0x6f3   :  { %v2401_v8 = vpop.f32.mrf.mxu0 }
 0x6f4   :  { %v2402_v33 = vadd.f32 %v2401_v8, %v4629_v44  ;;  %v2514_v53 = vmax.f32 %v2506_v57, %v2510_v46 }
 0x6f6   :  { %v2483_v2 = vadd.f32 %v4625_v16, %v2402_v33  ;;  %v2516_v10 = vmax.f32 %v2512_v52, %v2514_v53  ;;  %v2677_v16 = vld [vmem:[%s4650_s7] ss:$0 sm:$0xff] }
 0x6f8   :  { %v2495_v23 = vadd.f32 %v2676_v21, %v2483_v2 }
 0x6fa   :  { %v2503_v5 = vmax.f32 %v2495_v23, 0.0 }
 0x6fc   :  { %v2511_v62 = vmax.f32 %v2503_v5, %v2507_v4 }
 0x6fe   :  { %v2515_v44 = vmax.f32 %v2511_v62, %v2513_v60 }
 0x700   :  { %v2517_v18 = vmax.f32 %v2515_v44, %v2516_v10 }
 0x702   :  { %2554 = vmatmul.f32.vlgmr.msra.gmra.mxu3 %v2517_v18 }
 0x785   :  { %v2555_v15 = vpop.f32.mrf.mxu3 }
 0x786   :  { %v2556_v38 = vadd.f32 %v2677_v16, %v2555_v15 }
 0x788   :  { %2558 = vst [vmem:[%s4651_s8] sm:$0xff] %v2556_v38 }
 0x789   :  { %2563 = vsyncpa [#allocation6], 1 }
 0x78a   :  { %2564 = vsyncpa [#allocation8], 1 }
 0x78b   :  { %2565 = vsyncpa [#allocation11], 1 }

</bundles_post_ra>
